<compile_context>
chip_gen: v7x
topology: tpu7x:2x2x1
jax: 0.10.0
libtpu: 0.0.40
codegen_flags: <defaults>
</compile_context>

<pallas_src>
import functools

import jax
import jax.numpy as jnp
import numpy as np
from jax.experimental import pallas as pl
from jax.experimental.pallas import tpu as pltpu


def _round_up(x, m):
    return ((x + m - 1) // m) * m


# ----------------------------------------------------------------------------
# Kernel 1: fused matmul + ReLU + folded-BN affine (conv1..conv3 via im2col)
# ----------------------------------------------------------------------------
def _mm_relu_affine_kernel(x_ref, w_ref, bst_ref, o_ref):
    acc = jnp.dot(x_ref[...], w_ref[...], preferred_element_type=jnp.float32)
    bst = bst_ref[...]                                   # [2, N]: row0 = bias', row1 = shift
    o_ref[...] = jnp.maximum(acc + bst[0:1, :], 0.0) + bst[1:2, :]


def fused_matmul_relu_affine(x, w, bst, *, tm_max=1024, split_rows=256):
    """out = relu(x @ w + bst[0]) + bst[1], row-tiled.

    Tiling policy: cap the row tile at `tm_max` (guards VMEM on v7x at large
    batch), use >= 2 parallel tiles whenever M > split_rows (megacore), and pad
    the last tile (cdiv tiling) instead of falling back to one huge block.
    """
    M, K = x.shape
    N = w.shape[1]
    if M <= split_rows:
        tm = _round_up(M, 8)
    else:
        tm = min(tm_max, _round_up(pl.cdiv(M, 2), 8))
    grid_m = pl.cdiv(M, tm)
    M_pad = grid_m * tm
    if M_pad != M:
        x = jnp.pad(x, ((0, M_pad - M), (0, 0)))

    out = pl.pallas_call(
        _mm_relu_affine_kernel,
        out_shape=jax.ShapeDtypeStruct((M_pad, N), jnp.float32),
        grid=(grid_m,),
        in_specs=[
            pl.BlockSpec((tm, K), lambda i: (i, 0)),     # X row tile
            pl.BlockSpec((K, N), lambda i: (0, 0)),      # full W (stays resident)
            pl.BlockSpec((2, N), lambda i: (0, 0)),      # packed [bias'; bn_shift]
        ],
        out_specs=pl.BlockSpec((tm, N), lambda i: (i, 0)),
        compiler_params=pltpu.CompilerParams(dimension_semantics=("parallel",)),
    )(x, w, bst)
    return out[:M] if M_pad != M else out


# ----------------------------------------------------------------------------
# Kernel 2: fused tail = conv4 -> conv5 -> FC1 -> FC2 -> head -> log_softmax
# ----------------------------------------------------------------------------
def _tail_kernel(p4_ref, w4_ref, bst4_ref, g_ref, w5_ref, bst5_ref,
                 w1_ref, bst1_ref, w2_ref, bst2_ref, wh_ref, bh_ref,
                 o_ref, *, bp):
    f32 = jnp.float32

    # conv4: im2col'd patches [B*16, 576] @ [576, 128], ReLU + folded-BN affine.
    bst4 = bst4_ref[...]
    y4 = jnp.dot(p4_ref[...], w4_ref[...], preferred_element_type=f32)
    y4 = jnp.maximum(y4 + bst4[0:1, :], 0.0) + bst4[1:2, :]          # [B*16, 128]

    # conv5: in-kernel patch gather via a constant 0/1 selection matmul, then
    # one matmul per 3x3 tap.  Rows are ordered (spatial pos, batch) so the
    # flatten below needs only aligned static slices.
    p5 = jnp.dot(g_ref[...], y4, preferred_element_type=f32)         # [9*4*bp, 128]
    rows5 = 4 * bp
    cin5 = w5_ref.shape[0] // 9
    cout5 = w5_ref.shape[1]
    acc5 = jnp.zeros((rows5, cout5), f32)
    for k in range(9):
        acc5 = acc5 + jnp.dot(p5[k * rows5:(k + 1) * rows5, :],
                              w5_ref[k * cin5:(k + 1) * cin5, :],
                              preferred_element_type=f32)
    bst5 = bst5_ref[...]
    y5 = jnp.maximum(acc5 + bst5[0:1, :], 0.0) + bst5[1:2, :]        # [4*bp, 256]

    # FC1: torch's NCHW flatten order (c*4 + p) is absorbed into w1, which is
    # pre-permuted into 4 per-spatial-position [256, hidden] blocks.
    hidden = w1_ref.shape[1]
    z1 = jnp.zeros((bp, hidden), f32)
    for p in range(4):
        z1 = z1 + jnp.dot(y5[p * bp:(p + 1) * bp, :],
                          w1_ref[p * cout5:(p + 1) * cout5, :],
                          preferred_element_type=f32)
    bst1 = bst1_ref[...]
    h1 = jnp.maximum(z1 + bst1[0:1, :], 0.0) + bst1[1:2, :]

    # FC2
    bst2 = bst2_ref[...]
    z2 = jnp.dot(h1, w2_ref[...], preferred_element_type=f32)
    h2 = jnp.maximum(z2 + bst2[0:1, :], 0.0) + bst2[1:2, :]

    # head + LogSoftmax(dim=-1)
    logits = jnp.dot(h2, wh_ref[...], preferred_element_type=f32) + bh_ref[...]
    m = jnp.max(logits, axis=-1, keepdims=True)
    z = logits - m
    lse = jnp.log(jnp.sum(jnp.exp(z), axis=-1, keepdims=True))
    o_ref[...] = z - lse


def _conv5_gather_matrix(batch, bp):
    """0/1 matrix mapping conv4 output rows (b*16 + h*4 + w) to conv5 patch rows
    ordered (tap, out_pos, padded_batch).  Zero rows implement both the conv
    zero-padding and the batch padding up to `bp`."""
    g = np.zeros((9 * 4 * bp, 16 * batch), dtype=np.float32)
    for k in range(9):
        di, dj = divmod(k, 3)
        for p in range(4):
            ph, pw = divmod(p, 2)
            hi = 2 * ph + di - 1
            wi = 2 * pw + dj - 1
            if 0 <= hi < 4 and 0 <= wi < 4:
                for b in range(batch):
                    g[k * 4 * bp + p * bp + b, b * 16 + hi * 4 + wi] = 1.0
    return jnp.asarray(g)


def fused_tail(p4, prep, batch):
    """conv4, conv5, both FC layers, head and log-softmax in ONE pallas_call."""
    bp = _round_up(max(batch, 8), 8)          # padded batch rows (aligned slices)
    g = _conv5_gather_matrix(batch, bp)
    num_classes = prep["b_head"].shape[-1]
    args = (p4, prep["w4"], prep["bst4"], g, prep["w5"], prep["bst5"],
            prep["w_fc1"], prep["bst_fc1"], prep["w_fc2"], prep["bst_fc2"],
            prep["w_head"], prep["b_head"])
    out = pl.pallas_call(
        functools.partial(_tail_kernel, bp=bp),
        out_shape=jax.ShapeDtypeStruct((bp, num_classes), jnp.float32),
        grid=(1,),
        in_specs=[pl.BlockSpec(a.shape, lambda i: (0, 0)) for a in args],
        out_specs=pl.BlockSpec((bp, num_classes), lambda i: (0, 0)),
    )(*args)
    return out[:batch]


# ----------------------------------------------------------------------------
# Glue: im2col patch extraction (pure data movement, stays in XLA)
# ----------------------------------------------------------------------------
def im2col(x_nhwc, ksize, stride, pad):
    B, H, W, C = x_nhwc.shape
    xp = jnp.pad(x_nhwc, ((0, 0), (pad, pad), (pad, pad), (0, 0)))
    Ho = (H + 2 * pad - ksize) // stride + 1
    Wo = (W + 2 * pad - ksize) // stride + 1
    cols = []
    for di in range(ksize):
        for dj in range(ksize):
            patch = xp[:, di:di + stride * (Ho - 1) + 1:stride,
                          dj:dj + stride * (Wo - 1) + 1:stride, :]
            cols.append(patch)
    patches = jnp.stack(cols, axis=3)              # [B, Ho, Wo, 9, C], (di,dj,c) order
    return patches.reshape(B * Ho * Wo, ksize * ksize * C), (B, Ho, Wo)


# ----------------------------------------------------------------------------
# Deterministic synthetic parameters (shapes from BaseCNN.__init__)
# ----------------------------------------------------------------------------
def _bn_affine(key, n, eps=1e-5):
    k1, k2, k3, k4 = jax.random.split(key, 4)
    gamma = 0.5 + jax.random.uniform(k1, (n,), jnp.float32)      # (0.5, 1.5) -> scale > 0
    beta = 0.1 * jax.random.normal(k2, (n,), jnp.float32)
    r_mean = 0.1 * jax.random.normal(k3, (n,), jnp.float32)
    r_var = 0.5 + jax.random.uniform(k4, (n,), jnp.float32)
    scale = gamma / jnp.sqrt(r_var + eps)
    shift = beta - r_mean * scale
    return scale, shift


def init_params(key, num_classes, fc_hidden):
    params = {}
    conv_dims = [(3, 16, 1), (16, 32, 2), (32, 64, 2), (64, 128, 2), (128, 256, 2)]
    keys = jax.random.split(key, 32)
    ki = 0
    convs = []
    for (ci, co, stride) in conv_dims:
        std = (2.0 / (9 * ci)) ** 0.5
        w = std * jax.random.normal(keys[ki], (3, 3, ci, co), jnp.float32); ki += 1
        b = 0.01 * jax.random.normal(keys[ki], (co,), jnp.float32); ki += 1
        s, t = _bn_affine(keys[ki], co); ki += 1
        convs.append(dict(w=w, b=b, scale=s, shift=t, stride=stride))
    params["convs"] = convs

    fcs = []
    for (fi, fo) in [(256 * 2 * 2, fc_hidden), (fc_hidden, fc_hidden)]:
        std = (2.0 / fi) ** 0.5
        w = std * jax.random.normal(keys[ki], (fi, fo), jnp.float32); ki += 1
        b = 0.01 * jax.random.normal(keys[ki], (fo,), jnp.float32); ki += 1
        s, t = _bn_affine(keys[ki], fo); ki += 1
        fcs.append(dict(w=w, b=b, scale=s, shift=t))
    params["fcs"] = fcs

    std = (1.0 / fc_hidden) ** 0.5
    params["head_w"] = std * jax.random.normal(keys[ki], (fc_hidden, num_classes),
                                               jnp.float32); ki += 1
    params["head_b"] = 0.01 * jax.random.normal(keys[ki], (num_classes,), jnp.float32)
    return params


def prepare_params(params):
    """Fold the eval-mode BN affine into the matmul weights and pack bias+shift."""
    def fold(w2d, b, scale, shift):
        if not bool(jnp.all(scale > 0)):
            # relu(z)*s == relu(z*s) only holds for s > 0.
            raise ValueError("BN scale must be positive to fold into the weights")
        return w2d * scale[None, :], jnp.stack([b * scale, shift])

    convs = params["convs"]
    prep = {"convs123": []}
    for c in convs[:3]:
        w, bst = fold(c["w"].reshape(-1, c["w"].shape[-1]), c["b"], c["scale"], c["shift"])
        prep["convs123"].append(dict(w=w, bst=bst))

    c4, c5 = convs[3], convs[4]
    prep["w4"], prep["bst4"] = fold(c4["w"].reshape(-1, c4["w"].shape[-1]),
                                    c4["b"], c4["scale"], c4["shift"])
    prep["w5"], prep["bst5"] = fold(c5["w"].reshape(-1, c5["w"].shape[-1]),
                                    c5["b"], c5["scale"], c5["shift"])

    f1, f2 = params["fcs"]
    w1, prep["bst_fc1"] = fold(f1["w"], f1["b"], f1["scale"], f1["shift"])
    # Re-order FC1 rows from torch's NCHW flatten order (c*4 + p) into
    # per-spatial-position blocks (p*256 + c) for the fused tail kernel.
    cout5 = prep["w5"].shape[1]
    prep["w_fc1"] = w1.reshape(cout5, 4, -1).transpose(1, 0, 2).reshape(4 * cout5, -1)
    prep["w_fc2"], prep["bst_fc2"] = fold(f2["w"], f2["b"], f2["scale"], f2["shift"])

    prep["w_head"] = params["head_w"]
    prep["b_head"] = params["head_b"].reshape(1, -1)
    return prep


# ----------------------------------------------------------------------------
# Forward pass (mirrors BaseCNN.forward, BatchNorm in eval mode)
# ----------------------------------------------------------------------------
@jax.jit
def base_cnn_forward(prep, x_nchw):
    h = jnp.transpose(x_nchw, (0, 2, 3, 1))                 # NCHW -> NHWC
    strides = (1, 2, 2)                                     # conv1..conv3
    for layer, stride in zip(prep["convs123"], strides):
        cols, (B, Ho, Wo) = im2col(h, 3, stride, 1)
        co = layer["w"].shape[1]
        h = fused_matmul_relu_affine(cols, layer["w"], layer["bst"]).reshape(B, Ho, Wo, co)
    # conv4 patches built in XLA (tiny); conv4 .. log-softmax fused in one kernel.
    p4, (B, _, _) = im2col(h, 3, 2, 1)
    return fused_tail(p4, prep, B)


if __name__ == "__main__":
    num_classes = 10
    fc_hidden_size = 64

    key = jax.random.PRNGKey(0)
    kx, kp = jax.random.split(key)
    # Input spatial size must be 3 x 32 x 32 so the conv stack yields 256 x 2 x 2.
    x = jax.random.normal(kx, (2, 3, 32, 32), jnp.float32)
    params = init_params(kp, num_classes, fc_hidden_size)
    prep = prepare_params(params)

    out = base_cnn_forward(prep, x)
    out = jax.block_until_ready(out)

    assert out.shape == (2, num_classes)
    assert bool(jnp.all(jnp.isfinite(out)))
    # log-softmax rows must exponentiate-sum to ~1
    row_sums = jnp.exp(out).sum(axis=-1)
    assert bool(jnp.all(jnp.abs(row_sums - 1.0) < 1e-4))

    print("KERNEL_OK")
</pallas_src>

<mosaic_0001>
module attributes {stable_mosaic.version = 11 : i64} {
  func.func @_mm_relu_affine_kernel(%arg0: i32, %arg1: memref<1024x27xf32, #tpu.memory_space<vmem>>, %arg2: memref<27x16xf32, #tpu.memory_space<vmem>>, %arg3: memref<2x16xf32, #tpu.memory_space<vmem>>, %arg4: memref<1024x16xf32, #tpu.memory_space<vmem>>) attributes {dimension_semantics = [#tpu.dimension_semantics<parallel>], iteration_bounds = array<i64: 2>, scalar_prefetch = 0 : i64, scratch_operands = 0 : i64, tpu.core_type = #tpu.core_type<tc>, window_params = [{transform_indices = @transform_0, window_bounds = array<i64: 1024, 27>}, {pipeline_mode = #tpu.pipeline_mode<synchronous>, transform_indices = @transform_1, window_bounds = array<i64: 27, 16>}, {pipeline_mode = #tpu.pipeline_mode<synchronous>, transform_indices = @transform_2, window_bounds = array<i64: 2, 16>}, {transform_indices = @transform_3, window_bounds = array<i64: 1024, 16>}]} {
    %c0 = arith.constant 0 : index
    %c0_0 = arith.constant 0 : index
    %0 = vector.load %arg1[%c0, %c0_0] : memref<1024x27xf32, #tpu.memory_space<vmem>>, vector<1024x27xf32>
    %c0_1 = arith.constant 0 : index
    %c0_2 = arith.constant 0 : index
    %1 = vector.load %arg2[%c0_1, %c0_2] : memref<27x16xf32, #tpu.memory_space<vmem>>, vector<27x16xf32>
    %cst = arith.constant dense<0.000000e+00> : vector<1024x16xf32>
    %2 = tpu.matmul %0, %1, %cst {dimension_numbers = #tpu.dot_dimension_numbers<[1], [0], [0], [1], [0, 0, 1, 1], [], []>} : vector<1024x27xf32>, vector<27x16xf32>, vector<1024x16xf32> -> vector<1024x16xf32>
    %c0_3 = arith.constant 0 : index
    %c0_4 = arith.constant 0 : index
    %3 = vector.load %arg3[%c0_3, %c0_4] : memref<2x16xf32, #tpu.memory_space<vmem>>, vector<2x16xf32>
    %4 = vector.extract_strided_slice %3 {offsets = [0, 0], sizes = [1, 16], strides = [1, 1]} : vector<2x16xf32> to vector<1x16xf32>
    %5 = vector.broadcast %4 : vector<1x16xf32> to vector<1024x16xf32>
    %6 = arith.addf %2, %5 : vector<1024x16xf32>
    %cst_5 = arith.constant 0.000000e+00 : f32
    %7 = vector.broadcast %cst_5 : f32 to vector<1024x16xf32>
    %8 = arith.maximumf %6, %7 : vector<1024x16xf32>
    %9 = vector.extract_strided_slice %3 {offsets = [1, 0], sizes = [1, 16], strides = [1, 1]} : vector<2x16xf32> to vector<1x16xf32>
    %10 = vector.broadcast %9 : vector<1x16xf32> to vector<1024x16xf32>
    %11 = arith.addf %8, %10 : vector<1024x16xf32>
    %c0_6 = arith.constant 0 : index
    %c0_7 = arith.constant 0 : index
    %12 = vector.load %arg4[%c0_6, %c0_7] : memref<1024x16xf32, #tpu.memory_space<vmem>>, vector<1024x16xf32>
    tpu.vector_store %arg4[%c0_6, %c0_7], %11 {strides = array<i32>} : memref<1024x16xf32, #tpu.memory_space<vmem>>, vector<1024x16xf32>,
    return
  }
  func.func @transform_0(%arg0: i32) -> (i32, i32) {
    %c0_i32 = arith.constant 0 : i32
    %c0_i32_0 = arith.constant 0 : i32
    return %arg0, %c0_i32 : i32, i32
  }
  func.func @transform_1(%arg0: i32) -> (i32, i32) {
    %c0_i32 = arith.constant 0 : i32
    %c0_i32_0 = arith.constant 0 : i32
    %c0_i32_1 = arith.constant 0 : i32
    return %c0_i32, %c0_i32_0 : i32, i32
  }
  func.func @transform_2(%arg0: i32) -> (i32, i32) {
    %c0_i32 = arith.constant 0 : i32
    %c0_i32_0 = arith.constant 0 : i32
    %c0_i32_1 = arith.constant 0 : i32
    return %c0_i32, %c0_i32_0 : i32, i32
  }
  func.func @transform_3(%arg0: i32) -> (i32, i32) {
    %c0_i32 = arith.constant 0 : i32
    %c0_i32_0 = arith.constant 0 : i32
    return %arg0, %c0_i32 : i32, i32
  }
}

module attributes {stable_mosaic.version = 11 : i64} {
  func.func @_mm_relu_affine_kernel(%arg0: i32, %arg1: memref<256x144xf32, #tpu.memory_space<vmem>>, %arg2: memref<144x32xf32, #tpu.memory_space<vmem>>, %arg3: memref<2x32xf32, #tpu.memory_space<vmem>>, %arg4: memref<256x32xf32, #tpu.memory_space<vmem>>) attributes {dimension_semantics = [#tpu.dimension_semantics<parallel>], iteration_bounds = array<i64: 2>, scalar_prefetch = 0 : i64, scratch_operands = 0 : i64, tpu.core_type = #tpu.core_type<tc>, window_params = [{transform_indices = @transform_0, window_bounds = array<i64: 256, 144>}, {pipeline_mode = #tpu.pipeline_mode<synchronous>, transform_indices = @transform_1, window_bounds = array<i64: 144, 32>}, {pipeline_mode = #tpu.pipeline_mode<synchronous>, transform_indices = @transform_2, window_bounds = array<i64: 2, 32>}, {transform_indices = @transform_3, window_bounds = array<i64: 256, 32>}]} {
    %c0 = arith.constant 0 : index
    %c0_0 = arith.constant 0 : index
    %0 = vector.load %arg1[%c0, %c0_0] : memref<256x144xf32, #tpu.memory_space<vmem>>, vector<256x144xf32>
    %c0_1 = arith.constant 0 : index
    %c0_2 = arith.constant 0 : index
    %1 = vector.load %arg2[%c0_1, %c0_2] : memref<144x32xf32, #tpu.memory_space<vmem>>, vector<144x32xf32>
    %cst = arith.constant dense<0.000000e+00> : vector<256x32xf32>
    %2 = tpu.matmul %0, %1, %cst {dimension_numbers = #tpu.dot_dimension_numbers<[1], [0], [0], [1], [0, 0, 1, 1], [], []>} : vector<256x144xf32>, vector<144x32xf32>, vector<256x32xf32> -> vector<256x32xf32>
    %c0_3 = arith.constant 0 : index
    %c0_4 = arith.constant 0 : index
    %3 = vector.load %arg3[%c0_3, %c0_4] : memref<2x32xf32, #tpu.memory_space<vmem>>, vector<2x32xf32>
    %4 = vector.extract_strided_slice %3 {offsets = [0, 0], sizes = [1, 32], strides = [1, 1]} : vector<2x32xf32> to vector<1x32xf32>
    %5 = vector.broadcast %4 : vector<1x32xf32> to vector<256x32xf32>
    %6 = arith.addf %2, %5 : vector<256x32xf32>
    %cst_5 = arith.constant 0.000000e+00 : f32
    %7 = vector.broadcast %cst_5 : f32 to vector<256x32xf32>
    %8 = arith.maximumf %6, %7 : vector<256x32xf32>
    %9 = vector.extract_strided_slice %3 {offsets = [1, 0], sizes = [1, 32], strides = [1, 1]} : vector<2x32xf32> to vector<1x32xf32>
    %10 = vector.broadcast %9 : vector<1x32xf32> to vector<256x32xf32>
    %11 = arith.addf %8, %10 : vector<256x32xf32>
    %c0_6 = arith.constant 0 : index
    %c0_7 = arith.constant 0 : index
    %12 = vector.load %arg4[%c0_6, %c0_7] : memref<256x32xf32, #tpu.memory_space<vmem>>, vector<256x32xf32>
    tpu.vector_store %arg4[%c0_6, %c0_7], %11 {strides = array<i32>} : memref<256x32xf32, #tpu.memory_space<vmem>>, vector<256x32xf32>,
    return
  }
  func.func @transform_0(%arg0: i32) -> (i32, i32) {
    %c0_i32 = arith.constant 0 : i32
    %c0_i32_0 = arith.constant 0 : i32
    return %arg0, %c0_i32 : i32, i32
  }
  func.func @transform_1(%arg0: i32) -> (i32, i32) {
    %c0_i32 = arith.constant 0 : i32
    %c0_i32_0 = arith.constant 0 : i32
    %c0_i32_1 = arith.constant 0 : i32
    return %c0_i32, %c0_i32_0 : i32, i32
  }
  func.func @transform_2(%arg0: i32) -> (i32, i32) {
    %c0_i32 = arith.constant 0 : i32
    %c0_i32_0 = arith.constant 0 : i32
    %c0_i32_1 = arith.constant 0 : i32
    return %c0_i32, %c0_i32_0 : i32, i32
  }
  func.func @transform_3(%arg0: i32) -> (i32, i32) {
    %c0_i32 = arith.constant 0 : i32
    %c0_i32_0 = arith.constant 0 : i32
    return %arg0, %c0_i32 : i32, i32
  }
}

module attributes {stable_mosaic.version = 11 : i64} {
  func.func @_mm_relu_affine_kernel(%arg0: i32, %arg1: memref<128x288xf32, #tpu.memory_space<vmem>>, %arg2: memref<288x64xf32, #tpu.memory_space<vmem>>, %arg3: memref<2x64xf32, #tpu.memory_space<vmem>>, %arg4: memref<128x64xf32, #tpu.memory_space<vmem>>) attributes {dimension_semantics = [#tpu.dimension_semantics<parallel>], iteration_bounds = array<i64: 1>, scalar_prefetch = 0 : i64, scratch_operands = 0 : i64, tpu.core_type = #tpu.core_type<tc>, window_params = [{transform_indices = @transform_0, window_bounds = array<i64: 128, 288>}, {pipeline_mode = #tpu.pipeline_mode<synchronous>, transform_indices = @transform_1, window_bounds = array<i64: 288, 64>}, {pipeline_mode = #tpu.pipeline_mode<synchronous>, transform_indices = @transform_2, window_bounds = array<i64: 2, 64>}, {transform_indices = @transform_3, window_bounds = array<i64: 128, 64>}]} {
    %c0 = arith.constant 0 : index
    %c0_0 = arith.constant 0 : index
    %0 = vector.load %arg1[%c0, %c0_0] : memref<128x288xf32, #tpu.memory_space<vmem>>, vector<128x288xf32>
    %c0_1 = arith.constant 0 : index
    %c0_2 = arith.constant 0 : index
    %1 = vector.load %arg2[%c0_1, %c0_2] : memref<288x64xf32, #tpu.memory_space<vmem>>, vector<288x64xf32>
    %cst = arith.constant dense<0.000000e+00> : vector<128x64xf32>
    %2 = tpu.matmul %0, %1, %cst {dimension_numbers = #tpu.dot_dimension_numbers<[1], [0], [0], [1], [0, 0, 1, 1], [], []>} : vector<128x288xf32>, vector<288x64xf32>, vector<128x64xf32> -> vector<128x64xf32>
    %c0_3 = arith.constant 0 : index
    %c0_4 = arith.constant 0 : index
    %3 = vector.load %arg3[%c0_3, %c0_4] : memref<2x64xf32, #tpu.memory_space<vmem>>, vector<2x64xf32>
    %4 = vector.extract_strided_slice %3 {offsets = [0, 0], sizes = [1, 64], strides = [1, 1]} : vector<2x64xf32> to vector<1x64xf32>
    %5 = vector.broadcast %4 : vector<1x64xf32> to vector<128x64xf32>
    %6 = arith.addf %2, %5 : vector<128x64xf32>
    %cst_5 = arith.constant 0.000000e+00 : f32
    %7 = vector.broadcast %cst_5 : f32 to vector<128x64xf32>
    %8 = arith.maximumf %6, %7 : vector<128x64xf32>
    %9 = vector.extract_strided_slice %3 {offsets = [1, 0], sizes = [1, 64], strides = [1, 1]} : vector<2x64xf32> to vector<1x64xf32>
    %10 = vector.broadcast %9 : vector<1x64xf32> to vector<128x64xf32>
    %11 = arith.addf %8, %10 : vector<128x64xf32>
    %c0_6 = arith.constant 0 : index
    %c0_7 = arith.constant 0 : index
    %12 = vector.load %arg4[%c0_6, %c0_7] : memref<128x64xf32, #tpu.memory_space<vmem>>, vector<128x64xf32>
    tpu.vector_store %arg4[%c0_6, %c0_7], %11 {strides = array<i32>} : memref<128x64xf32, #tpu.memory_space<vmem>>, vector<128x64xf32>,
    return
  }
  func.func @transform_0(%arg0: i32) -> (i32, i32) {
    %c0_i32 = arith.constant 0 : i32
    %c0_i32_0 = arith.constant 0 : i32
    return %arg0, %c0_i32 : i32, i32
  }
  func.func @transform_1(%arg0: i32) -> (i32, i32) {
    %c0_i32 = arith.constant 0 : i32
    %c0_i32_0 = arith.constant 0 : i32
    %c0_i32_1 = arith.constant 0 : i32
    return %c0_i32, %c0_i32_0 : i32, i32
  }
  func.func @transform_2(%arg0: i32) -> (i32, i32) {
    %c0_i32 = arith.constant 0 : i32
    %c0_i32_0 = arith.constant 0 : i32
    %c0_i32_1 = arith.constant 0 : i32
    return %c0_i32, %c0_i32_0 : i32, i32
  }
  func.func @transform_3(%arg0: i32) -> (i32, i32) {
    %c0_i32 = arith.constant 0 : i32
    %c0_i32_0 = arith.constant 0 : i32
    return %arg0, %c0_i32 : i32, i32
  }
}

module attributes {stable_mosaic.version = 11 : i64} {
  func.func @_tail_kernel(%arg0: i32, %arg1: memref<32x576xf32, #tpu.memory_space<vmem>>, %arg2: memref<576x128xf32, #tpu.memory_space<vmem>>, %arg3: memref<2x128xf32, #tpu.memory_space<vmem>>, %arg4: memref<288x32xf32, #tpu.memory_space<vmem>>, %arg5: memref<1152x256xf32, #tpu.memory_space<vmem>>, %arg6: memref<2x256xf32, #tpu.memory_space<vmem>>, %arg7: memref<1024x64xf32, #tpu.memory_space<vmem>>, %arg8: memref<2x64xf32, #tpu.memory_space<vmem>>, %arg9: memref<64x64xf32, #tpu.memory_space<vmem>>, %arg10: memref<2x64xf32, #tpu.memory_space<vmem>>, %arg11: memref<64x10xf32, #tpu.memory_space<vmem>>, %arg12: memref<1x10xf32, #tpu.memory_space<vmem>>, %arg13: memref<8x10xf32, #tpu.memory_space<vmem>>) attributes {dimension_semantics = [#tpu.dimension_semantics<arbitrary>], iteration_bounds = array<i64: 1>, scalar_prefetch = 0 : i64, scratch_operands = 0 : i64, tpu.core_type = #tpu.core_type<tc>, window_params = [{pipeline_mode = #tpu.pipeline_mode<synchronous>, transform_indices = @transform_0, window_bounds = array<i64: 32, 576>}, {pipeline_mode = #tpu.pipeline_mode<synchronous>, transform_indices = @transform_1, window_bounds = array<i64: 576, 128>}, {pipeline_mode = #tpu.pipeline_mode<synchronous>, transform_indices = @transform_2, window_bounds = array<i64: 2, 128>}, {pipeline_mode = #tpu.pipeline_mode<synchronous>, transform_indices = @transform_3, window_bounds = array<i64: 288, 32>}, {pipeline_mode = #tpu.pipeline_mode<synchronous>, transform_indices = @transform_4, window_bounds = array<i64: 1152, 256>}, {pipeline_mode = #tpu.pipeline_mode<synchronous>, transform_indices = @transform_5, window_bounds = array<i64: 2, 256>}, {pipeline_mode = #tpu.pipeline_mode<synchronous>, transform_indices = @transform_6, window_bounds = array<i64: 1024, 64>}, {pipeline_mode = #tpu.pipeline_mode<synchronous>, transform_indices = @transform_7, window_bounds = array<i64: 2, 64>}, {pipeline_mode = #tpu.pipeline_mode<synchronous>, transform_indices = @transform_8, window_bounds = array<i64: 64, 64>}, {pipeline_mode = #tpu.pipeline_mode<synchronous>, transform_indices = @transform_9, window_bounds = array<i64: 2, 64>}, {pipeline_mode = #tpu.pipeline_mode<synchronous>, transform_indices = @transform_10, window_bounds = array<i64: 64, 10>}, {pipeline_mode = #tpu.pipeline_mode<synchronous>, transform_indices = @transform_11, window_bounds = array<i64: 1, 10>}, {pipeline_mode = #tpu.pipeline_mode<synchronous>, transform_indices = @transform_12, window_bounds = array<i64: 8, 10>}]} {
    %c0 = arith.constant 0 : index
    %c0_0 = arith.constant 0 : index
    %0 = vector.load %arg3[%c0, %c0_0] : memref<2x128xf32, #tpu.memory_space<vmem>>, vector<2x128xf32>
    %c0_1 = arith.constant 0 : index
    %c0_2 = arith.constant 0 : index
    %1 = vector.load %arg1[%c0_1, %c0_2] : memref<32x576xf32, #tpu.memory_space<vmem>>, vector<32x576xf32>
    %c0_3 = arith.constant 0 : index
    %c0_4 = arith.constant 0 : index
    %2 = vector.load %arg2[%c0_3, %c0_4] : memref<576x128xf32, #tpu.memory_space<vmem>>, vector<576x128xf32>
    %cst = arith.constant dense<0.000000e+00> : vector<32x128xf32>
    %3 = tpu.matmul %1, %2, %cst {dimension_numbers = #tpu.dot_dimension_numbers<[1], [0], [0], [1], [0, 0, 1, 1], [], []>} : vector<32x576xf32>, vector<576x128xf32>, vector<32x128xf32> -> vector<32x128xf32>
    %4 = vector.extract_strided_slice %0 {offsets = [0, 0], sizes = [1, 128], strides = [1, 1]} : vector<2x128xf32> to vector<1x128xf32>
    %5 = vector.broadcast %4 : vector<1x128xf32> to vector<32x128xf32>
    %6 = arith.addf %3, %5 : vector<32x128xf32>
    %cst_5 = arith.constant 0.000000e+00 : f32
    %7 = vector.broadcast %cst_5 : f32 to vector<32x128xf32>
    %8 = arith.maximumf %6, %7 : vector<32x128xf32>
    %9 = vector.extract_strided_slice %0 {offsets = [1, 0], sizes = [1, 128], strides = [1, 1]} : vector<2x128xf32> to vector<1x128xf32>
    %10 = vector.broadcast %9 : vector<1x128xf32> to vector<32x128xf32>
    %11 = arith.addf %8, %10 : vector<32x128xf32>
    %c0_6 = arith.constant 0 : index
    %c0_7 = arith.constant 0 : index
    %12 = vector.load %arg4[%c0_6, %c0_7] : memref<288x32xf32, #tpu.memory_space<vmem>>, vector<288x32xf32>
    %cst_8 = arith.constant dense<0.000000e+00> : vector<288x128xf32>
    %13 = tpu.matmul %12, %11, %cst_8 {dimension_numbers = #tpu.dot_dimension_numbers<[1], [0], [0], [1], [0, 0, 1, 1], [], []>} : vector<288x32xf32>, vector<32x128xf32>, vector<288x128xf32> -> vector<288x128xf32>
    %cst_9 = arith.constant 0.000000e+00 : f32
    %14 = vector.broadcast %cst_9 : f32 to vector<32x256xf32>
    %15 = vector.extract_strided_slice %13 {offsets = [0, 0], sizes = [32, 128], strides = [1, 1]} : vector<288x128xf32> to vector<32x128xf32>
    %c0_10 = arith.constant 0 : index
    %c0_11 = arith.constant 0 : index
    %16 = vector.load %arg5[%c0_10, %c0_11] : memref<1152x256xf32, #tpu.memory_space<vmem>>, vector<128x256xf32>
    %cst_12 = arith.constant dense<0.000000e+00> : vector<32x256xf32>
    %17 = tpu.matmul %15, %16, %cst_12 {dimension_numbers = #tpu.dot_dimension_numbers<[1], [0], [0], [1], [0, 0, 1, 1], [], []>} : vector<32x128xf32>, vector<128x256xf32>, vector<32x256xf32> -> vector<32x256xf32>
    %18 = arith.addf %14, %17 : vector<32x256xf32>
    %19 = vector.extract_strided_slice %13 {offsets = [32, 0], sizes = [32, 128], strides = [1, 1]} : vector<288x128xf32> to vector<32x128xf32>
    %c128 = arith.constant 128 : index
    %c0_13 = arith.constant 0 : index
    %20 = vector.load %arg5[%c128, %c0_13] : memref<1152x256xf32, #tpu.memory_space<vmem>>, vector<128x256xf32>
    %cst_14 = arith.constant dense<0.000000e+00> : vector<32x256xf32>
    %21 = tpu.matmul %19, %20, %cst_14 {dimension_numbers = #tpu.dot_dimension_numbers<[1], [0], [0], [1], [0, 0, 1, 1], [], []>} : vector<32x128xf32>, vector<128x256xf32>, vector<32x256xf32> -> vector<32x256xf32>
    %22 = arith.addf %18, %21 : vector<32x256xf32>
    %23 = vector.extract_strided_slice %13 {offsets = [64, 0], sizes = [32, 128], strides = [1, 1]} : vector<288x128xf32> to vector<32x128xf32>
    %c256 = arith.constant 256 : index
    %c0_15 = arith.constant 0 : index
    %24 = vector.load %arg5[%c256, %c0_15] : memref<1152x256xf32, #tpu.memory_space<vmem>>, vector<128x256xf32>
    %cst_16 = arith.constant dense<0.000000e+00> : vector<32x256xf32>
    %25 = tpu.matmul %23, %24, %cst_16 {dimension_numbers = #tpu.dot_dimension_numbers<[1], [0], [0], [1], [0, 0, 1, 1], [], []>} : vector<32x128xf32>, vector<128x256xf32>, vector<32x256xf32> -> vector<32x256xf32>
    %26 = arith.addf %22, %25 : vector<32x256xf32>
    %27 = vector.extract_strided_slice %13 {offsets = [96, 0], sizes = [32, 128], strides = [1, 1]} : vector<288x128xf32> to vector<32x128xf32>
    %c384 = arith.constant 384 : index
    %c0_17 = arith.constant 0 : index
    %28 = vector.load %arg5[%c384, %c0_17] : memref<1152x256xf32, #tpu.memory_space<vmem>>, vector<128x256xf32>
    %cst_18 = arith.constant dense<0.000000e+00> : vector<32x256xf32>
    %29 = tpu.matmul %27, %28, %cst_18 {dimension_numbers = #tpu.dot_dimension_numbers<[1], [0], [0], [1], [0, 0, 1, 1], [], []>} : vector<32x128xf32>, vector<128x256xf32>, vector<32x256xf32> -> vector<32x256xf32>
    %30 = arith.addf %26, %29 : vector<32x256xf32>
    %31 = vector.extract_strided_slice %13 {offsets = [128, 0], sizes = [32, 128], strides = [1, 1]} : vector<288x128xf32> to vector<32x128xf32>
    %c512 = arith.constant 512 : index
    %c0_19 = arith.constant 0 : index
    %32 = vector.load %arg5[%c512, %c0_19] : memref<1152x256xf32, #tpu.memory_space<vmem>>, vector<128x256xf32>
    %cst_20 = arith.constant dense<0.000000e+00> : vector<32x256xf32>
    %33 = tpu.matmul %31, %32, %cst_20 {dimension_numbers = #tpu.dot_dimension_numbers<[1], [0], [0], [1], [0, 0, 1, 1], [], []>} : vector<32x128xf32>, vector<128x256xf32>, vector<32x256xf32> -> vector<32x256xf32>
    %34 = arith.addf %30, %33 : vector<32x256xf32>
    %35 = vector.extract_strided_slice %13 {offsets = [160, 0], sizes = [32, 128], strides = [1, 1]} : vector<288x128xf32> to vector<32x128xf32>
    %c640 = arith.constant 640 : index
    %c0_21 = arith.constant 0 : index
    %36 = vector.load %arg5[%c640, %c0_21] : memref<1152x256xf32, #tpu.memory_space<vmem>>, vector<128x256xf32>
    %cst_22 = arith.constant dense<0.000000e+00> : vector<32x256xf32>
    %37 = tpu.matmul %35, %36, %cst_22 {dimension_numbers = #tpu.dot_dimension_numbers<[1], [0], [0], [1], [0, 0, 1, 1], [], []>} : vector<32x128xf32>, vector<128x256xf32>, vector<32x256xf32> -> vector<32x256xf32>
    %38 = arith.addf %34, %37 : vector<32x256xf32>
    %39 = vector.extract_strided_slice %13 {offsets = [192, 0], sizes = [32, 128], strides = [1, 1]} : vector<288x128xf32> to vector<32x128xf32>
    %c768 = arith.constant 768 : index
    %c0_23 = arith.constant 0 : index
    %40 = vector.load %arg5[%c768, %c0_23] : memref<1152x256xf32, #tpu.memory_space<vmem>>, vector<128x256xf32>
    %cst_24 = arith.constant dense<0.000000e+00> : vector<32x256xf32>
    %41 = tpu.matmul %39, %40, %cst_24 {dimension_numbers = #tpu.dot_dimension_numbers<[1], [0], [0], [1], [0, 0, 1, 1], [], []>} : vector<32x128xf32>, vector<128x256xf32>, vector<32x256xf32> -> vector<32x256xf32>
    %42 = arith.addf %38, %41 : vector<32x256xf32>
    %43 = vector.extract_strided_slice %13 {offsets = [224, 0], sizes = [32, 128], strides = [1, 1]} : vector<288x128xf32> to vector<32x128xf32>
    %c896 = arith.constant 896 : index
    %c0_25 = arith.constant 0 : index
    %44 = vector.load %arg5[%c896, %c0_25] : memref<1152x256xf32, #tpu.memory_space<vmem>>, vector<128x256xf32>
    %cst_26 = arith.constant dense<0.000000e+00> : vector<32x256xf32>
    %45 = tpu.matmul %43, %44, %cst_26 {dimension_numbers = #tpu.dot_dimension_numbers<[1], [0], [0], [1], [0, 0, 1, 1], [], []>} : vector<32x128xf32>, vector<128x256xf32>, vector<32x256xf32> -> vector<32x256xf32>
    %46 = arith.addf %42, %45 : vector<32x256xf32>
    %47 = vector.extract_strided_slice %13 {offsets = [256, 0], sizes = [32, 128], strides = [1, 1]} : vector<288x128xf32> to vector<32x128xf32>
    %c1024 = arith.constant 1024 : index
    %c0_27 = arith.constant 0 : index
    %48 = vector.load %arg5[%c1024, %c0_27] : memref<1152x256xf32, #tpu.memory_space<vmem>>, vector<128x256xf32>
    %cst_28 = arith.constant dense<0.000000e+00> : vector<32x256xf32>
    %49 = tpu.matmul %47, %48, %cst_28 {dimension_numbers = #tpu.dot_dimension_numbers<[1], [0], [0], [1], [0, 0, 1, 1], [], []>} : vector<32x128xf32>, vector<128x256xf32>, vector<32x256xf32> -> vector<32x256xf32>
    %50 = arith.addf %46, %49 : vector<32x256xf32>
    %c0_29 = arith.constant 0 : index
    %c0_30 = arith.constant 0 : index
    %51 = vector.load %arg6[%c0_29, %c0_30] : memref<2x256xf32, #tpu.memory_space<vmem>>, vector<2x256xf32>
    %52 = vector.extract_strided_slice %51 {offsets = [0, 0], sizes = [1, 256], strides = [1, 1]} : vector<2x256xf32> to vector<1x256xf32>
    %53 = vector.broadcast %52 : vector<1x256xf32> to vector<32x256xf32>
    %54 = arith.addf %50, %53 : vector<32x256xf32>
    %cst_31 = arith.constant 0.000000e+00 : f32
    %55 = vector.broadcast %cst_31 : f32 to vector<32x256xf32>
    %56 = arith.maximumf %54, %55 : vector<32x256xf32>
    %57 = vector.extract_strided_slice %51 {offsets = [1, 0], sizes = [1, 256], strides = [1, 1]} : vector<2x256xf32> to vector<1x256xf32>
    %58 = vector.broadcast %57 : vector<1x256xf32> to vector<32x256xf32>
    %59 = arith.addf %56, %58 : vector<32x256xf32>
    %cst_32 = arith.constant 0.000000e+00 : f32
    %60 = vector.broadcast %cst_32 : f32 to vector<8x64xf32>
    %61 = vector.extract_strided_slice %59 {offsets = [0, 0], sizes = [8, 256], strides = [1, 1]} : vector<32x256xf32> to vector<8x256xf32>
    %c0_33 = arith.constant 0 : index
    %c0_34 = arith.constant 0 : index
    %62 = vector.load %arg7[%c0_33, %c0_34] : memref<1024x64xf32, #tpu.memory_space<vmem>>, vector<256x64xf32>
    %cst_35 = arith.constant dense<0.000000e+00> : vector<8x64xf32>
    %63 = tpu.matmul %61, %62, %cst_35 {dimension_numbers = #tpu.dot_dimension_numbers<[1], [0], [0], [1], [0, 0, 1, 1], [], []>} : vector<8x256xf32>, vector<256x64xf32>, vector<8x64xf32> -> vector<8x64xf32>
    %64 = arith.addf %60, %63 : vector<8x64xf32>
    %65 = vector.extract_strided_slice %59 {offsets = [8, 0], sizes = [8, 256], strides = [1, 1]} : vector<32x256xf32> to vector<8x256xf32>
    %c256_36 = arith.constant 256 : index
    %c0_37 = arith.constant 0 : index
    %66 = vector.load %arg7[%c256_36, %c0_37] : memref<1024x64xf32, #tpu.memory_space<vmem>>, vector<256x64xf32>
    %cst_38 = arith.constant dense<0.000000e+00> : vector<8x64xf32>
    %67 = tpu.matmul %65, %66, %cst_38 {dimension_numbers = #tpu.dot_dimension_numbers<[1], [0], [0], [1], [0, 0, 1, 1], [], []>} : vector<8x256xf32>, vector<256x64xf32>, vector<8x64xf32> -> vector<8x64xf32>
    %68 = arith.addf %64, %67 : vector<8x64xf32>
    %69 = vector.extract_strided_slice %59 {offsets = [16, 0], sizes = [8, 256], strides = [1, 1]} : vector<32x256xf32> to vector<8x256xf32>
    %c512_39 = arith.constant 512 : index
    %c0_40 = arith.constant 0 : index
    %70 = vector.load %arg7[%c512_39, %c0_40] : memref<1024x64xf32, #tpu.memory_space<vmem>>, vector<256x64xf32>
    %cst_41 = arith.constant dense<0.000000e+00> : vector<8x64xf32>
    %71 = tpu.matmul %69, %70, %cst_41 {dimension_numbers = #tpu.dot_dimension_numbers<[1], [0], [0], [1], [0, 0, 1, 1], [], []>} : vector<8x256xf32>, vector<256x64xf32>, vector<8x64xf32> -> vector<8x64xf32>
    %72 = arith.addf %68, %71 : vector<8x64xf32>
    %73 = vector.extract_strided_slice %59 {offsets = [24, 0], sizes = [8, 256], strides = [1, 1]} : vector<32x256xf32> to vector<8x256xf32>
    %c768_42 = arith.constant 768 : index
    %c0_43 = arith.constant 0 : index
    %74 = vector.load %arg7[%c768_42, %c0_43] : memref<1024x64xf32, #tpu.memory_space<vmem>>, vector<256x64xf32>
    %cst_44 = arith.constant dense<0.000000e+00> : vector<8x64xf32>
    %75 = tpu.matmul %73, %74, %cst_44 {dimension_numbers = #tpu.dot_dimension_numbers<[1], [0], [0], [1], [0, 0, 1, 1], [], []>} : vector<8x256xf32>, vector<256x64xf32>, vector<8x64xf32> -> vector<8x64xf32>
    %76 = arith.addf %72, %75 : vector<8x64xf32>
    %c0_45 = arith.constant 0 : index
    %c0_46 = arith.constant 0 : index
    %77 = vector.load %arg8[%c0_45, %c0_46] : memref<2x64xf32, #tpu.memory_space<vmem>>, vector<2x64xf32>
    %78 = vector.extract_strided_slice %77 {offsets = [0, 0], sizes = [1, 64], strides = [1, 1]} : vector<2x64xf32> to vector<1x64xf32>
    %79 = vector.broadcast %78 : vector<1x64xf32> to vector<8x64xf32>
    %80 = arith.addf %76, %79 : vector<8x64xf32>
    %cst_47 = arith.constant 0.000000e+00 : f32
    %81 = vector.broadcast %cst_47 : f32 to vector<8x64xf32>
    %82 = arith.maximumf %80, %81 : vector<8x64xf32>
    %83 = vector.extract_strided_slice %77 {offsets = [1, 0], sizes = [1, 64], strides = [1, 1]} : vector<2x64xf32> to vector<1x64xf32>
    %84 = vector.broadcast %83 : vector<1x64xf32> to vector<8x64xf32>
    %85 = arith.addf %82, %84 : vector<8x64xf32>
    %c0_48 = arith.constant 0 : index
    %c0_49 = arith.constant 0 : index
    %86 = vector.load %arg10[%c0_48, %c0_49] : memref<2x64xf32, #tpu.memory_space<vmem>>, vector<2x64xf32>
    %c0_50 = arith.constant 0 : index
    %c0_51 = arith.constant 0 : index
    %87 = vector.load %arg9[%c0_50, %c0_51] : memref<64x64xf32, #tpu.memory_space<vmem>>, vector<64x64xf32>
    %cst_52 = arith.constant dense<0.000000e+00> : vector<8x64xf32>
    %88 = tpu.matmul %85, %87, %cst_52 {dimension_numbers = #tpu.dot_dimension_numbers<[1], [0], [0], [1], [0, 0, 1, 1], [], []>} : vector<8x64xf32>, vector<64x64xf32>, vector<8x64xf32> -> vector<8x64xf32>
    %89 = vector.extract_strided_slice %86 {offsets = [0, 0], sizes = [1, 64], strides = [1, 1]} : vector<2x64xf32> to vector<1x64xf32>
    %90 = vector.broadcast %89 : vector<1x64xf32> to vector<8x64xf32>
    %91 = arith.addf %88, %90 : vector<8x64xf32>
    %cst_53 = arith.constant 0.000000e+00 : f32
    %92 = vector.broadcast %cst_53 : f32 to vector<8x64xf32>
    %93 = arith.maximumf %91, %92 : vector<8x64xf32>
    %94 = vector.extract_strided_slice %86 {offsets = [1, 0], sizes = [1, 64], strides = [1, 1]} : vector<2x64xf32> to vector<1x64xf32>
    %95 = vector.broadcast %94 : vector<1x64xf32> to vector<8x64xf32>
    %96 = arith.addf %93, %95 : vector<8x64xf32>
    %c0_54 = arith.constant 0 : index
    %c0_55 = arith.constant 0 : index
    %97 = vector.load %arg11[%c0_54, %c0_55] : memref<64x10xf32, #tpu.memory_space<vmem>>, vector<64x10xf32>
    %cst_56 = arith.constant dense<0.000000e+00> : vector<8x10xf32>
    %98 = tpu.matmul %96, %97, %cst_56 {dimension_numbers = #tpu.dot_dimension_numbers<[1], [0], [0], [1], [0, 0, 1, 1], [], []>} : vector<8x64xf32>, vector<64x10xf32>, vector<8x10xf32> -> vector<8x10xf32>
    %c0_57 = arith.constant 0 : index
    %c0_58 = arith.constant 0 : index
    %99 = vector.load %arg12[%c0_57, %c0_58] : memref<1x10xf32, #tpu.memory_space<vmem>>, vector<1x10xf32>
    %100 = vector.broadcast %99 : vector<1x10xf32> to vector<8x10xf32>
    %101 = arith.addf %98, %100 : vector<8x10xf32>
    %cst_59 = arith.constant dense<0xFF800000> : vector<8xf32>
    %102 = vector.multi_reduction <maximumf>, %101, %cst_59 [1] : vector<8x10xf32> to vector<8xf32>
    %103 = vector.shape_cast %102 : vector<8xf32> to vector<8x1xf32>
    %104 = vector.broadcast %103 : vector<8x1xf32> to vector<8x10xf32>
    %105 = arith.subf %101, %104 : vector<8x10xf32>
    %106 = math.exp %105 : vector<8x10xf32>
    %cst_60 = arith.constant dense<0.000000e+00> : vector<8xf32>
    %107 = vector.multi_reduction <add>, %106, %cst_60 [1] : vector<8x10xf32> to vector<8xf32>
    %108 = vector.shape_cast %107 : vector<8xf32> to vector<8x1xf32>
    %109 = math.log %108 : vector<8x1xf32>
    %110 = vector.broadcast %109 : vector<8x1xf32> to vector<8x10xf32>
    %111 = arith.subf %105, %110 : vector<8x10xf32>
    %c0_61 = arith.constant 0 : index
    %c0_62 = arith.constant 0 : index
    %112 = vector.load %arg13[%c0_61, %c0_62] : memref<8x10xf32, #tpu.memory_space<vmem>>, vector<8x10xf32>
    tpu.vector_store %arg13[%c0_61, %c0_62], %111 {strides = array<i32>} : memref<8x10xf32, #tpu.memory_space<vmem>>, vector<8x10xf32>,
    return
  }
  func.func @transform_0(%arg0: i32) -> (i32, i32) {
    %c0_i32 = arith.constant 0 : i32
    %c0_i32_0 = arith.constant 0 : i32
    %c0_i32_1 = arith.constant 0 : i32
    return %c0_i32, %c0_i32_0 : i32, i32
  }
  func.func @transform_1(%arg0: i32) -> (i32, i32) {
    %c0_i32 = arith.constant 0 : i32
    %c0_i32_0 = arith.constant 0 : i32
    %c0_i32_1 = arith.constant 0 : i32
    return %c0_i32, %c0_i32_0 : i32, i32
  }
  func.func @transform_2(%arg0: i32) -> (i32, i32) {
    %c0_i32 = arith.constant 0 : i32
    %c0_i32_0 = arith.constant 0 : i32
    %c0_i32_1 = arith.constant 0 : i32
    return %c0_i32, %c0_i32_0 : i32, i32
  }
  func.func @transform_3(%arg0: i32) -> (i32, i32) {
    %c0_i32 = arith.constant 0 : i32
    %c0_i32_0 = arith.constant 0 : i32
    %c0_i32_1 = arith.constant 0 : i32
    return %c0_i32, %c0_i32_0 : i32, i32
  }
  func.func @transform_4(%arg0: i32) -> (i32, i32) {
    %c0_i32 = arith.constant 0 : i32
    %c0_i32_0 = arith.constant 0 : i32
    %c0_i32_1 = arith.constant 0 : i32
    return %c0_i32, %c0_i32_0 : i32, i32
  }
  func.func @transform_5(%arg0: i32) -> (i32, i32) {
    %c0_i32 = arith.constant 0 : i32
    %c0_i32_0 = arith.constant 0 : i32
    %c0_i32_1 = arith.constant 0 : i32
    return %c0_i32, %c0_i32_0 : i32, i32
  }
  func.func @transform_6(%arg0: i32) -> (i32, i32) {
    %c0_i32 = arith.constant 0 : i32
    %c0_i32_0 = arith.constant 0 : i32
    %c0_i32_1 = arith.constant 0 : i32
    return %c0_i32, %c0_i32_0 : i32, i32
  }
  func.func @transform_7(%arg0: i32) -> (i32, i32) {
    %c0_i32 = arith.constant 0 : i32
    %c0_i32_0 = arith.constant 0 : i32
    %c0_i32_1 = arith.constant 0 : i32
    return %c0_i32, %c0_i32_0 : i32, i32
  }
  func.func @transform_8(%arg0: i32) -> (i32, i32) {
    %c0_i32 = arith.constant 0 : i32
    %c0_i32_0 = arith.constant 0 : i32
    %c0_i32_1 = arith.constant 0 : i32
    return %c0_i32, %c0_i32_0 : i32, i32
  }
  func.func @transform_9(%arg0: i32) -> (i32, i32) {
    %c0_i32 = arith.constant 0 : i32
    %c0_i32_0 = arith.constant 0 : i32
    %c0_i32_1 = arith.constant 0 : i32
    return %c0_i32, %c0_i32_0 : i32, i32
  }
  func.func @transform_10(%arg0: i32) -> (i32, i32) {
    %c0_i32 = arith.constant 0 : i32
    %c0_i32_0 = arith.constant 0 : i32
    %c0_i32_1 = arith.constant 0 : i32
    return %c0_i32, %c0_i32_0 : i32, i32
  }
  func.func @transform_11(%arg0: i32) -> (i32, i32) {
    %c0_i32 = arith.constant 0 : i32
    %c0_i32_0 = arith.constant 0 : i32
    %c0_i32_1 = arith.constant 0 : i32
    return %c0_i32, %c0_i32_0 : i32, i32
  }
  func.func @transform_12(%arg0: i32) -> (i32, i32) {
    %c0_i32 = arith.constant 0 : i32
    %c0_i32_0 = arith.constant 0 : i32
    %c0_i32_1 = arith.constant 0 : i32
    return %c0_i32, %c0_i32_0 : i32, i32
  }
}

</mosaic_0001>

<bundles_post_ra>
// kernel: base_cnn_forward.4
= control target key start
LH: loop header
LB: loop body
LE: loop exit
PB: predicated region body
PF: predicated region fallthrough
CT: control target
= control target key end

     0   :  { %s2374_s12 = smov 0   ;;  %s3189_s0 = inlined_call_operand.vmem [shape: f32[2048,27], index: 0, kind: input, shape index: {}]   ;;  %s3190_s1 = inlined_call_operand.vmem [shape: f32[27,16], index: 1, kind: input, shape index: {}]   ;;  %s3191_s2 = inlined_call_operand.vmem [shape: f32[2,16], index: 2, kind: input, shape index: {}]   ;;  %s3192_s3 = inlined_call_operand.vmem [shape: f32[2048,16], index: 3, kind: output, shape index: {}]  }
   0x1 LB: > { %s1850_s13 = sadd.s32 4294967295, %s2351_s12   ;;  %p1854_p0 = scmp.ge.s32.totalorder %s2351_s12, 1  ;;  %s2351_s12 = sphi %s2374_s12, %s13_s12  }
   0x2   : > { %p138_p1 = scmp.lt.s32.totalorder %s2351_s12, 3 }
   0x4   : > { %p139_p2 = pnand %p1854_p0, %p138_p1 }
   0x5   : > { %v302_v0 = vld [vmem:[%s3190_s1] sm:$0xff] (!%p139_p2)  ;;  %v303_v1 = vld [vmem:[%s3190_s1 + $0x8] sm:$0xff] (!%p139_p2)  ;;  %v304_v2 = vld [vmem:[%s3190_s1 + $0x10] sm:$0xff] (!%p139_p2)  ;;  %vm696_vm0 = vcmask (!%p139_p2), 1042432   ;;  %s1855_s20 = sshll.u32 (!%p139_p2), %s1850_s13, 7  ;;  %vm2353_vm1 = vmmov (!%p139_p2), 1  }
   0x6   : > { %142 = sbr.rel (%p139_p2) target bundleno = 363 (0x16b), region = 32  ;;  %v2322_v3 = vpack.c.bf16 (!%p139_p2), %v303_v1, %v302_v0  ;;  %v305_v4 = vld [vmem:[%s3190_s1 + $0x18] sm:$0x7] (!%p139_p2)  ;;  %p163_p3 = scmp.lt.s32.totalorder (!%p139_p2), %s1855_s20, 255  ;;  %vm2327_vm2 = vmpackc.low (!%p139_p2), %vm696_vm0, %vm2353_vm1  ;;  %vm311_vm3 = vcmask (!%p139_p2), 220160   ;;  %vm1665_vm4 = vcmask (!%p139_p2), 130048  }
   0x7   : > { %v2326_v5 = vpack.c.bf16 (!%p139_p2), %v305_v4, %v304_v2 }
   0x8   : > { %2323 = vmatprep.subr.bf16.mxu0 (!%p139_p2), %v2322_v3  ;;  %2332 = vmatprep.subr.bf16.mxu1 (!%p139_p2), %v2322_v3 }
   0x9   : > { %2325 = vmatpush3.bf16.msra.mxu0 (!%p139_p2), %v2322_v3  ;;  %2334 = vmatpush3.bf16.msra.mxu1 (!%p139_p2), %v2322_v3 }
   0xa   : > { %2328 = vmatprep.subr.msk.bf16.mxu0 (!%p139_p2), %vm2327_vm2, %v2326_v5  ;;  %2333 = vmatprep.subr.msk.bf16.mxu1 (!%p139_p2), %vm2327_vm2, %v2326_v5 }
   0xd   : > { %s3194_s20 = smov (!%p163_p3, %s1855_s20), 255  ;;  %2331 = vmatpush3.bf16.msk.msra.mxu0 %vm2327_vm2, %v2326_v5  ;;  %2335 = vmatpush3.bf16.msk.msra.mxu1 %vm2327_vm2, %v2326_v5 }
   0xe   : > { %s1856_s23 = sshll.u32 %s3194_s20, 3 }
   0xf   : > { %s2402_s26 = scalar_lea.vmem %s3189_s0, %s1856_s23  ;;  %s2676_s4 = scalar_lea.vmem %s3192_s3, %s1856_s23 }
  0x10   : > { %v174_v6 = vld [vmem:[%s2402_s26] sm:$0xff]  ;;  %v175_v8 = vld [vmem:[%s2402_s26 + $0x8] sm:$0xff]  ;;  %v176_v10 = vld [vmem:[%s2402_s26 + $0x10] sm:$0xff] }
  0x11   : > { %v238_v7 = vld [vmem:[%s2402_s26 + $0x200] sm:$0xff]  ;;  %v239_v9 = vld [vmem:[%s2402_s26 + $0x208] sm:$0xff]  ;;  %2130 = vmatprep.mubr.msk.f32.mxu0 %vm311_vm3, %v174_v6  ;;  %v240_v11 = vld [vmem:[%s2402_s26 + $0x210] sm:$0xff] }
  0x12   : > { %2226 = vmatprep.mubr.msk.f32.mxu1 %vm311_vm3, %v238_v7  ;;  %2131 = vmatmul.mubr.msk.f32.vlgmr.msra.gmra.mrb[0].mxu0 %vm311_vm3, %v175_v8  ;;  %v177_v12 = vld [vmem:[%s2402_s26 + $0x18] sm:$0xff]  ;;  %v178_v14 = vld [vmem:[%s2402_s26 + $0x20] sm:$0xff]  ;;  %v179_v16 = vld [vmem:[%s2402_s26 + $0x28] sm:$0xff] }
  0x13   : > { %2227 = vmatmul.mubr.msk.f32.vlgmr.msra.gmra.mrb[0].mxu1 %vm311_vm3, %v239_v9  ;;  %2133 = vmatprep.mubr.msk.f32.mxu0 %vm311_vm3, %v176_v10  ;;  %v241_v13 = vld [vmem:[%s2402_s26 + $0x218] sm:$0xff]  ;;  %v242_v15 = vld [vmem:[%s2402_s26 + $0x220] sm:$0xff]  ;;  %v243_v17 = vld [vmem:[%s2402_s26 + $0x228] sm:$0xff] }
  0x14   : > { %2229 = vmatprep.mubr.msk.f32.mxu1 %vm311_vm3, %v240_v11  ;;  %v180_v18 = vld [vmem:[%s2402_s26 + $0x30] sm:$0xff]  ;;  %v181_v20 = vld [vmem:[%s2402_s26 + $0x38] sm:$0xff]  ;;  %v182_v22 = vld [vmem:[%s2402_s26 + $0x40] sm:$0xff] }
  0x15   : > { %v244_v19 = vld [vmem:[%s2402_s26 + $0x230] sm:$0xff]  ;;  %v245_v21 = vld [vmem:[%s2402_s26 + $0x238] sm:$0xff]  ;;  %v246_v23 = vld [vmem:[%s2402_s26 + $0x240] sm:$0xff] }
  0x16   : > { %2134 = vmatmul.mubr.msk.f32.gmra.mrb[2].mxu0 %vm311_vm3, %v177_v12  ;;  %v183_v24 = vld [vmem:[%s2402_s26 + $0x48] sm:$0xff]  ;;  %v184_v26 = vld [vmem:[%s2402_s26 + $0x50] sm:$0xff]  ;;  %v185_v28 = vld [vmem:[%s2402_s26 + $0x58] sm:$0xff] }
  0x17   : > { %2230 = vmatmul.mubr.msk.f32.gmra.mrb[2].mxu1 %vm311_vm3, %v241_v13  ;;  %2136 = vmatprep.mubr.msk.f32.mxu0 %vm311_vm3, %v178_v14  ;;  %v247_v25 = vld [vmem:[%s2402_s26 + $0x248] sm:$0xff]  ;;  %v248_v27 = vld [vmem:[%s2402_s26 + $0x250] sm:$0xff]  ;;  %v249_v29 = vld [vmem:[%s2402_s26 + $0x258] sm:$0xff] }
  0x18   : > { %2232 = vmatprep.mubr.msk.f32.mxu1 %vm311_vm3, %v242_v15  ;;  %v186_v30 = vld [vmem:[%s2402_s26 + $0x60] sm:$0xff]  ;;  %v187_v32 = vld [vmem:[%s2402_s26 + $0x68] sm:$0xff]  ;;  %v188_v34 = vld [vmem:[%s2402_s26 + $0x70] sm:$0xff] }
  0x19   : > { %v250_v31 = vld [vmem:[%s2402_s26 + $0x260] sm:$0xff]  ;;  %v251_v33 = vld [vmem:[%s2402_s26 + $0x268] sm:$0xff]  ;;  %v252_v35 = vld [vmem:[%s2402_s26 + $0x270] sm:$0xff] }
  0x1a   : > { %2137 = vmatmul.mubr.msk.f32.gmra.mrb[4].mxu0 %vm311_vm3, %v179_v16  ;;  %v189_v36 = vld [vmem:[%s2402_s26 + $0x78] sm:$0xff]  ;;  %v190_v38 = vld [vmem:[%s2402_s26 + $0x80] sm:$0xff]  ;;  %v191_v40 = vld [vmem:[%s2402_s26 + $0x88] sm:$0xff] }
  0x1b   : > { %2233 = vmatmul.mubr.msk.f32.gmra.mrb[4].mxu1 %vm311_vm3, %v243_v17  ;;  %2139 = vmatprep.mubr.msk.f32.mxu0 %vm311_vm3, %v180_v18  ;;  %v253_v37 = vld [vmem:[%s2402_s26 + $0x278] sm:$0xff]  ;;  %v254_v39 = vld [vmem:[%s2402_s26 + $0x280] sm:$0xff]  ;;  %v255_v41 = vld [vmem:[%s2402_s26 + $0x288] sm:$0xff] }
  0x1c   : > { %2235 = vmatprep.mubr.msk.f32.mxu1 %vm311_vm3, %v244_v19  ;;  %v192_v42 = vld [vmem:[%s2402_s26 + $0x90] sm:$0xff]  ;;  %v193_v44 = vld [vmem:[%s2402_s26 + $0x98] sm:$0xff]  ;;  %v194_v46 = vld [vmem:[%s2402_s26 + $0xa0] sm:$0xff] }
  0x1d   : > { %v256_v43 = vld [vmem:[%s2402_s26 + $0x290] sm:$0xff]  ;;  %v257_v45 = vld [vmem:[%s2402_s26 + $0x298] sm:$0xff]  ;;  %v258_v47 = vld [vmem:[%s2402_s26 + $0x2a0] sm:$0xff] }
  0x1e   : > { %2140 = vmatmul.mubr.msk.f32.gmra.mrb[6].mxu0 %vm311_vm3, %v181_v20  ;;  %v195_v48 = vld [vmem:[%s2402_s26 + $0xa8] sm:$0xff]  ;;  %v196_v50 = vld [vmem:[%s2402_s26 + $0xb0] sm:$0xff]  ;;  %v197_v52 = vld [vmem:[%s2402_s26 + $0xb8] sm:$0xff] }
  0x1f   : > { %2236 = vmatmul.mubr.msk.f32.gmra.mrb[6].mxu1 %vm311_vm3, %v245_v21  ;;  %2142 = vmatprep.mubr.msk.f32.mxu0 %vm311_vm3, %v182_v22  ;;  %v259_v49 = vld [vmem:[%s2402_s26 + $0x2a8] sm:$0xff]  ;;  %v260_v51 = vld [vmem:[%s2402_s26 + $0x2b0] sm:$0xff]  ;;  %v261_v53 = vld [vmem:[%s2402_s26 + $0x2b8] sm:$0xff] }
  0x20   : > { %2238 = vmatprep.mubr.msk.f32.mxu1 %vm311_vm3, %v246_v23  ;;  %v198_v54 = vld [vmem:[%s2402_s26 + $0xc0] sm:$0xff]  ;;  %v199_v56 = vld [vmem:[%s2402_s26 + $0xc8] sm:$0xff]  ;;  %v200_v58 = vld [vmem:[%s2402_s26 + $0xd0] sm:$0xff] }
  0x21   : > { %v262_v55 = vld [vmem:[%s2402_s26 + $0x2c0] sm:$0xff]  ;;  %v263_v57 = vld [vmem:[%s2402_s26 + $0x2c8] sm:$0xff]  ;;  %v264_v59 = vld [vmem:[%s2402_s26 + $0x2d0] sm:$0xff] }
  0x22   : > { %2143 = vmatmul.mubr.msk.f32.gmra.mrb[8].mxu0 %vm311_vm3, %v183_v24  ;;  %v201_v60 = vld [vmem:[%s2402_s26 + $0xd8] sm:$0xff]  ;;  %v202_v62 = vld [vmem:[%s2402_s26 + $0xe0] sm:$0xff]  ;;  %v203_v0 = vld [vmem:[%s2402_s26 + $0xe8] sm:$0xff] }
  0x23   : > { %2239 = vmatmul.mubr.msk.f32.gmra.mrb[8].mxu1 %vm311_vm3, %v247_v25  ;;  %2145 = vmatprep.mubr.msk.f32.mxu0 %vm311_vm3, %v184_v26  ;;  %v265_v61 = vld [vmem:[%s2402_s26 + $0x2d8] sm:$0xff]  ;;  %v266_v63 = vld [vmem:[%s2402_s26 + $0x2e0] sm:$0xff]  ;;  %v267_v1 = vld [vmem:[%s2402_s26 + $0x2e8] sm:$0xff] }
  0x24   : > { %2241 = vmatprep.mubr.msk.f32.mxu1 %vm311_vm3, %v248_v27  ;;  %v204_v2 = vld [vmem:[%s2402_s26 + $0xf0] sm:$0xff]  ;;  %v205_v4 = vld [vmem:[%s2402_s26 + $0xf8] sm:$0xff]  ;;  %v206_v6 = vld [vmem:[%s2402_s26 + $0x100] sm:$0xff] }
  0x25   : > { %v268_v3 = vld [vmem:[%s2402_s26 + $0x2f0] sm:$0xff]  ;;  %v269_v5 = vld [vmem:[%s2402_s26 + $0x2f8] sm:$0xff]  ;;  %v270_v7 = vld [vmem:[%s2402_s26 + $0x300] sm:$0xff] }
  0x26   : > { %2146 = vmatmul.mubr.msk.f32.gmra.mrb[10].mxu0 %vm311_vm3, %v185_v28  ;;  %v207_v8 = vld [vmem:[%s2402_s26 + $0x108] sm:$0xff]  ;;  %v208_v10 = vld [vmem:[%s2402_s26 + $0x110] sm:$0xff]  ;;  %v209_v12 = vld [vmem:[%s2402_s26 + $0x118] sm:$0xff] }
  0x27   : > { %2242 = vmatmul.mubr.msk.f32.gmra.mrb[10].mxu1 %vm311_vm3, %v249_v29  ;;  %2148 = vmatprep.mubr.msk.f32.mxu0 %vm311_vm3, %v186_v30  ;;  %v271_v9 = vld [vmem:[%s2402_s26 + $0x308] sm:$0xff]  ;;  %v272_v11 = vld [vmem:[%s2402_s26 + $0x310] sm:$0xff]  ;;  %v273_v13 = vld [vmem:[%s2402_s26 + $0x318] sm:$0xff] }
  0x28   : > { %2244 = vmatprep.mubr.msk.f32.mxu1 %vm311_vm3, %v250_v31  ;;  %v210_v14 = vld [vmem:[%s2402_s26 + $0x120] sm:$0xff]  ;;  %v211_v16 = vld [vmem:[%s2402_s26 + $0x128] sm:$0xff]  ;;  %v212_v18 = vld [vmem:[%s2402_s26 + $0x130] sm:$0xff] }
  0x29   : > { %v274_v15 = vld [vmem:[%s2402_s26 + $0x320] sm:$0xff]  ;;  %v275_v17 = vld [vmem:[%s2402_s26 + $0x328] sm:$0xff]  ;;  %v276_v19 = vld [vmem:[%s2402_s26 + $0x330] sm:$0xff] }
  0x2a   : > { %2149 = vmatmul.mubr.msk.f32.gmra.mrb[12].mxu0 %vm311_vm3, %v187_v32  ;;  %v213_v20 = vld [vmem:[%s2402_s26 + $0x138] sm:$0xff]  ;;  %v214_v22 = vld [vmem:[%s2402_s26 + $0x140] sm:$0xff]  ;;  %v215_v24 = vld [vmem:[%s2402_s26 + $0x148] sm:$0xff] }
  0x2b   : > { %2245 = vmatmul.mubr.msk.f32.gmra.mrb[12].mxu1 %vm311_vm3, %v251_v33  ;;  %2151 = vmatprep.mubr.msk.f32.mxu0 %vm311_vm3, %v188_v34  ;;  %v277_v21 = vld [vmem:[%s2402_s26 + $0x338] sm:$0xff]  ;;  %v278_v23 = vld [vmem:[%s2402_s26 + $0x340] sm:$0xff]  ;;  %v279_v25 = vld [vmem:[%s2402_s26 + $0x348] sm:$0xff] }
  0x2c   : > { %2247 = vmatprep.mubr.msk.f32.mxu1 %vm311_vm3, %v252_v35  ;;  %v216_v26 = vld [vmem:[%s2402_s26 + $0x150] sm:$0xff]  ;;  %v217_v28 = vld [vmem:[%s2402_s26 + $0x158] sm:$0xff]  ;;  %v218_v30 = vld [vmem:[%s2402_s26 + $0x160] sm:$0xff] }
  0x2d   : > { %v280_v27 = vld [vmem:[%s2402_s26 + $0x350] sm:$0xff]  ;;  %v281_v29 = vld [vmem:[%s2402_s26 + $0x358] sm:$0xff]  ;;  %v282_v31 = vld [vmem:[%s2402_s26 + $0x360] sm:$0xff] }
  0x2e   : > { %2152 = vmatmul.mubr.msk.f32.gmra.mrb[14].mxu0 %vm311_vm3, %v189_v36  ;;  %v219_v32 = vld [vmem:[%s2402_s26 + $0x168] sm:$0xff]  ;;  %v220_v34 = vld [vmem:[%s2402_s26 + $0x170] sm:$0xff]  ;;  %v221_v36 = vld [vmem:[%s2402_s26 + $0x178] sm:$0xff] }
  0x2f   : > { %2248 = vmatmul.mubr.msk.f32.gmra.mrb[14].mxu1 %vm311_vm3, %v253_v37  ;;  %2154 = vmatprep.mubr.msk.f32.mxu0 %vm311_vm3, %v190_v38  ;;  %v283_v33 = vld [vmem:[%s2402_s26 + $0x368] sm:$0xff]  ;;  %v284_v35 = vld [vmem:[%s2402_s26 + $0x370] sm:$0xff]  ;;  %v285_v37 = vld [vmem:[%s2402_s26 + $0x378] sm:$0xff] }
  0x30   : > { %2250 = vmatprep.mubr.msk.f32.mxu1 %vm311_vm3, %v254_v39  ;;  %v222_v38 = vld [vmem:[%s2402_s26 + $0x180] sm:$0xff] }
  0x31   : > { %v286_v39 = vld [vmem:[%s2402_s26 + $0x380] sm:$0xff] }
  0x32   : > { %2155 = vmatmul.mubr.msk.f32.gmra.mrb[16].mxu0 %vm311_vm3, %v191_v40  ;;  %v223_v40 = vld [vmem:[%s2402_s26 + $0x188] sm:$0xff] }
  0x33   : > { %2251 = vmatmul.mubr.msk.f32.gmra.mrb[16].mxu1 %vm311_vm3, %v255_v41  ;;  %2157 = vmatprep.mubr.msk.f32.mxu0 %vm311_vm3, %v192_v42  ;;  %v287_v41 = vld [vmem:[%s2402_s26 + $0x388] sm:$0xff]  ;;  %v224_v42 = vld [vmem:[%s2402_s26 + $0x190] sm:$0xff] }
  0x34   : > { %2253 = vmatprep.mubr.msk.f32.mxu1 %vm311_vm3, %v256_v43  ;;  %v288_v43 = vld [vmem:[%s2402_s26 + $0x390] sm:$0xff] }
  0x36   : > { %2158 = vmatmul.mubr.msk.f32.gmra.mrb[18].mxu0 %vm311_vm3, %v193_v44  ;;  %v225_v44 = vld [vmem:[%s2402_s26 + $0x198] sm:$0xff] }
  0x37   : > { %2254 = vmatmul.mubr.msk.f32.gmra.mrb[18].mxu1 %vm311_vm3, %v257_v45  ;;  %2160 = vmatprep.mubr.msk.f32.mxu0 %vm311_vm3, %v194_v46  ;;  %v289_v45 = vld [vmem:[%s2402_s26 + $0x398] sm:$0xff]  ;;  %v226_v46 = vld [vmem:[%s2402_s26 + $0x1a0] sm:$0xff] }
  0x38   : > { %2256 = vmatprep.mubr.msk.f32.mxu1 %vm311_vm3, %v258_v47  ;;  %v290_v47 = vld [vmem:[%s2402_s26 + $0x3a0] sm:$0xff] }
  0x3a   : > { %2161 = vmatmul.mubr.msk.f32.gmra.mrb[20].mxu0 %vm311_vm3, %v195_v48  ;;  %v227_v48 = vld [vmem:[%s2402_s26 + $0x1a8] sm:$0xff] }
  0x3b   : > { %2257 = vmatmul.mubr.msk.f32.gmra.mrb[20].mxu1 %vm311_vm3, %v259_v49  ;;  %2163 = vmatprep.mubr.msk.f32.mxu0 %vm311_vm3, %v196_v50  ;;  %v291_v49 = vld [vmem:[%s2402_s26 + $0x3a8] sm:$0xff]  ;;  %v228_v50 = vld [vmem:[%s2402_s26 + $0x1b0] sm:$0xff] }
  0x3c   : > { %2259 = vmatprep.mubr.msk.f32.mxu1 %vm311_vm3, %v260_v51  ;;  %v292_v51 = vld [vmem:[%s2402_s26 + $0x3b0] sm:$0xff] }
  0x3e   : > { %2164 = vmatmul.mubr.msk.f32.gmra.mrb[22].mxu0 %vm311_vm3, %v197_v52  ;;  %v229_v52 = vld [vmem:[%s2402_s26 + $0x1b8] sm:$0xff] }
  0x3f   : > { %2260 = vmatmul.mubr.msk.f32.gmra.mrb[22].mxu1 %vm311_vm3, %v261_v53  ;;  %2166 = vmatprep.mubr.msk.f32.mxu0 %vm311_vm3, %v198_v54  ;;  %v293_v53 = vld [vmem:[%s2402_s26 + $0x3b8] sm:$0xff]  ;;  %v230_v54 = vld [vmem:[%s2402_s26 + $0x1c0] sm:$0xff] }
  0x40   : > { %2262 = vmatprep.mubr.msk.f32.mxu1 %vm311_vm3, %v262_v55  ;;  %v294_v55 = vld [vmem:[%s2402_s26 + $0x3c0] sm:$0xff] }
  0x42   : > { %2167 = vmatmul.mubr.msk.f32.gmra.mrb[24].mxu0 %vm311_vm3, %v199_v56  ;;  %v231_v56 = vld [vmem:[%s2402_s26 + $0x1c8] sm:$0xff] }
  0x43   : > { %2263 = vmatmul.mubr.msk.f32.gmra.mrb[24].mxu1 %vm311_vm3, %v263_v57  ;;  %2169 = vmatprep.mubr.msk.f32.mxu0 %vm311_vm3, %v200_v58  ;;  %v295_v57 = vld [vmem:[%s2402_s26 + $0x3c8] sm:$0xff]  ;;  %v232_v58 = vld [vmem:[%s2402_s26 + $0x1d0] sm:$0xff] }
  0x44   : > { %2265 = vmatprep.mubr.msk.f32.mxu1 %vm311_vm3, %v264_v59  ;;  %v296_v59 = vld [vmem:[%s2402_s26 + $0x3d0] sm:$0xff] }
  0x46   : > { %2170 = vmatmul.mubr.msk.f32.gmra.mrb[26].mxu0 %vm311_vm3, %v201_v60  ;;  %v233_v60 = vld [vmem:[%s2402_s26 + $0x1d8] sm:$0xff] }
  0x47   : > { %2266 = vmatmul.mubr.msk.f32.gmra.mrb[26].mxu1 %vm311_vm3, %v265_v61  ;;  %2172 = vmatprep.mubr.msk.f32.mxu0 %vm311_vm3, %v202_v62  ;;  %v297_v61 = vld [vmem:[%s2402_s26 + $0x3d8] sm:$0xff]  ;;  %v234_v62 = vld [vmem:[%s2402_s26 + $0x1e0] sm:$0xff] }
  0x48   : > { %2268 = vmatprep.mubr.msk.f32.mxu1 %vm311_vm3, %v266_v63  ;;  %v298_v63 = vld [vmem:[%s2402_s26 + $0x3e0] sm:$0xff] }
  0x4a   : > { %2173 = vmatmul.mubr.msk.f32.gmra.mrb[28].mxu0 %vm311_vm3, %v203_v0  ;;  %v235_v0 = vld [vmem:[%s2402_s26 + $0x1e8] sm:$0xff] }
  0x4b   : > { %2269 = vmatmul.mubr.msk.f32.gmra.mrb[28].mxu1 %vm311_vm3, %v267_v1  ;;  %2175 = vmatprep.mubr.msk.f32.mxu0 %vm311_vm3, %v204_v2  ;;  %v299_v1 = vld [vmem:[%s2402_s26 + $0x3e8] sm:$0xff]  ;;  %v236_v2 = vld [vmem:[%s2402_s26 + $0x1f0] sm:$0xff] }
  0x4c   : > { %2271 = vmatprep.mubr.msk.f32.mxu1 %vm311_vm3, %v268_v3  ;;  %v300_v3 = vld [vmem:[%s2402_s26 + $0x3f0] sm:$0xff] }
  0x4e   : > { %2176 = vmatmul.mubr.msk.f32.gmra.mrb[30].mxu0 %vm311_vm3, %v205_v4  ;;  %v237_v4 = vld [vmem:[%s2402_s26 + $0x1f8] sm:$0xff] }
  0x4f   : > { %2272 = vmatmul.mubr.msk.f32.gmra.mrb[30].mxu1 %vm311_vm3, %v269_v5  ;;  %2178 = vmatprep.mubr.msk.f32.mxu0 %vm311_vm3, %v206_v6  ;;  %v301_v5 = vld [vmem:[%s2402_s26 + $0x3f8] sm:$0xff]  ;;  %v307_v6 = vlaneseq }
  0x50   : > { %2274 = vmatprep.mubr.msk.f32.mxu1 %vm311_vm3, %v270_v7 }
  0x51   : > { %v308_v7 = vshrl.u32 %v307_v6, 7 }
  0x52   : > { %2179 = vmatmul.mubr.msk.f32.gmra.mrb[32].mxu0 %vm311_vm3, %v207_v8 }
  0x53   : > { %2275 = vmatmul.mubr.msk.f32.gmra.mrb[32].mxu1 %vm311_vm3, %v271_v9  ;;  %2181 = vmatprep.mubr.msk.f32.mxu0 %vm311_vm3, %v208_v10  ;;  %v309_v8 = vsub.s32 0, %v308_v7  ;;  %v306_v9 = vld [vmem:[%s3191_s2] sm:$0x3] }
  0x54   : > { %2277 = vmatprep.mubr.msk.f32.mxu1 %vm311_vm3, %v272_v11  ;;  %v1535_v11 = vsub.s32 1, %v308_v7 }
  0x55   : > { %v2663_v10 = vrot.slane %v306_v9, %v309_v8 }
  0x56   : > { %2182 = vmatmul.mubr.msk.f32.gmra.mrb[34].mxu0 %vm311_vm3, %v209_v12 }
  0x57   : > { %2278 = vmatmul.mubr.msk.f32.gmra.mrb[34].mxu1 %vm311_vm3, %v273_v13  ;;  %2184 = vmatprep.mubr.msk.f32.mxu0 %vm311_vm3, %v210_v14 }
  0x58   : > { %2280 = vmatprep.mubr.msk.f32.mxu1 %vm311_vm3, %v274_v15  ;;  %v2666_v15 = vrot.slane %v306_v9, %v1535_v11 }
  0x5a   : > { %2185 = vmatmul.mubr.msk.f32.gmra.mrb[36].mxu0 %vm311_vm3, %v211_v16 }
  0x5b   : > { %2281 = vmatmul.mubr.msk.f32.gmra.mrb[36].mxu1 %vm311_vm3, %v275_v17  ;;  %2187 = vmatprep.mubr.msk.f32.mxu0 %vm311_vm3, %v212_v18 }
  0x5c   : > { %2283 = vmatprep.mubr.msk.f32.mxu1 %vm311_vm3, %v276_v19 }
  0x5e   : > { %2188 = vmatmul.mubr.msk.f32.gmra.mrb[38].mxu0 %vm311_vm3, %v213_v20 }
  0x5f   : > { %2284 = vmatmul.mubr.msk.f32.gmra.mrb[38].mxu1 %vm311_vm3, %v277_v21  ;;  %2190 = vmatprep.mubr.msk.f32.mxu0 %vm311_vm3, %v214_v22 }
  0x60   : > { %2286 = vmatprep.mubr.msk.f32.mxu1 %vm311_vm3, %v278_v23 }
  0x62   : > { %2191 = vmatmul.mubr.msk.f32.gmra.mrb[40].mxu0 %vm311_vm3, %v215_v24 }
  0x63   : > { %2287 = vmatmul.mubr.msk.f32.gmra.mrb[40].mxu1 %vm311_vm3, %v279_v25  ;;  %2193 = vmatprep.mubr.msk.f32.mxu0 %vm311_vm3, %v216_v26 }
  0x64   : > { %2289 = vmatprep.mubr.msk.f32.mxu1 %vm311_vm3, %v280_v27 }
  0x66   : > { %2194 = vmatmul.mubr.msk.f32.gmra.mrb[42].mxu0 %vm311_vm3, %v217_v28 }
  0x67   : > { %2290 = vmatmul.mubr.msk.f32.gmra.mrb[42].mxu1 %vm311_vm3, %v281_v29  ;;  %2196 = vmatprep.mubr.msk.f32.mxu0 %vm311_vm3, %v218_v30 }
  0x68   : > { %2292 = vmatprep.mubr.msk.f32.mxu1 %vm311_vm3, %v282_v31 }
  0x6a   : > { %2197 = vmatmul.mubr.msk.f32.gmra.mrb[44].mxu0 %vm311_vm3, %v219_v32 }
  0x6b   : > { %2293 = vmatmul.mubr.msk.f32.gmra.mrb[44].mxu1 %vm311_vm3, %v283_v33  ;;  %2199 = vmatprep.mubr.msk.f32.mxu0 %vm311_vm3, %v220_v34 }
  0x6c   : > { %2295 = vmatprep.mubr.msk.f32.mxu1 %vm311_vm3, %v284_v35 }
  0x6e   : > { %2200 = vmatmul.mubr.msk.f32.gmra.mrb[46].mxu0 %vm311_vm3, %v221_v36 }
  0x6f   : > { %2296 = vmatmul.mubr.msk.f32.gmra.mrb[46].mxu1 %vm311_vm3, %v285_v37  ;;  %2202 = vmatprep.mubr.msk.f32.mxu0 %vm311_vm3, %v222_v38 }
  0x70   : > { %2298 = vmatprep.mubr.msk.f32.mxu1 %vm311_vm3, %v286_v39 }
  0x72   : > { %2203 = vmatmul.mubr.msk.f32.gmra.mrb[48].mxu0 %vm311_vm3, %v223_v40 }
  0x73   : > { %2299 = vmatmul.mubr.msk.f32.gmra.mrb[48].mxu1 %vm311_vm3, %v287_v41  ;;  %2205 = vmatprep.mubr.msk.f32.mxu0 %vm311_vm3, %v224_v42 }
  0x74   : > { %2301 = vmatprep.mubr.msk.f32.mxu1 %vm311_vm3, %v288_v43 }
  0x76   : > { %2206 = vmatmul.mubr.msk.f32.gmra.mrb[50].mxu0 %vm311_vm3, %v225_v44 }
  0x77   : > { %2302 = vmatmul.mubr.msk.f32.gmra.mrb[50].mxu1 %vm311_vm3, %v289_v45  ;;  %2208 = vmatprep.mubr.msk.f32.mxu0 %vm311_vm3, %v226_v46 }
  0x78   : > { %2304 = vmatprep.mubr.msk.f32.mxu1 %vm311_vm3, %v290_v47 }
  0x7a   : > { %2209 = vmatmul.mubr.msk.f32.gmra.mrb[52].mxu0 %vm311_vm3, %v227_v48 }
  0x7b   : > { %2305 = vmatmul.mubr.msk.f32.gmra.mrb[52].mxu1 %vm311_vm3, %v291_v49  ;;  %2211 = vmatprep.mubr.msk.f32.mxu0 %vm311_vm3, %v228_v50 }
  0x7c   : > { %2307 = vmatprep.mubr.msk.f32.mxu1 %vm311_vm3, %v292_v51 }
  0x7e   : > { %2212 = vmatmul.mubr.msk.f32.gmra.mrb[54].mxu0 %vm311_vm3, %v229_v52 }
  0x7f   : > { %2308 = vmatmul.mubr.msk.f32.gmra.mrb[54].mxu1 %vm311_vm3, %v293_v53  ;;  %2214 = vmatprep.mubr.msk.f32.mxu0 %vm311_vm3, %v230_v54 }
  0x80   : > { %2310 = vmatprep.mubr.msk.f32.mxu1 %vm311_vm3, %v294_v55 }
  0x82   : > { %2215 = vmatmul.mubr.msk.f32.gmra.mrb[56].mxu0 %vm311_vm3, %v231_v56 }
  0x83   : > { %2311 = vmatmul.mubr.msk.f32.gmra.mrb[56].mxu1 %vm311_vm3, %v295_v57  ;;  %2217 = vmatprep.mubr.msk.f32.mxu0 %vm311_vm3, %v232_v58 }
  0x84   : > { %2313 = vmatprep.mubr.msk.f32.mxu1 %vm311_vm3, %v296_v59 }
  0x86   : > { %2218 = vmatmul.mubr.msk.f32.gmra.mrb[58].mxu0 %vm311_vm3, %v233_v60 }
  0x87   : > { %2314 = vmatmul.mubr.msk.f32.gmra.mrb[58].mxu1 %vm311_vm3, %v297_v61  ;;  %2220 = vmatprep.mubr.msk.f32.mxu0 %vm311_vm3, %v234_v62 }
  0x88   : > { %2316 = vmatprep.mubr.msk.f32.mxu1 %vm311_vm3, %v298_v63 }
  0x8a   : > { %2221 = vmatmul.mubr.msk.f32.gmra.mrb[60].mxu0 %vm311_vm3, %v235_v0 }
  0x8b   : > { %2317 = vmatmul.mubr.msk.f32.gmra.mrb[60].mxu1 %vm311_vm3, %v299_v1  ;;  %2223 = vmatprep.mubr.msk.f32.mxu0 %vm311_vm3, %v236_v2 }
  0x8c   : > { %2319 = vmatprep.mubr.msk.f32.mxu1 %vm311_vm3, %v300_v3 }
  0x8e   : > { %2224 = vmatmul.mubr.msk.f32.gmra.mrb[62].mxu0 %vm311_vm3, %v237_v4 }
  0x8f   : > { %2320 = vmatmul.mubr.msk.f32.gmra.mrb[62].mxu1 %vm311_vm3, %v301_v5 }
  0xe5   : > { %v2132_v12 = vpop.f32.mrb[0].mxu0 }
  0xe6   : > { %v2228_v13 = vpop.f32.mrb[0].mxu1  ;;  %v772_v14 = vadd.f32 %v2132_v12, %v2663_v10  ;;  %v766_v17 = vpop.f32.mrb[1].mxu0 }
  0xe7   : > { %v1092_v16 = vadd.f32 %v2228_v13, %v2663_v10  ;;  %v1086_v18 = vpop.f32.mrb[1].mxu1  ;;  %v767_v19 = vadd.f32 %v766_v17, %v2663_v10 }
  0xe8   : > { %v1087_v20 = vadd.f32 %v1086_v18, %v2663_v10  ;;  %v1406_v21 = vmax.f32 %v772_v14, 0.0 }
  0xe9   : > { %v1470_v22 = vmax.f32 %v1092_v16, 0.0  ;;  %v1405_v23 = vmax.f32 %v767_v19, 0.0  ;;  %v2135_v25 = vpop.f32.mrb[2].mxu0 }
  0xea   : > { %v1469_v24 = vmax.f32 %v1087_v20, 0.0  ;;  %v2231_v26 = vpop.f32.mrb[2].mxu1  ;;  %v1538_v27 = vadd.f32 %v2666_v15, %v1406_v21  ;;  %v782_v29 = vadd.f32 %v2135_v25, %v2663_v10  ;;  %v776_v31 = vpop.f32.mrb[3].mxu0 }
  0xeb   : > { %v1602_v28 = vadd.f32 %v2666_v15, %v1470_v22  ;;  %v1102_v30 = vadd.f32 %v2231_v26, %v2663_v10  ;;  %v1096_v32 = vpop.f32.mrb[3].mxu1  ;;  %v1537_v33 = vadd.f32 %v2666_v15, %v1405_v23  ;;  %v777_v35 = vadd.f32 %v776_v31, %v2663_v10 }
  0xec   : > { %v1601_v34 = vadd.f32 %v2666_v15, %v1469_v24  ;;  %v1097_v36 = vadd.f32 %v1096_v32, %v2663_v10  ;;  %1667 = vst.msk [vmem:[%s2676_s4 + $0x8] sm:$0xff] %vm1665_vm4, %v1538_v27  ;;  %v1408_v37 = vmax.f32 %v782_v29, 0.0 }
  0xed   : > { %1731 = vst.msk [vmem:[%s2676_s4 + $0x208] sm:$0xff] %vm1665_vm4, %v1602_v28  ;;  %v1472_v38 = vmax.f32 %v1102_v30, 0.0  ;;  %1666 = vst.msk [vmem:[%s2676_s4] sm:$0xff] %vm1665_vm4, %v1537_v33  ;;  %v1407_v39 = vmax.f32 %v777_v35, 0.0  ;;  %v2138_v41 = vpop.f32.mrb[4].mxu0 }
  0xee   : > { %1730 = vst.msk [vmem:[%s2676_s4 + $0x200] sm:$0xff] %vm1665_vm4, %v1601_v34  ;;  %v1471_v40 = vmax.f32 %v1097_v36, 0.0  ;;  %v2234_v42 = vpop.f32.mrb[4].mxu1  ;;  %v1540_v43 = vadd.f32 %v2666_v15, %v1408_v37  ;;  %v792_v45 = vadd.f32 %v2138_v41, %v2663_v10  ;;  %v786_v47 = vpop.f32.mrb[5].mxu0 }
  0xef   : > { %v1604_v44 = vadd.f32 %v2666_v15, %v1472_v38  ;;  %v1112_v46 = vadd.f32 %v2234_v42, %v2663_v10  ;;  %v1106_v48 = vpop.f32.mrb[5].mxu1  ;;  %v1539_v49 = vadd.f32 %v2666_v15, %v1407_v39  ;;  %v787_v51 = vadd.f32 %v786_v47, %v2663_v10 }
  0xf0   : > { %v1603_v50 = vadd.f32 %v2666_v15, %v1471_v40  ;;  %v1107_v52 = vadd.f32 %v1106_v48, %v2663_v10  ;;  %1669 = vst.msk [vmem:[%s2676_s4 + $0x18] sm:$0xff] %vm1665_vm4, %v1540_v43  ;;  %v1410_v53 = vmax.f32 %v792_v45, 0.0 }
  0xf1   : > { %1733 = vst.msk [vmem:[%s2676_s4 + $0x218] sm:$0xff] %vm1665_vm4, %v1604_v44  ;;  %v1474_v54 = vmax.f32 %v1112_v46, 0.0  ;;  %1668 = vst.msk [vmem:[%s2676_s4 + $0x10] sm:$0xff] %vm1665_vm4, %v1539_v49  ;;  %v1409_v55 = vmax.f32 %v787_v51, 0.0  ;;  %v2141_v57 = vpop.f32.mrb[6].mxu0 }
  0xf2   : > { %1732 = vst.msk [vmem:[%s2676_s4 + $0x210] sm:$0xff] %vm1665_vm4, %v1603_v50  ;;  %v1473_v56 = vmax.f32 %v1107_v52, 0.0  ;;  %v2237_v58 = vpop.f32.mrb[6].mxu1  ;;  %v1542_v59 = vadd.f32 %v2666_v15, %v1410_v53  ;;  %v802_v61 = vadd.f32 %v2141_v57, %v2663_v10  ;;  %v796_v63 = vpop.f32.mrb[7].mxu0 }
  0xf3   : > { %v1606_v60 = vadd.f32 %v2666_v15, %v1474_v54  ;;  %v1122_v62 = vadd.f32 %v2237_v58, %v2663_v10  ;;  %v1116_v0 = vpop.f32.mrb[7].mxu1  ;;  %v1541_v1 = vadd.f32 %v2666_v15, %v1409_v55  ;;  %v797_v3 = vadd.f32 %v796_v63, %v2663_v10 }
  0xf4   : > { %v1605_v2 = vadd.f32 %v2666_v15, %v1473_v56  ;;  %v1117_v4 = vadd.f32 %v1116_v0, %v2663_v10  ;;  %1671 = vst.msk [vmem:[%s2676_s4 + $0x28] sm:$0xff] %vm1665_vm4, %v1542_v59  ;;  %v1412_v5 = vmax.f32 %v802_v61, 0.0 }
  0xf5   : > { %1735 = vst.msk [vmem:[%s2676_s4 + $0x228] sm:$0xff] %vm1665_vm4, %v1606_v60  ;;  %v1476_v6 = vmax.f32 %v1122_v62, 0.0  ;;  %1670 = vst.msk [vmem:[%s2676_s4 + $0x20] sm:$0xff] %vm1665_vm4, %v1541_v1  ;;  %v1411_v7 = vmax.f32 %v797_v3, 0.0  ;;  %v2144_v9 = vpop.f32.mrb[8].mxu0 }
  0xf6   : > { %1734 = vst.msk [vmem:[%s2676_s4 + $0x220] sm:$0xff] %vm1665_vm4, %v1605_v2  ;;  %v1475_v8 = vmax.f32 %v1117_v4, 0.0  ;;  %v2240_v11 = vpop.f32.mrb[8].mxu1  ;;  %v1544_v12 = vadd.f32 %v2666_v15, %v1412_v5  ;;  %v812_v14 = vadd.f32 %v2144_v9, %v2663_v10  ;;  %v806_v17 = vpop.f32.mrb[9].mxu0 }
  0xf7   : > { %v1608_v13 = vadd.f32 %v2666_v15, %v1476_v6  ;;  %v1132_v16 = vadd.f32 %v2240_v11, %v2663_v10  ;;  %v1126_v18 = vpop.f32.mrb[9].mxu1  ;;  %v1543_v19 = vadd.f32 %v2666_v15, %v1411_v7  ;;  %v807_v21 = vadd.f32 %v806_v17, %v2663_v10 }
  0xf8   : > { %v1607_v20 = vadd.f32 %v2666_v15, %v1475_v8  ;;  %v1127_v22 = vadd.f32 %v1126_v18, %v2663_v10  ;;  %1673 = vst.msk [vmem:[%s2676_s4 + $0x38] sm:$0xff] %vm1665_vm4, %v1544_v12  ;;  %v1414_v23 = vmax.f32 %v812_v14, 0.0 }
  0xf9   : > { %1737 = vst.msk [vmem:[%s2676_s4 + $0x238] sm:$0xff] %vm1665_vm4, %v1608_v13  ;;  %v1478_v24 = vmax.f32 %v1132_v16, 0.0  ;;  %1672 = vst.msk [vmem:[%s2676_s4 + $0x30] sm:$0xff] %vm1665_vm4, %v1543_v19  ;;  %v1413_v25 = vmax.f32 %v807_v21, 0.0  ;;  %v2147_v27 = vpop.f32.mrb[10].mxu0 }
  0xfa   : > { %1736 = vst.msk [vmem:[%s2676_s4 + $0x230] sm:$0xff] %vm1665_vm4, %v1607_v20  ;;  %v1477_v26 = vmax.f32 %v1127_v22, 0.0  ;;  %v2243_v28 = vpop.f32.mrb[10].mxu1  ;;  %v1546_v29 = vadd.f32 %v2666_v15, %v1414_v23  ;;  %v822_v31 = vadd.f32 %v2147_v27, %v2663_v10  ;;  %v816_v33 = vpop.f32.mrb[11].mxu0 }
  0xfb   : > { %v1610_v30 = vadd.f32 %v2666_v15, %v1478_v24  ;;  %v1142_v32 = vadd.f32 %v2243_v28, %v2663_v10  ;;  %v1136_v34 = vpop.f32.mrb[11].mxu1  ;;  %v1545_v35 = vadd.f32 %v2666_v15, %v1413_v25  ;;  %v817_v37 = vadd.f32 %v816_v33, %v2663_v10 }
  0xfc   : > { %v1609_v36 = vadd.f32 %v2666_v15, %v1477_v26  ;;  %v1137_v38 = vadd.f32 %v1136_v34, %v2663_v10  ;;  %1675 = vst.msk [vmem:[%s2676_s4 + $0x48] sm:$0xff] %vm1665_vm4, %v1546_v29  ;;  %v1416_v39 = vmax.f32 %v822_v31, 0.0 }
  0xfd   : > { %1739 = vst.msk [vmem:[%s2676_s4 + $0x248] sm:$0xff] %vm1665_vm4, %v1610_v30  ;;  %v1480_v40 = vmax.f32 %v1142_v32, 0.0  ;;  %1674 = vst.msk [vmem:[%s2676_s4 + $0x40] sm:$0xff] %vm1665_vm4, %v1545_v35  ;;  %v1415_v41 = vmax.f32 %v817_v37, 0.0  ;;  %v2150_v43 = vpop.f32.mrb[12].mxu0 }
  0xfe   : > { %1738 = vst.msk [vmem:[%s2676_s4 + $0x240] sm:$0xff] %vm1665_vm4, %v1609_v36  ;;  %v1479_v42 = vmax.f32 %v1137_v38, 0.0  ;;  %v2246_v44 = vpop.f32.mrb[12].mxu1  ;;  %v1548_v45 = vadd.f32 %v2666_v15, %v1416_v39  ;;  %v832_v47 = vadd.f32 %v2150_v43, %v2663_v10  ;;  %v826_v49 = vpop.f32.mrb[13].mxu0 }
  0xff   : > { %v1612_v46 = vadd.f32 %v2666_v15, %v1480_v40  ;;  %v1152_v48 = vadd.f32 %v2246_v44, %v2663_v10  ;;  %v1146_v50 = vpop.f32.mrb[13].mxu1  ;;  %v1547_v51 = vadd.f32 %v2666_v15, %v1415_v41  ;;  %v827_v53 = vadd.f32 %v826_v49, %v2663_v10 }
 0x100   : > { %v1611_v52 = vadd.f32 %v2666_v15, %v1479_v42  ;;  %v1147_v54 = vadd.f32 %v1146_v50, %v2663_v10  ;;  %1677 = vst.msk [vmem:[%s2676_s4 + $0x58] sm:$0xff] %vm1665_vm4, %v1548_v45  ;;  %v1418_v55 = vmax.f32 %v832_v47, 0.0 }
 0x101   : > { %1741 = vst.msk [vmem:[%s2676_s4 + $0x258] sm:$0xff] %vm1665_vm4, %v1612_v46  ;;  %v1482_v56 = vmax.f32 %v1152_v48, 0.0  ;;  %1676 = vst.msk [vmem:[%s2676_s4 + $0x50] sm:$0xff] %vm1665_vm4, %v1547_v51  ;;  %v1417_v57 = vmax.f32 %v827_v53, 0.0  ;;  %v2153_v59 = vpop.f32.mrb[14].mxu0 }
 0x102   : > { %1740 = vst.msk [vmem:[%s2676_s4 + $0x250] sm:$0xff] %vm1665_vm4, %v1611_v52  ;;  %v1481_v58 = vmax.f32 %v1147_v54, 0.0  ;;  %v2249_v60 = vpop.f32.mrb[14].mxu1  ;;  %v1550_v61 = vadd.f32 %v2666_v15, %v1418_v55  ;;  %v842_v63 = vadd.f32 %v2153_v59, %v2663_v10  ;;  %v836_v1 = vpop.f32.mrb[15].mxu0 }
 0x103   : > { %v1614_v62 = vadd.f32 %v2666_v15, %v1482_v56  ;;  %v1162_v0 = vadd.f32 %v2249_v60, %v2663_v10  ;;  %v1156_v2 = vpop.f32.mrb[15].mxu1  ;;  %v1549_v3 = vadd.f32 %v2666_v15, %v1417_v57  ;;  %v837_v5 = vadd.f32 %v836_v1, %v2663_v10 }
 0x104   : > { %v1613_v4 = vadd.f32 %v2666_v15, %v1481_v58  ;;  %v1157_v6 = vadd.f32 %v1156_v2, %v2663_v10  ;;  %1679 = vst.msk [vmem:[%s2676_s4 + $0x68] sm:$0xff] %vm1665_vm4, %v1550_v61  ;;  %v1420_v7 = vmax.f32 %v842_v63, 0.0 }
 0x105   : > { %1743 = vst.msk [vmem:[%s2676_s4 + $0x268] sm:$0xff] %vm1665_vm4, %v1614_v62  ;;  %v1484_v8 = vmax.f32 %v1162_v0, 0.0  ;;  %1678 = vst.msk [vmem:[%s2676_s4 + $0x60] sm:$0xff] %vm1665_vm4, %v1549_v3  ;;  %v1419_v9 = vmax.f32 %v837_v5, 0.0  ;;  %v2156_v12 = vpop.f32.mrb[16].mxu0 }
 0x106   : > { %1742 = vst.msk [vmem:[%s2676_s4 + $0x260] sm:$0xff] %vm1665_vm4, %v1613_v4  ;;  %v1483_v11 = vmax.f32 %v1157_v6, 0.0  ;;  %v2252_v13 = vpop.f32.mrb[16].mxu1  ;;  %v1552_v14 = vadd.f32 %v2666_v15, %v1420_v7  ;;  %v852_v17 = vadd.f32 %v2156_v12, %v2663_v10  ;;  %v846_v19 = vpop.f32.mrb[17].mxu0 }
 0x107   : > { %v1616_v16 = vadd.f32 %v2666_v15, %v1484_v8  ;;  %v1172_v18 = vadd.f32 %v2252_v13, %v2663_v10  ;;  %v1166_v20 = vpop.f32.mrb[17].mxu1  ;;  %v1551_v21 = vadd.f32 %v2666_v15, %v1419_v9  ;;  %v847_v23 = vadd.f32 %v846_v19, %v2663_v10 }
 0x108   : > { %v1615_v22 = vadd.f32 %v2666_v15, %v1483_v11  ;;  %v1167_v24 = vadd.f32 %v1166_v20, %v2663_v10  ;;  %1681 = vst.msk [vmem:[%s2676_s4 + $0x78] sm:$0xff] %vm1665_vm4, %v1552_v14  ;;  %v1422_v25 = vmax.f32 %v852_v17, 0.0 }
 0x109   : > { %1745 = vst.msk [vmem:[%s2676_s4 + $0x278] sm:$0xff] %vm1665_vm4, %v1616_v16  ;;  %v1486_v26 = vmax.f32 %v1172_v18, 0.0  ;;  %1680 = vst.msk [vmem:[%s2676_s4 + $0x70] sm:$0xff] %vm1665_vm4, %v1551_v21  ;;  %v1421_v27 = vmax.f32 %v847_v23, 0.0  ;;  %v2159_v29 = vpop.f32.mrb[18].mxu0 }
 0x10a   : > { %1744 = vst.msk [vmem:[%s2676_s4 + $0x270] sm:$0xff] %vm1665_vm4, %v1615_v22  ;;  %v1485_v28 = vmax.f32 %v1167_v24, 0.0  ;;  %v2255_v30 = vpop.f32.mrb[18].mxu1  ;;  %v1554_v31 = vadd.f32 %v2666_v15, %v1422_v25  ;;  %v862_v33 = vadd.f32 %v2159_v29, %v2663_v10  ;;  %v856_v35 = vpop.f32.mrb[19].mxu0 }
 0x10b   : > { %v1618_v32 = vadd.f32 %v2666_v15, %v1486_v26  ;;  %v1182_v34 = vadd.f32 %v2255_v30, %v2663_v10  ;;  %v1176_v36 = vpop.f32.mrb[19].mxu1  ;;  %v1553_v37 = vadd.f32 %v2666_v15, %v1421_v27  ;;  %v857_v39 = vadd.f32 %v856_v35, %v2663_v10 }
 0x10c   : > { %v1617_v38 = vadd.f32 %v2666_v15, %v1485_v28  ;;  %v1177_v40 = vadd.f32 %v1176_v36, %v2663_v10  ;;  %1683 = vst.msk [vmem:[%s2676_s4 + $0x88] sm:$0xff] %vm1665_vm4, %v1554_v31  ;;  %v1424_v41 = vmax.f32 %v862_v33, 0.0 }
 0x10d   : > { %1747 = vst.msk [vmem:[%s2676_s4 + $0x288] sm:$0xff] %vm1665_vm4, %v1618_v32  ;;  %v1488_v42 = vmax.f32 %v1182_v34, 0.0  ;;  %1682 = vst.msk [vmem:[%s2676_s4 + $0x80] sm:$0xff] %vm1665_vm4, %v1553_v37  ;;  %v1423_v43 = vmax.f32 %v857_v39, 0.0  ;;  %v2162_v45 = vpop.f32.mrb[20].mxu0 }
 0x10e   : > { %1746 = vst.msk [vmem:[%s2676_s4 + $0x280] sm:$0xff] %vm1665_vm4, %v1617_v38  ;;  %v1487_v44 = vmax.f32 %v1177_v40, 0.0  ;;  %v2258_v46 = vpop.f32.mrb[20].mxu1  ;;  %v1556_v47 = vadd.f32 %v2666_v15, %v1424_v41  ;;  %v872_v49 = vadd.f32 %v2162_v45, %v2663_v10  ;;  %v866_v51 = vpop.f32.mrb[21].mxu0 }
 0x10f   : > { %v1620_v48 = vadd.f32 %v2666_v15, %v1488_v42  ;;  %v1192_v50 = vadd.f32 %v2258_v46, %v2663_v10  ;;  %v1186_v52 = vpop.f32.mrb[21].mxu1  ;;  %v1555_v53 = vadd.f32 %v2666_v15, %v1423_v43  ;;  %v867_v55 = vadd.f32 %v866_v51, %v2663_v10 }
 0x110   : > { %v1619_v54 = vadd.f32 %v2666_v15, %v1487_v44  ;;  %v1187_v56 = vadd.f32 %v1186_v52, %v2663_v10  ;;  %1685 = vst.msk [vmem:[%s2676_s4 + $0x98] sm:$0xff] %vm1665_vm4, %v1556_v47  ;;  %v1426_v57 = vmax.f32 %v872_v49, 0.0 }
 0x111   : > { %1749 = vst.msk [vmem:[%s2676_s4 + $0x298] sm:$0xff] %vm1665_vm4, %v1620_v48  ;;  %v1490_v58 = vmax.f32 %v1192_v50, 0.0  ;;  %1684 = vst.msk [vmem:[%s2676_s4 + $0x90] sm:$0xff] %vm1665_vm4, %v1555_v53  ;;  %v1425_v59 = vmax.f32 %v867_v55, 0.0  ;;  %v2165_v61 = vpop.f32.mrb[22].mxu0 }
 0x112   : > { %1748 = vst.msk [vmem:[%s2676_s4 + $0x290] sm:$0xff] %vm1665_vm4, %v1619_v54  ;;  %v1489_v60 = vmax.f32 %v1187_v56, 0.0  ;;  %v2261_v62 = vpop.f32.mrb[22].mxu1  ;;  %v1558_v63 = vadd.f32 %v2666_v15, %v1426_v57  ;;  %v882_v1 = vadd.f32 %v2165_v61, %v2663_v10  ;;  %v876_v3 = vpop.f32.mrb[23].mxu0 }
 0x113   : > { %v1622_v0 = vadd.f32 %v2666_v15, %v1490_v58  ;;  %v1202_v2 = vadd.f32 %v2261_v62, %v2663_v10  ;;  %v1196_v4 = vpop.f32.mrb[23].mxu1  ;;  %v1557_v5 = vadd.f32 %v2666_v15, %v1425_v59  ;;  %v877_v7 = vadd.f32 %v876_v3, %v2663_v10 }
 0x114   : > { %v1621_v6 = vadd.f32 %v2666_v15, %v1489_v60  ;;  %v1197_v8 = vadd.f32 %v1196_v4, %v2663_v10  ;;  %1687 = vst.msk [vmem:[%s2676_s4 + $0xa8] sm:$0xff] %vm1665_vm4, %v1558_v63  ;;  %v1428_v9 = vmax.f32 %v882_v1, 0.0 }
 0x115   : > { %1751 = vst.msk [vmem:[%s2676_s4 + $0x2a8] sm:$0xff] %vm1665_vm4, %v1622_v0  ;;  %v1492_v11 = vmax.f32 %v1202_v2, 0.0  ;;  %1686 = vst.msk [vmem:[%s2676_s4 + $0xa0] sm:$0xff] %vm1665_vm4, %v1557_v5  ;;  %v1427_v12 = vmax.f32 %v877_v7, 0.0  ;;  %v2168_v14 = vpop.f32.mrb[24].mxu0 }
 0x116   : > { %1750 = vst.msk [vmem:[%s2676_s4 + $0x2a0] sm:$0xff] %vm1665_vm4, %v1621_v6  ;;  %v1491_v13 = vmax.f32 %v1197_v8, 0.0  ;;  %v2264_v16 = vpop.f32.mrb[24].mxu1  ;;  %v1560_v17 = vadd.f32 %v2666_v15, %v1428_v9  ;;  %v892_v19 = vadd.f32 %v2168_v14, %v2663_v10  ;;  %v886_v21 = vpop.f32.mrb[25].mxu0 }
 0x117   : > { %v1624_v18 = vadd.f32 %v2666_v15, %v1492_v11  ;;  %v1212_v20 = vadd.f32 %v2264_v16, %v2663_v10  ;;  %v1206_v22 = vpop.f32.mrb[25].mxu1  ;;  %v1559_v23 = vadd.f32 %v2666_v15, %v1427_v12  ;;  %v887_v25 = vadd.f32 %v886_v21, %v2663_v10 }
 0x118   : > { %v1623_v24 = vadd.f32 %v2666_v15, %v1491_v13  ;;  %v1207_v26 = vadd.f32 %v1206_v22, %v2663_v10  ;;  %1689 = vst.msk [vmem:[%s2676_s4 + $0xb8] sm:$0xff] %vm1665_vm4, %v1560_v17  ;;  %v1430_v27 = vmax.f32 %v892_v19, 0.0 }
 0x119   : > { %1753 = vst.msk [vmem:[%s2676_s4 + $0x2b8] sm:$0xff] %vm1665_vm4, %v1624_v18  ;;  %v1494_v28 = vmax.f32 %v1212_v20, 0.0  ;;  %1688 = vst.msk [vmem:[%s2676_s4 + $0xb0] sm:$0xff] %vm1665_vm4, %v1559_v23  ;;  %v1429_v29 = vmax.f32 %v887_v25, 0.0  ;;  %v2171_v31 = vpop.f32.mrb[26].mxu0 }
 0x11a   : > { %1752 = vst.msk [vmem:[%s2676_s4 + $0x2b0] sm:$0xff] %vm1665_vm4, %v1623_v24  ;;  %v1493_v30 = vmax.f32 %v1207_v26, 0.0  ;;  %v2267_v32 = vpop.f32.mrb[26].mxu1  ;;  %v1562_v33 = vadd.f32 %v2666_v15, %v1430_v27  ;;  %v902_v35 = vadd.f32 %v2171_v31, %v2663_v10  ;;  %v896_v37 = vpop.f32.mrb[27].mxu0 }
 0x11b   : > { %v1626_v34 = vadd.f32 %v2666_v15, %v1494_v28  ;;  %v1222_v36 = vadd.f32 %v2267_v32, %v2663_v10  ;;  %v1216_v38 = vpop.f32.mrb[27].mxu1  ;;  %v1561_v39 = vadd.f32 %v2666_v15, %v1429_v29  ;;  %v897_v41 = vadd.f32 %v896_v37, %v2663_v10 }
 0x11c   : > { %v1625_v40 = vadd.f32 %v2666_v15, %v1493_v30  ;;  %v1217_v42 = vadd.f32 %v1216_v38, %v2663_v10  ;;  %1691 = vst.msk [vmem:[%s2676_s4 + $0xc8] sm:$0xff] %vm1665_vm4, %v1562_v33  ;;  %v1432_v43 = vmax.f32 %v902_v35, 0.0 }
 0x11d   : > { %1755 = vst.msk [vmem:[%s2676_s4 + $0x2c8] sm:$0xff] %vm1665_vm4, %v1626_v34  ;;  %v1496_v44 = vmax.f32 %v1222_v36, 0.0  ;;  %1690 = vst.msk [vmem:[%s2676_s4 + $0xc0] sm:$0xff] %vm1665_vm4, %v1561_v39  ;;  %v1431_v45 = vmax.f32 %v897_v41, 0.0  ;;  %v2174_v47 = vpop.f32.mrb[28].mxu0 }
 0x11e   : > { %1754 = vst.msk [vmem:[%s2676_s4 + $0x2c0] sm:$0xff] %vm1665_vm4, %v1625_v40  ;;  %v1495_v46 = vmax.f32 %v1217_v42, 0.0  ;;  %v2270_v48 = vpop.f32.mrb[28].mxu1  ;;  %v1564_v49 = vadd.f32 %v2666_v15, %v1432_v43  ;;  %v912_v51 = vadd.f32 %v2174_v47, %v2663_v10  ;;  %v906_v53 = vpop.f32.mrb[29].mxu0 }
 0x11f   : > { %v1628_v50 = vadd.f32 %v2666_v15, %v1496_v44  ;;  %v1232_v52 = vadd.f32 %v2270_v48, %v2663_v10  ;;  %v1226_v54 = vpop.f32.mrb[29].mxu1  ;;  %v1563_v55 = vadd.f32 %v2666_v15, %v1431_v45  ;;  %v907_v57 = vadd.f32 %v906_v53, %v2663_v10 }
 0x120   : > { %v1627_v56 = vadd.f32 %v2666_v15, %v1495_v46  ;;  %v1227_v58 = vadd.f32 %v1226_v54, %v2663_v10  ;;  %1693 = vst.msk [vmem:[%s2676_s4 + $0xd8] sm:$0xff] %vm1665_vm4, %v1564_v49  ;;  %v1434_v59 = vmax.f32 %v912_v51, 0.0 }
 0x121   : > { %1757 = vst.msk [vmem:[%s2676_s4 + $0x2d8] sm:$0xff] %vm1665_vm4, %v1628_v50  ;;  %v1498_v60 = vmax.f32 %v1232_v52, 0.0  ;;  %1692 = vst.msk [vmem:[%s2676_s4 + $0xd0] sm:$0xff] %vm1665_vm4, %v1563_v55  ;;  %v1433_v61 = vmax.f32 %v907_v57, 0.0  ;;  %v2177_v63 = vpop.f32.mrb[30].mxu0 }
 0x122   : > { %1756 = vst.msk [vmem:[%s2676_s4 + $0x2d0] sm:$0xff] %vm1665_vm4, %v1627_v56  ;;  %v1497_v62 = vmax.f32 %v1227_v58, 0.0  ;;  %v2273_v0 = vpop.f32.mrb[30].mxu1  ;;  %v1566_v1 = vadd.f32 %v2666_v15, %v1434_v59  ;;  %v922_v3 = vadd.f32 %v2177_v63, %v2663_v10  ;;  %v916_v5 = vpop.f32.mrb[31].mxu0 }
 0x123   : > { %v1630_v2 = vadd.f32 %v2666_v15, %v1498_v60  ;;  %v1242_v4 = vadd.f32 %v2273_v0, %v2663_v10  ;;  %v1236_v6 = vpop.f32.mrb[31].mxu1  ;;  %v1565_v7 = vadd.f32 %v2666_v15, %v1433_v61  ;;  %v917_v9 = vadd.f32 %v916_v5, %v2663_v10 }
 0x124   : > { %v1629_v8 = vadd.f32 %v2666_v15, %v1497_v62  ;;  %v1237_v11 = vadd.f32 %v1236_v6, %v2663_v10  ;;  %1695 = vst.msk [vmem:[%s2676_s4 + $0xe8] sm:$0xff] %vm1665_vm4, %v1566_v1  ;;  %v1436_v12 = vmax.f32 %v922_v3, 0.0 }
 0x125   : > { %1759 = vst.msk [vmem:[%s2676_s4 + $0x2e8] sm:$0xff] %vm1665_vm4, %v1630_v2  ;;  %v1500_v13 = vmax.f32 %v1242_v4, 0.0  ;;  %1694 = vst.msk [vmem:[%s2676_s4 + $0xe0] sm:$0xff] %vm1665_vm4, %v1565_v7  ;;  %v1435_v14 = vmax.f32 %v917_v9, 0.0  ;;  %v2180_v17 = vpop.f32.mrb[32].mxu0 }
 0x126   : > { %1758 = vst.msk [vmem:[%s2676_s4 + $0x2e0] sm:$0xff] %vm1665_vm4, %v1629_v8  ;;  %v1499_v16 = vmax.f32 %v1237_v11, 0.0  ;;  %v2276_v18 = vpop.f32.mrb[32].mxu1  ;;  %v1568_v19 = vadd.f32 %v2666_v15, %v1436_v12  ;;  %v932_v21 = vadd.f32 %v2180_v17, %v2663_v10  ;;  %v926_v23 = vpop.f32.mrb[33].mxu0 }
 0x127   : > { %v1632_v20 = vadd.f32 %v2666_v15, %v1500_v13  ;;  %v1252_v22 = vadd.f32 %v2276_v18, %v2663_v10  ;;  %v1246_v24 = vpop.f32.mrb[33].mxu1  ;;  %v1567_v25 = vadd.f32 %v2666_v15, %v1435_v14  ;;  %v927_v27 = vadd.f32 %v926_v23, %v2663_v10 }
 0x128   : > { %v1631_v26 = vadd.f32 %v2666_v15, %v1499_v16  ;;  %v1247_v28 = vadd.f32 %v1246_v24, %v2663_v10  ;;  %1697 = vst.msk [vmem:[%s2676_s4 + $0xf8] sm:$0xff] %vm1665_vm4, %v1568_v19  ;;  %v1438_v29 = vmax.f32 %v932_v21, 0.0 }
 0x129   : > { %1761 = vst.msk [vmem:[%s2676_s4 + $0x2f8] sm:$0xff] %vm1665_vm4, %v1632_v20  ;;  %v1502_v30 = vmax.f32 %v1252_v22, 0.0  ;;  %1696 = vst.msk [vmem:[%s2676_s4 + $0xf0] sm:$0xff] %vm1665_vm4, %v1567_v25  ;;  %v1437_v31 = vmax.f32 %v927_v27, 0.0  ;;  %v2183_v33 = vpop.f32.mrb[34].mxu0 }
 0x12a   : > { %1760 = vst.msk [vmem:[%s2676_s4 + $0x2f0] sm:$0xff] %vm1665_vm4, %v1631_v26  ;;  %v1501_v32 = vmax.f32 %v1247_v28, 0.0  ;;  %v2279_v34 = vpop.f32.mrb[34].mxu1  ;;  %v1570_v35 = vadd.f32 %v2666_v15, %v1438_v29  ;;  %v942_v37 = vadd.f32 %v2183_v33, %v2663_v10  ;;  %v936_v39 = vpop.f32.mrb[35].mxu0 }
 0x12b   : > { %v1634_v36 = vadd.f32 %v2666_v15, %v1502_v30  ;;  %v1262_v38 = vadd.f32 %v2279_v34, %v2663_v10  ;;  %v1256_v40 = vpop.f32.mrb[35].mxu1  ;;  %v1569_v41 = vadd.f32 %v2666_v15, %v1437_v31  ;;  %v937_v43 = vadd.f32 %v936_v39, %v2663_v10 }
 0x12c   : > { %v1633_v42 = vadd.f32 %v2666_v15, %v1501_v32  ;;  %v1257_v44 = vadd.f32 %v1256_v40, %v2663_v10  ;;  %1699 = vst.msk [vmem:[%s2676_s4 + $0x108] sm:$0xff] %vm1665_vm4, %v1570_v35  ;;  %v1440_v45 = vmax.f32 %v942_v37, 0.0 }
 0x12d   : > { %1763 = vst.msk [vmem:[%s2676_s4 + $0x308] sm:$0xff] %vm1665_vm4, %v1634_v36  ;;  %v1504_v46 = vmax.f32 %v1262_v38, 0.0  ;;  %1698 = vst.msk [vmem:[%s2676_s4 + $0x100] sm:$0xff] %vm1665_vm4, %v1569_v41  ;;  %v1439_v47 = vmax.f32 %v937_v43, 0.0  ;;  %v2186_v49 = vpop.f32.mrb[36].mxu0 }
 0x12e   : > { %1762 = vst.msk [vmem:[%s2676_s4 + $0x300] sm:$0xff] %vm1665_vm4, %v1633_v42  ;;  %v1503_v48 = vmax.f32 %v1257_v44, 0.0  ;;  %v2282_v50 = vpop.f32.mrb[36].mxu1  ;;  %v1572_v51 = vadd.f32 %v2666_v15, %v1440_v45  ;;  %v952_v53 = vadd.f32 %v2186_v49, %v2663_v10  ;;  %v946_v55 = vpop.f32.mrb[37].mxu0 }
 0x12f   : > { %v1636_v52 = vadd.f32 %v2666_v15, %v1504_v46  ;;  %v1272_v54 = vadd.f32 %v2282_v50, %v2663_v10  ;;  %v1266_v56 = vpop.f32.mrb[37].mxu1  ;;  %v1571_v57 = vadd.f32 %v2666_v15, %v1439_v47  ;;  %v947_v59 = vadd.f32 %v946_v55, %v2663_v10 }
 0x130   : > { %v1635_v58 = vadd.f32 %v2666_v15, %v1503_v48  ;;  %v1267_v60 = vadd.f32 %v1266_v56, %v2663_v10  ;;  %1701 = vst.msk [vmem:[%s2676_s4 + $0x118] sm:$0xff] %vm1665_vm4, %v1572_v51  ;;  %v1442_v61 = vmax.f32 %v952_v53, 0.0 }
 0x131   : > { %1765 = vst.msk [vmem:[%s2676_s4 + $0x318] sm:$0xff] %vm1665_vm4, %v1636_v52  ;;  %v1506_v62 = vmax.f32 %v1272_v54, 0.0  ;;  %1700 = vst.msk [vmem:[%s2676_s4 + $0x110] sm:$0xff] %vm1665_vm4, %v1571_v57  ;;  %v1441_v63 = vmax.f32 %v947_v59, 0.0  ;;  %v2189_v1 = vpop.f32.mrb[38].mxu0 }
 0x132   : > { %1764 = vst.msk [vmem:[%s2676_s4 + $0x310] sm:$0xff] %vm1665_vm4, %v1635_v58  ;;  %v1505_v0 = vmax.f32 %v1267_v60, 0.0  ;;  %v2285_v2 = vpop.f32.mrb[38].mxu1  ;;  %v1574_v3 = vadd.f32 %v2666_v15, %v1442_v61  ;;  %v962_v5 = vadd.f32 %v2189_v1, %v2663_v10  ;;  %v956_v7 = vpop.f32.mrb[39].mxu0 }
 0x133   : > { %v1638_v4 = vadd.f32 %v2666_v15, %v1506_v62  ;;  %v1282_v6 = vadd.f32 %v2285_v2, %v2663_v10  ;;  %v1276_v8 = vpop.f32.mrb[39].mxu1  ;;  %v1573_v9 = vadd.f32 %v2666_v15, %v1441_v63  ;;  %v957_v12 = vadd.f32 %v956_v7, %v2663_v10 }
 0x134   : > { %v1637_v11 = vadd.f32 %v2666_v15, %v1505_v0  ;;  %v1277_v13 = vadd.f32 %v1276_v8, %v2663_v10  ;;  %1703 = vst.msk [vmem:[%s2676_s4 + $0x128] sm:$0xff] %vm1665_vm4, %v1574_v3  ;;  %v1444_v14 = vmax.f32 %v962_v5, 0.0 }
 0x135   : > { %1767 = vst.msk [vmem:[%s2676_s4 + $0x328] sm:$0xff] %vm1665_vm4, %v1638_v4  ;;  %v1508_v16 = vmax.f32 %v1282_v6, 0.0  ;;  %1702 = vst.msk [vmem:[%s2676_s4 + $0x120] sm:$0xff] %vm1665_vm4, %v1573_v9  ;;  %v1443_v17 = vmax.f32 %v957_v12, 0.0  ;;  %v2192_v19 = vpop.f32.mrb[40].mxu0 }
 0x136   : > { %1766 = vst.msk [vmem:[%s2676_s4 + $0x320] sm:$0xff] %vm1665_vm4, %v1637_v11  ;;  %v1507_v18 = vmax.f32 %v1277_v13, 0.0  ;;  %v2288_v20 = vpop.f32.mrb[40].mxu1  ;;  %v1576_v21 = vadd.f32 %v2666_v15, %v1444_v14  ;;  %v972_v23 = vadd.f32 %v2192_v19, %v2663_v10  ;;  %v966_v25 = vpop.f32.mrb[41].mxu0 }
 0x137   : > { %v1640_v22 = vadd.f32 %v2666_v15, %v1508_v16  ;;  %v1292_v24 = vadd.f32 %v2288_v20, %v2663_v10  ;;  %v1286_v26 = vpop.f32.mrb[41].mxu1  ;;  %v1575_v27 = vadd.f32 %v2666_v15, %v1443_v17  ;;  %v967_v29 = vadd.f32 %v966_v25, %v2663_v10 }
 0x138   : > { %v1639_v28 = vadd.f32 %v2666_v15, %v1507_v18  ;;  %v1287_v30 = vadd.f32 %v1286_v26, %v2663_v10  ;;  %1705 = vst.msk [vmem:[%s2676_s4 + $0x138] sm:$0xff] %vm1665_vm4, %v1576_v21  ;;  %v1446_v31 = vmax.f32 %v972_v23, 0.0 }
 0x139   : > { %1769 = vst.msk [vmem:[%s2676_s4 + $0x338] sm:$0xff] %vm1665_vm4, %v1640_v22  ;;  %v1510_v32 = vmax.f32 %v1292_v24, 0.0  ;;  %1704 = vst.msk [vmem:[%s2676_s4 + $0x130] sm:$0xff] %vm1665_vm4, %v1575_v27  ;;  %v1445_v33 = vmax.f32 %v967_v29, 0.0  ;;  %v2195_v35 = vpop.f32.mrb[42].mxu0 }
 0x13a   : > { %1768 = vst.msk [vmem:[%s2676_s4 + $0x330] sm:$0xff] %vm1665_vm4, %v1639_v28  ;;  %v1509_v34 = vmax.f32 %v1287_v30, 0.0  ;;  %v2291_v36 = vpop.f32.mrb[42].mxu1  ;;  %v1578_v37 = vadd.f32 %v2666_v15, %v1446_v31  ;;  %v982_v39 = vadd.f32 %v2195_v35, %v2663_v10  ;;  %v976_v41 = vpop.f32.mrb[43].mxu0 }
 0x13b   : > { %v1642_v38 = vadd.f32 %v2666_v15, %v1510_v32  ;;  %v1302_v40 = vadd.f32 %v2291_v36, %v2663_v10  ;;  %v1296_v42 = vpop.f32.mrb[43].mxu1  ;;  %v1577_v43 = vadd.f32 %v2666_v15, %v1445_v33  ;;  %v977_v45 = vadd.f32 %v976_v41, %v2663_v10 }
 0x13c   : > { %v1641_v44 = vadd.f32 %v2666_v15, %v1509_v34  ;;  %v1297_v46 = vadd.f32 %v1296_v42, %v2663_v10  ;;  %1707 = vst.msk [vmem:[%s2676_s4 + $0x148] sm:$0xff] %vm1665_vm4, %v1578_v37  ;;  %v1448_v47 = vmax.f32 %v982_v39, 0.0 }
 0x13d   : > { %1771 = vst.msk [vmem:[%s2676_s4 + $0x348] sm:$0xff] %vm1665_vm4, %v1642_v38  ;;  %v1512_v48 = vmax.f32 %v1302_v40, 0.0  ;;  %1706 = vst.msk [vmem:[%s2676_s4 + $0x140] sm:$0xff] %vm1665_vm4, %v1577_v43  ;;  %v1447_v49 = vmax.f32 %v977_v45, 0.0  ;;  %v2198_v51 = vpop.f32.mrb[44].mxu0 }
 0x13e   : > { %1770 = vst.msk [vmem:[%s2676_s4 + $0x340] sm:$0xff] %vm1665_vm4, %v1641_v44  ;;  %v1511_v50 = vmax.f32 %v1297_v46, 0.0  ;;  %v2294_v52 = vpop.f32.mrb[44].mxu1  ;;  %v1580_v53 = vadd.f32 %v2666_v15, %v1448_v47  ;;  %v992_v55 = vadd.f32 %v2198_v51, %v2663_v10  ;;  %v986_v57 = vpop.f32.mrb[45].mxu0 }
 0x13f   : > { %v1644_v54 = vadd.f32 %v2666_v15, %v1512_v48  ;;  %v1312_v56 = vadd.f32 %v2294_v52, %v2663_v10  ;;  %v1306_v58 = vpop.f32.mrb[45].mxu1  ;;  %v1579_v59 = vadd.f32 %v2666_v15, %v1447_v49  ;;  %v987_v61 = vadd.f32 %v986_v57, %v2663_v10 }
 0x140   : > { %v1643_v60 = vadd.f32 %v2666_v15, %v1511_v50  ;;  %v1307_v62 = vadd.f32 %v1306_v58, %v2663_v10  ;;  %1709 = vst.msk [vmem:[%s2676_s4 + $0x158] sm:$0xff] %vm1665_vm4, %v1580_v53  ;;  %v1450_v63 = vmax.f32 %v992_v55, 0.0 }
 0x141   : > { %1773 = vst.msk [vmem:[%s2676_s4 + $0x358] sm:$0xff] %vm1665_vm4, %v1644_v54  ;;  %v1514_v0 = vmax.f32 %v1312_v56, 0.0  ;;  %1708 = vst.msk [vmem:[%s2676_s4 + $0x150] sm:$0xff] %vm1665_vm4, %v1579_v59  ;;  %v1449_v1 = vmax.f32 %v987_v61, 0.0  ;;  %v2201_v3 = vpop.f32.mrb[46].mxu0 }
 0x142   : > { %1772 = vst.msk [vmem:[%s2676_s4 + $0x350] sm:$0xff] %vm1665_vm4, %v1643_v60  ;;  %v1513_v2 = vmax.f32 %v1307_v62, 0.0  ;;  %v2297_v4 = vpop.f32.mrb[46].mxu1  ;;  %v1582_v5 = vadd.f32 %v2666_v15, %v1450_v63  ;;  %v1002_v7 = vadd.f32 %v2201_v3, %v2663_v10  ;;  %v996_v9 = vpop.f32.mrb[47].mxu0 }
 0x143   : > { %v1646_v6 = vadd.f32 %v2666_v15, %v1514_v0  ;;  %v1322_v8 = vadd.f32 %v2297_v4, %v2663_v10  ;;  %v1316_v11 = vpop.f32.mrb[47].mxu1  ;;  %v1581_v12 = vadd.f32 %v2666_v15, %v1449_v1  ;;  %v997_v14 = vadd.f32 %v996_v9, %v2663_v10 }
 0x144   : > { %v1645_v13 = vadd.f32 %v2666_v15, %v1513_v2  ;;  %v1317_v16 = vadd.f32 %v1316_v11, %v2663_v10  ;;  %1711 = vst.msk [vmem:[%s2676_s4 + $0x168] sm:$0xff] %vm1665_vm4, %v1582_v5  ;;  %v1452_v17 = vmax.f32 %v1002_v7, 0.0 }
 0x145   : > { %1775 = vst.msk [vmem:[%s2676_s4 + $0x368] sm:$0xff] %vm1665_vm4, %v1646_v6  ;;  %v1516_v18 = vmax.f32 %v1322_v8, 0.0  ;;  %1710 = vst.msk [vmem:[%s2676_s4 + $0x160] sm:$0xff] %vm1665_vm4, %v1581_v12  ;;  %v1451_v19 = vmax.f32 %v997_v14, 0.0  ;;  %v2204_v21 = vpop.f32.mrb[48].mxu0 }
 0x146   : > { %1774 = vst.msk [vmem:[%s2676_s4 + $0x360] sm:$0xff] %vm1665_vm4, %v1645_v13  ;;  %v1515_v20 = vmax.f32 %v1317_v16, 0.0  ;;  %v2300_v22 = vpop.f32.mrb[48].mxu1  ;;  %v1584_v23 = vadd.f32 %v2666_v15, %v1452_v17  ;;  %v1012_v25 = vadd.f32 %v2204_v21, %v2663_v10  ;;  %v1006_v27 = vpop.f32.mrb[49].mxu0 }
 0x147   : > { %v1648_v24 = vadd.f32 %v2666_v15, %v1516_v18  ;;  %v1332_v26 = vadd.f32 %v2300_v22, %v2663_v10  ;;  %v1326_v28 = vpop.f32.mrb[49].mxu1  ;;  %v1583_v29 = vadd.f32 %v2666_v15, %v1451_v19  ;;  %v1007_v31 = vadd.f32 %v1006_v27, %v2663_v10 }
 0x148   : > { %v1647_v30 = vadd.f32 %v2666_v15, %v1515_v20  ;;  %v1327_v32 = vadd.f32 %v1326_v28, %v2663_v10  ;;  %1713 = vst.msk [vmem:[%s2676_s4 + $0x178] sm:$0xff] %vm1665_vm4, %v1584_v23  ;;  %v1454_v33 = vmax.f32 %v1012_v25, 0.0 }
 0x149   : > { %1777 = vst.msk [vmem:[%s2676_s4 + $0x378] sm:$0xff] %vm1665_vm4, %v1648_v24  ;;  %v1518_v34 = vmax.f32 %v1332_v26, 0.0  ;;  %1712 = vst.msk [vmem:[%s2676_s4 + $0x170] sm:$0xff] %vm1665_vm4, %v1583_v29  ;;  %v1453_v35 = vmax.f32 %v1007_v31, 0.0  ;;  %v2207_v37 = vpop.f32.mrb[50].mxu0 }
 0x14a   : > { %1776 = vst.msk [vmem:[%s2676_s4 + $0x370] sm:$0xff] %vm1665_vm4, %v1647_v30  ;;  %v1517_v36 = vmax.f32 %v1327_v32, 0.0  ;;  %v2303_v38 = vpop.f32.mrb[50].mxu1  ;;  %v1586_v39 = vadd.f32 %v2666_v15, %v1454_v33  ;;  %v1022_v41 = vadd.f32 %v2207_v37, %v2663_v10  ;;  %v1016_v43 = vpop.f32.mrb[51].mxu0 }
 0x14b   : > { %v1650_v40 = vadd.f32 %v2666_v15, %v1518_v34  ;;  %v1342_v42 = vadd.f32 %v2303_v38, %v2663_v10  ;;  %v1336_v44 = vpop.f32.mrb[51].mxu1  ;;  %v1585_v45 = vadd.f32 %v2666_v15, %v1453_v35  ;;  %v1017_v47 = vadd.f32 %v1016_v43, %v2663_v10 }
 0x14c   : > { %v1649_v46 = vadd.f32 %v2666_v15, %v1517_v36  ;;  %v1337_v48 = vadd.f32 %v1336_v44, %v2663_v10  ;;  %1715 = vst.msk [vmem:[%s2676_s4 + $0x188] sm:$0xff] %vm1665_vm4, %v1586_v39  ;;  %v1456_v49 = vmax.f32 %v1022_v41, 0.0 }
 0x14d   : > { %1779 = vst.msk [vmem:[%s2676_s4 + $0x388] sm:$0xff] %vm1665_vm4, %v1650_v40  ;;  %v1520_v50 = vmax.f32 %v1342_v42, 0.0  ;;  %1714 = vst.msk [vmem:[%s2676_s4 + $0x180] sm:$0xff] %vm1665_vm4, %v1585_v45  ;;  %v1455_v51 = vmax.f32 %v1017_v47, 0.0  ;;  %v2210_v53 = vpop.f32.mrb[52].mxu0 }
 0x14e   : > { %1778 = vst.msk [vmem:[%s2676_s4 + $0x380] sm:$0xff] %vm1665_vm4, %v1649_v46  ;;  %v1519_v52 = vmax.f32 %v1337_v48, 0.0  ;;  %v2306_v54 = vpop.f32.mrb[52].mxu1  ;;  %v1588_v55 = vadd.f32 %v2666_v15, %v1456_v49  ;;  %v1032_v57 = vadd.f32 %v2210_v53, %v2663_v10  ;;  %v1026_v59 = vpop.f32.mrb[53].mxu0 }
 0x14f   : > { %v1652_v56 = vadd.f32 %v2666_v15, %v1520_v50  ;;  %v1352_v58 = vadd.f32 %v2306_v54, %v2663_v10  ;;  %v1346_v60 = vpop.f32.mrb[53].mxu1  ;;  %v1587_v61 = vadd.f32 %v2666_v15, %v1455_v51  ;;  %v1027_v63 = vadd.f32 %v1026_v59, %v2663_v10 }
 0x150   : > { %v1651_v62 = vadd.f32 %v2666_v15, %v1519_v52  ;;  %v1347_v0 = vadd.f32 %v1346_v60, %v2663_v10  ;;  %1717 = vst.msk [vmem:[%s2676_s4 + $0x198] sm:$0xff] %vm1665_vm4, %v1588_v55  ;;  %v1458_v1 = vmax.f32 %v1032_v57, 0.0 }
 0x151   : > { %1781 = vst.msk [vmem:[%s2676_s4 + $0x398] sm:$0xff] %vm1665_vm4, %v1652_v56  ;;  %v1522_v2 = vmax.f32 %v1352_v58, 0.0  ;;  %1716 = vst.msk [vmem:[%s2676_s4 + $0x190] sm:$0xff] %vm1665_vm4, %v1587_v61  ;;  %v1457_v3 = vmax.f32 %v1027_v63, 0.0  ;;  %v2213_v5 = vpop.f32.mrb[54].mxu0 }
 0x152   : > { %1780 = vst.msk [vmem:[%s2676_s4 + $0x390] sm:$0xff] %vm1665_vm4, %v1651_v62  ;;  %v1521_v4 = vmax.f32 %v1347_v0, 0.0  ;;  %v2309_v6 = vpop.f32.mrb[54].mxu1  ;;  %v1590_v7 = vadd.f32 %v2666_v15, %v1458_v1  ;;  %v1042_v9 = vadd.f32 %v2213_v5, %v2663_v10  ;;  %v1036_v12 = vpop.f32.mrb[55].mxu0 }
 0x153   : > { %v1654_v8 = vadd.f32 %v2666_v15, %v1522_v2  ;;  %v1362_v11 = vadd.f32 %v2309_v6, %v2663_v10  ;;  %v1356_v13 = vpop.f32.mrb[55].mxu1  ;;  %v1589_v14 = vadd.f32 %v2666_v15, %v1457_v3  ;;  %v1037_v17 = vadd.f32 %v1036_v12, %v2663_v10 }
 0x154   : > { %v1653_v16 = vadd.f32 %v2666_v15, %v1521_v4  ;;  %v1357_v18 = vadd.f32 %v1356_v13, %v2663_v10  ;;  %1719 = vst.msk [vmem:[%s2676_s4 + $0x1a8] sm:$0xff] %vm1665_vm4, %v1590_v7  ;;  %v1460_v19 = vmax.f32 %v1042_v9, 0.0 }
 0x155   : > { %1783 = vst.msk [vmem:[%s2676_s4 + $0x3a8] sm:$0xff] %vm1665_vm4, %v1654_v8  ;;  %v1524_v20 = vmax.f32 %v1362_v11, 0.0  ;;  %1718 = vst.msk [vmem:[%s2676_s4 + $0x1a0] sm:$0xff] %vm1665_vm4, %v1589_v14  ;;  %v1459_v21 = vmax.f32 %v1037_v17, 0.0  ;;  %v2216_v23 = vpop.f32.mrb[56].mxu0 }
 0x156   : > { %1782 = vst.msk [vmem:[%s2676_s4 + $0x3a0] sm:$0xff] %vm1665_vm4, %v1653_v16  ;;  %v1523_v22 = vmax.f32 %v1357_v18, 0.0  ;;  %v2312_v24 = vpop.f32.mrb[56].mxu1  ;;  %v1592_v25 = vadd.f32 %v2666_v15, %v1460_v19  ;;  %v1052_v27 = vadd.f32 %v2216_v23, %v2663_v10  ;;  %v1046_v29 = vpop.f32.mrb[57].mxu0 }
 0x157   : > { %v1656_v26 = vadd.f32 %v2666_v15, %v1524_v20  ;;  %v1372_v28 = vadd.f32 %v2312_v24, %v2663_v10  ;;  %v1366_v30 = vpop.f32.mrb[57].mxu1  ;;  %v1591_v31 = vadd.f32 %v2666_v15, %v1459_v21  ;;  %v1047_v33 = vadd.f32 %v1046_v29, %v2663_v10 }
 0x158   : > { %v1655_v32 = vadd.f32 %v2666_v15, %v1523_v22  ;;  %v1367_v34 = vadd.f32 %v1366_v30, %v2663_v10  ;;  %1721 = vst.msk [vmem:[%s2676_s4 + $0x1b8] sm:$0xff] %vm1665_vm4, %v1592_v25  ;;  %v1462_v35 = vmax.f32 %v1052_v27, 0.0 }
 0x159   : > { %1785 = vst.msk [vmem:[%s2676_s4 + $0x3b8] sm:$0xff] %vm1665_vm4, %v1656_v26  ;;  %v1526_v36 = vmax.f32 %v1372_v28, 0.0  ;;  %1720 = vst.msk [vmem:[%s2676_s4 + $0x1b0] sm:$0xff] %vm1665_vm4, %v1591_v31  ;;  %v1461_v37 = vmax.f32 %v1047_v33, 0.0  ;;  %v2219_v39 = vpop.f32.mrb[58].mxu0 }
 0x15a   : > { %1784 = vst.msk [vmem:[%s2676_s4 + $0x3b0] sm:$0xff] %vm1665_vm4, %v1655_v32  ;;  %v1525_v38 = vmax.f32 %v1367_v34, 0.0  ;;  %v2315_v40 = vpop.f32.mrb[58].mxu1  ;;  %v1594_v41 = vadd.f32 %v2666_v15, %v1462_v35  ;;  %v1062_v43 = vadd.f32 %v2219_v39, %v2663_v10  ;;  %v1056_v45 = vpop.f32.mrb[59].mxu0 }
 0x15b   : > { %v1658_v42 = vadd.f32 %v2666_v15, %v1526_v36  ;;  %v1382_v44 = vadd.f32 %v2315_v40, %v2663_v10  ;;  %v1376_v46 = vpop.f32.mrb[59].mxu1  ;;  %v1593_v47 = vadd.f32 %v2666_v15, %v1461_v37  ;;  %v1057_v49 = vadd.f32 %v1056_v45, %v2663_v10 }
 0x15c   : > { %v1657_v48 = vadd.f32 %v2666_v15, %v1525_v38  ;;  %v1377_v50 = vadd.f32 %v1376_v46, %v2663_v10  ;;  %1723 = vst.msk [vmem:[%s2676_s4 + $0x1c8] sm:$0xff] %vm1665_vm4, %v1594_v41  ;;  %v1464_v51 = vmax.f32 %v1062_v43, 0.0 }
 0x15d   : > { %1787 = vst.msk [vmem:[%s2676_s4 + $0x3c8] sm:$0xff] %vm1665_vm4, %v1658_v42  ;;  %v1528_v52 = vmax.f32 %v1382_v44, 0.0  ;;  %1722 = vst.msk [vmem:[%s2676_s4 + $0x1c0] sm:$0xff] %vm1665_vm4, %v1593_v47  ;;  %v1463_v53 = vmax.f32 %v1057_v49, 0.0  ;;  %v2222_v55 = vpop.f32.mrb[60].mxu0 }
 0x15e   : > { %1786 = vst.msk [vmem:[%s2676_s4 + $0x3c0] sm:$0xff] %vm1665_vm4, %v1657_v48  ;;  %v1527_v54 = vmax.f32 %v1377_v50, 0.0  ;;  %v2318_v56 = vpop.f32.mrb[60].mxu1  ;;  %v1596_v57 = vadd.f32 %v2666_v15, %v1464_v51  ;;  %v1072_v59 = vadd.f32 %v2222_v55, %v2663_v10  ;;  %v1066_v61 = vpop.f32.mrb[61].mxu0 }
 0x15f   : > { %v1660_v58 = vadd.f32 %v2666_v15, %v1528_v52  ;;  %v1392_v60 = vadd.f32 %v2318_v56, %v2663_v10  ;;  %v1386_v62 = vpop.f32.mrb[61].mxu1  ;;  %v1595_v63 = vadd.f32 %v2666_v15, %v1463_v53  ;;  %v1067_v1 = vadd.f32 %v1066_v61, %v2663_v10 }
 0x160   : > { %v1659_v0 = vadd.f32 %v2666_v15, %v1527_v54  ;;  %v1387_v2 = vadd.f32 %v1386_v62, %v2663_v10  ;;  %1725 = vst.msk [vmem:[%s2676_s4 + $0x1d8] sm:$0xff] %vm1665_vm4, %v1596_v57  ;;  %v1466_v3 = vmax.f32 %v1072_v59, 0.0 }
 0x161   : > { %1789 = vst.msk [vmem:[%s2676_s4 + $0x3d8] sm:$0xff] %vm1665_vm4, %v1660_v58  ;;  %v1530_v4 = vmax.f32 %v1392_v60, 0.0  ;;  %1724 = vst.msk [vmem:[%s2676_s4 + $0x1d0] sm:$0xff] %vm1665_vm4, %v1595_v63  ;;  %v1465_v5 = vmax.f32 %v1067_v1, 0.0  ;;  %v2225_v7 = vpop.f32.mrb[62].mxu0 }
 0x162   : > { %1788 = vst.msk [vmem:[%s2676_s4 + $0x3d0] sm:$0xff] %vm1665_vm4, %v1659_v0  ;;  %v1529_v6 = vmax.f32 %v1387_v2, 0.0  ;;  %v2321_v8 = vpop.f32.mrb[62].mxu1  ;;  %v1598_v9 = vadd.f32 %v2666_v15, %v1466_v3  ;;  %v1082_v12 = vadd.f32 %v2225_v7, %v2663_v10  ;;  %v1076_v14 = vpop.f32.mrb[63].mxu0 }
 0x163   : > { %v1662_v11 = vadd.f32 %v2666_v15, %v1530_v4  ;;  %v1402_v13 = vadd.f32 %v2321_v8, %v2663_v10  ;;  %v1396_v16 = vpop.f32.mrb[63].mxu1  ;;  %v1597_v17 = vadd.f32 %v2666_v15, %v1465_v5  ;;  %v1077_v19 = vadd.f32 %v1076_v14, %v2663_v10 }
 0x164   : > { %v1661_v18 = vadd.f32 %v2666_v15, %v1529_v6  ;;  %v1397_v20 = vadd.f32 %v1396_v16, %v2663_v10  ;;  %1727 = vst.msk [vmem:[%s2676_s4 + $0x1e8] sm:$0xff] %vm1665_vm4, %v1598_v9  ;;  %v1468_v21 = vmax.f32 %v1082_v12, 0.0 }
 0x165   : > { %1791 = vst.msk [vmem:[%s2676_s4 + $0x3e8] sm:$0xff] %vm1665_vm4, %v1662_v11  ;;  %v1532_v22 = vmax.f32 %v1402_v13, 0.0  ;;  %1726 = vst.msk [vmem:[%s2676_s4 + $0x1e0] sm:$0xff] %vm1665_vm4, %v1597_v17  ;;  %v1467_v23 = vmax.f32 %v1077_v19, 0.0 }
 0x166   : > { %1790 = vst.msk [vmem:[%s2676_s4 + $0x3e0] sm:$0xff] %vm1665_vm4, %v1661_v18  ;;  %v1531_v24 = vmax.f32 %v1397_v20, 0.0  ;;  %v1600_v25 = vadd.f32 %v2666_v15, %v1468_v21 }
 0x167   : > { %v1664_v26 = vadd.f32 %v2666_v15, %v1532_v22  ;;  %v1599_v27 = vadd.f32 %v2666_v15, %v1467_v23 }
 0x168   : > { %v1663_v10 = vadd.f32 %v2666_v15, %v1531_v24  ;;  %1729 = vst.msk [vmem:[%s2676_s4 + $0x1f8] sm:$0xff] %vm1665_vm4, %v1600_v25 }
 0x169   : > { %1793 = vst.msk [vmem:[%s2676_s4 + $0x3f8] sm:$0xff] %vm1665_vm4, %v1664_v26  ;;  %1728 = vst.msk [vmem:[%s2676_s4 + $0x1f0] sm:$0xff] %vm1665_vm4, %v1599_v27 }
 0x16a   : > { %1792 = vst.msk [vmem:[%s2676_s4 + $0x3f0] sm:$0xff] %vm1665_vm4, %v1663_v10 }
 0x16b PF: > { %s13_s12 = sadd.s32 1, %s2351_s12  }
 0x16c   : > { %p10_p4 = scmp.ge.s32.totalorder %s13_s12, 4  }
 0x16e   :  { %12 = sbr.rel (!%p10_p4) target bundleno = 1 (0x1), region = 62 }

// kernel: base_cnn_forward.5
= control target key start
LH: loop header
LB: loop body
LE: loop exit
PB: predicated region body
PF: predicated region fallthrough
CT: control target
= control target key end

     0   :  { %s871_s12 = smov 0   ;;  %s1199_s0 = inlined_call_operand.vmem [shape: f32[512,144], index: 0, kind: input, shape index: {}]   ;;  %s1200_s1 = inlined_call_operand.vmem [shape: f32[144,32], index: 1, kind: input, shape index: {}]   ;;  %s1201_s2 = inlined_call_operand.vmem [shape: f32[2,32], index: 2, kind: input, shape index: {}]   ;;  %s1202_s3 = inlined_call_operand.vmem [shape: f32[512,32], index: 3, kind: output, shape index: {}]  }
   0x1 LB: > { %s743_s13 = sadd.s32 4294967295, %s848_s12   ;;  %p747_p0 = scmp.ge.s32.totalorder %s848_s12, 1  ;;  %s848_s12 = sphi %s871_s12, %s13_s12  }
   0x2   : > { %p139_p1 = scmp.lt.s32.totalorder %s848_s12, 3 }
   0x4   : > { %p140_p2 = pnand %p747_p0, %p139_p1 }
   0x5   : > { %v241_v0 = vld [vmem:[%s1200_s1] sm:$0xff] (!%p140_p2)  ;;  %v242_v1 = vld [vmem:[%s1200_s1 + $0x8] sm:$0xff] (!%p140_p2)  ;;  %v243_v2 = vld [vmem:[%s1200_s1 + $0x10] sm:$0xff] (!%p140_p2)  ;;  %s748_s20 = sshll.u32 (!%p140_p2), %s743_s13, 5  ;;  %v850_v3 = vmov (!%p140_p2), 0.0|0.0   ;;  %vm264_vm0 = vcmask (!%p140_p2), 130048  }
   0x6   : > { %143 = sbr.rel (%p140_p2) target bundleno = 322 (0x142), region = 32  ;;  %788 = vmatprep.subr.bf16.mxu0 (!%p140_p2), %v850_v3  ;;  %815 = vmatprep.subr.bf16.mxu1 (!%p140_p2), %v850_v3  ;;  %v789_v4 = vpack.c.bf16 (!%p140_p2), %v242_v1, %v241_v0  ;;  %v244_v5 = vld [vmem:[%s1200_s1 + $0x18] sm:$0xff] (!%p140_p2)  ;;  %p165_p3 = scmp.lt.s32.totalorder (!%p140_p2), %s748_s20, 63  ;;  %v245_v7 = vld [vmem:[%s1200_s1 + $0x20] sm:$0xff] (!%p140_p2)  ;;  %v246_v8 = vld [vmem:[%s1200_s1 + $0x28] sm:$0xff] (!%p140_p2)  ;;  %vm654_vm1 = vcmask (!%p140_p2), 261120  }
   0x7   : > { %v792_v6 = vpack.c.bf16 (!%p140_p2), %v244_v5, %v243_v2  ;;  %v795_v9 = vpack.c.bf16 (!%p140_p2), %v246_v8, %v245_v7  ;;  %v247_v12 = vld [vmem:[%s1200_s1 + $0x30] sm:$0xff] (!%p140_p2)  ;;  %v248_v13 = vld [vmem:[%s1200_s1 + $0x38] sm:$0xff] (!%p140_p2)  ;;  %v249_v15 = vld [vmem:[%s1200_s1 + $0x40] sm:$0xff] (!%p140_p2) }
   0x8   : > { %790 = vmatpush1.bf16.msra.mxu0 (!%p140_p2), %v789_v4  ;;  %824 = vmatpush1.bf16.msra.mxu1 (!%p140_p2), %v789_v4  ;;  %v798_v14 = vpack.c.bf16 (!%p140_p2), %v248_v13, %v247_v12  ;;  %v250_v16 = vld [vmem:[%s1200_s1 + $0x48] sm:$0xff] (!%p140_p2)  ;;  %v251_v18 = vld [vmem:[%s1200_s1 + $0x50] sm:$0xff] (!%p140_p2)  ;;  %v252_v19 = vld [vmem:[%s1200_s1 + $0x58] sm:$0xff] (!%p140_p2) }
   0x9   : > { %791 = vmatprep.subr.bf16.mxu0 (!%p140_p2), %v850_v3  ;;  %816 = vmatprep.subr.bf16.mxu1 (!%p140_p2), %v850_v3  ;;  %v801_v17 = vpack.c.bf16 (!%p140_p2), %v250_v16, %v249_v15  ;;  %v804_v20 = vpack.c.bf16 (!%p140_p2), %v252_v19, %v251_v18  ;;  %v253_v21 = vld [vmem:[%s1200_s1 + $0x60] sm:$0xff] (!%p140_p2)  ;;  %v254_v22 = vld [vmem:[%s1200_s1 + $0x68] sm:$0xff] (!%p140_p2)  ;;  %v255_v24 = vld [vmem:[%s1200_s1 + $0x70] sm:$0xff] (!%p140_p2) }
   0xa   : > { %v807_v23 = vpack.c.bf16 (!%p140_p2), %v254_v22, %v253_v21  ;;  %v256_v25 = vld [vmem:[%s1200_s1 + $0x78] sm:$0xff] (!%p140_p2)  ;;  %v257_v27 = vld [vmem:[%s1200_s1 + $0x80] sm:$0xff] (!%p140_p2)  ;;  %v258_v28 = vld [vmem:[%s1200_s1 + $0x88] sm:$0xff] (!%p140_p2) }
   0xb   : > { %v810_v26 = vpack.c.bf16 (!%p140_p2), %v256_v25, %v255_v24  ;;  %v813_v29 = vpack.c.bf16 (!%p140_p2), %v258_v28, %v257_v27  ;;  %v260_v28 = vlaneseq (!%p140_p2) }
   0xc   : > { %793 = vmatpush1.bf16.msra.mxu0 (!%p140_p2), %v792_v6  ;;  %825 = vmatpush1.bf16.msra.mxu1 (!%p140_p2), %v792_v6 }
   0xd   : > { %s1204_s20 = smov (!%p165_p3, %s748_s20), 63  ;;  %794 = vmatprep.subr.bf16.mxu0 %v850_v3  ;;  %817 = vmatprep.subr.bf16.mxu1 %v850_v3 }
   0xe   : > { %s787_s27 = sshll.u32 %s1204_s20, 4  ;;  %s752_s6 = sshll.u32 %s1204_s20, 3 }
   0xf   : > { %s907_s30 = scalar_lea.vmem %s1199_s0, %s787_s27  ;;  %s1068_s8 = scalar_lea.vmem %s1202_s3, %s752_s6 }
  0x10   : > { %v178_v10 = vld [vmem:[%s907_s30 + $0x8] sm:$0xff]  ;;  %796 = vmatpush1.bf16.msra.mxu0 %v795_v9  ;;  %826 = vmatpush1.bf16.msra.mxu1 %v795_v9  ;;  %v177_v30 = vld [vmem:[%s907_s30] sm:$0xff]  ;;  %v180_v32 = vld [vmem:[%s907_s30 + $0x18] sm:$0xff] }
  0x11   : > { %v210_v11 = vld [vmem:[%s907_s30 + $0x108] sm:$0xff]  ;;  %753 = vmatprep.mubr.msk.f32.mxu0 %vm264_vm0, %v178_v10  ;;  %797 = vmatprep.subr.bf16.mxu0 %v850_v3  ;;  %v209_v31 = vld [vmem:[%s907_s30 + $0x100] sm:$0xff]  ;;  %v212_v33 = vld [vmem:[%s907_s30 + $0x118] sm:$0xff] }
  0x12   : > { %769 = vmatprep.mubr.msk.f32.mxu1 %vm264_vm0, %v210_v11  ;;  %818 = vmatprep.subr.bf16.mxu1 %v850_v3  ;;  %v179_v34 = vld [vmem:[%s907_s30 + $0x10] sm:$0xff]  ;;  %v182_v36 = vld [vmem:[%s907_s30 + $0x28] sm:$0xff]  ;;  %v181_v38 = vld [vmem:[%s907_s30 + $0x20] sm:$0xff] }
  0x13   : > { %v211_v35 = vld [vmem:[%s907_s30 + $0x110] sm:$0xff]  ;;  %v214_v37 = vld [vmem:[%s907_s30 + $0x128] sm:$0xff]  ;;  %v213_v39 = vld [vmem:[%s907_s30 + $0x120] sm:$0xff] }
  0x14   : > { %799 = vmatpush1.bf16.msra.mxu0 %v798_v14  ;;  %827 = vmatpush1.bf16.msra.mxu1 %v798_v14  ;;  %v184_v40 = vld [vmem:[%s907_s30 + $0x38] sm:$0xff]  ;;  %v183_v42 = vld [vmem:[%s907_s30 + $0x30] sm:$0xff]  ;;  %v186_v44 = vld [vmem:[%s907_s30 + $0x48] sm:$0xff] }
  0x15   : > { %800 = vmatprep.subr.bf16.mxu0 %v850_v3  ;;  %819 = vmatprep.subr.bf16.mxu1 %v850_v3  ;;  %v216_v41 = vld [vmem:[%s907_s30 + $0x138] sm:$0xff]  ;;  %v215_v43 = vld [vmem:[%s907_s30 + $0x130] sm:$0xff]  ;;  %v218_v45 = vld [vmem:[%s907_s30 + $0x148] sm:$0xff] }
  0x16   : > { %v185_v46 = vld [vmem:[%s907_s30 + $0x40] sm:$0xff]  ;;  %v188_v48 = vld [vmem:[%s907_s30 + $0x58] sm:$0xff]  ;;  %v187_v50 = vld [vmem:[%s907_s30 + $0x50] sm:$0xff] }
  0x17   : > { %v217_v47 = vld [vmem:[%s907_s30 + $0x140] sm:$0xff]  ;;  %v220_v49 = vld [vmem:[%s907_s30 + $0x158] sm:$0xff]  ;;  %v219_v51 = vld [vmem:[%s907_s30 + $0x150] sm:$0xff] }
  0x18   : > { %802 = vmatpush1.bf16.msra.mxu0 %v801_v17  ;;  %828 = vmatpush1.bf16.msra.mxu1 %v801_v17  ;;  %v190_v52 = vld [vmem:[%s907_s30 + $0x68] sm:$0xff]  ;;  %v189_v54 = vld [vmem:[%s907_s30 + $0x60] sm:$0xff]  ;;  %v192_v56 = vld [vmem:[%s907_s30 + $0x78] sm:$0xff] }
  0x19   : > { %803 = vmatprep.subr.bf16.mxu0 %v850_v3  ;;  %820 = vmatprep.subr.bf16.mxu1 %v850_v3  ;;  %v222_v53 = vld [vmem:[%s907_s30 + $0x168] sm:$0xff]  ;;  %v221_v55 = vld [vmem:[%s907_s30 + $0x160] sm:$0xff]  ;;  %v224_v57 = vld [vmem:[%s907_s30 + $0x178] sm:$0xff] }
  0x1a   : > { %v191_v58 = vld [vmem:[%s907_s30 + $0x70] sm:$0xff]  ;;  %v194_v60 = vld [vmem:[%s907_s30 + $0x88] sm:$0xff]  ;;  %v193_v62 = vld [vmem:[%s907_s30 + $0x80] sm:$0xff] }
  0x1b   : > { %v223_v59 = vld [vmem:[%s907_s30 + $0x170] sm:$0xff]  ;;  %v226_v61 = vld [vmem:[%s907_s30 + $0x188] sm:$0xff]  ;;  %v225_v63 = vld [vmem:[%s907_s30 + $0x180] sm:$0xff] }
  0x1c   : > { %805 = vmatpush1.bf16.msra.mxu0 %v804_v20  ;;  %829 = vmatpush1.bf16.msra.mxu1 %v804_v20  ;;  %v196_v0 = vld [vmem:[%s907_s30 + $0x98] sm:$0xff]  ;;  %v195_v2 = vld [vmem:[%s907_s30 + $0x90] sm:$0xff]  ;;  %v198_v4 = vld [vmem:[%s907_s30 + $0xa8] sm:$0xff] }
  0x1d   : > { %806 = vmatprep.subr.bf16.mxu0 %v850_v3  ;;  %821 = vmatprep.subr.bf16.mxu1 %v850_v3  ;;  %v228_v1 = vld [vmem:[%s907_s30 + $0x198] sm:$0xff]  ;;  %v230_v5 = vld [vmem:[%s907_s30 + $0x1a8] sm:$0xff]  ;;  %v197_v6 = vld [vmem:[%s907_s30 + $0xa0] sm:$0xff] }
  0x1e   : > { %v229_v7 = vld [vmem:[%s907_s30 + $0x1a0] sm:$0xff]  ;;  %v200_v8 = vld [vmem:[%s907_s30 + $0xb8] sm:$0xff]  ;;  %v199_v10 = vld [vmem:[%s907_s30 + $0xb0] sm:$0xff] }
  0x1f   : > { %v232_v9 = vld [vmem:[%s907_s30 + $0x1b8] sm:$0xff]  ;;  %v231_v11 = vld [vmem:[%s907_s30 + $0x1b0] sm:$0xff]  ;;  %v202_v12 = vld [vmem:[%s907_s30 + $0xc8] sm:$0xff] }
  0x20   : > { %808 = vmatpush1.bf16.msra.mxu0 %v807_v23  ;;  %830 = vmatpush1.bf16.msra.mxu1 %v807_v23  ;;  %v234_v13 = vld [vmem:[%s907_s30 + $0x1c8] sm:$0xff]  ;;  %v201_v14 = vld [vmem:[%s907_s30 + $0xc0] sm:$0xff]  ;;  %v204_v16 = vld [vmem:[%s907_s30 + $0xd8] sm:$0xff] }
  0x21   : > { %809 = vmatprep.subr.bf16.mxu0 %v850_v3  ;;  %822 = vmatprep.subr.bf16.mxu1 %v850_v3  ;;  %v233_v15 = vld [vmem:[%s907_s30 + $0x1c0] sm:$0xff]  ;;  %v236_v17 = vld [vmem:[%s907_s30 + $0x1d8] sm:$0xff]  ;;  %v203_v18 = vld [vmem:[%s907_s30 + $0xd0] sm:$0xff] }
  0x22   : > { %v235_v19 = vld [vmem:[%s907_s30 + $0x1d0] sm:$0xff]  ;;  %v206_v20 = vld [vmem:[%s907_s30 + $0xe8] sm:$0xff]  ;;  %v205_v22 = vld [vmem:[%s907_s30 + $0xe0] sm:$0xff] }
  0x23   : > { %v238_v21 = vld [vmem:[%s907_s30 + $0x1e8] sm:$0xff]  ;;  %v237_v23 = vld [vmem:[%s907_s30 + $0x1e0] sm:$0xff]  ;;  %v208_v24 = vld [vmem:[%s907_s30 + $0xf8] sm:$0xff] }
  0x24   : > { %811 = vmatpush1.bf16.msra.mxu0 %v810_v26  ;;  %831 = vmatpush1.bf16.msra.mxu1 %v810_v26  ;;  %v240_v25 = vld [vmem:[%s907_s30 + $0x1f8] sm:$0xff]  ;;  %v207_v26 = vld [vmem:[%s907_s30 + $0xf0] sm:$0xff] }
  0x25   : > { %812 = vmatprep.subr.bf16.mxu0 %v850_v3  ;;  %823 = vmatprep.subr.bf16.mxu1 %v850_v3  ;;  %v227_v3 = vld [vmem:[%s907_s30 + $0x190] sm:$0xff] }
  0x26   : > { %v239_v27 = vld [vmem:[%s907_s30 + $0x1f0] sm:$0xff] }
  0x28   : > { %814 = vmatpush1.bf16.msra.mxu0 %v813_v29  ;;  %832 = vmatpush1.bf16.msra.mxu1 %v813_v29  ;;  %v261_v29 = vshrl.u32 %v260_v28, 7 }
  0x2b   : > { %426 = vmatmul.mubr.f32.vlgmr.msra.gmra.mrb[0].mxu0 %v177_v30  ;;  %506 = vmatmul.mubr.f32.vlgmr.msra.gmra.mrb[0].mxu1 %v209_v31  ;;  %v262_v30 = vsub.s32 0, %v261_v29  ;;  %v259_v31 = vld [vmem:[%s1201_s2] sm:$0x3] }
  0x2c   : > { %754 = vmatprep.mubr.msk.f32.mxu0 %vm264_vm0, %v180_v32  ;;  %770 = vmatprep.mubr.msk.f32.mxu1 %vm264_vm0, %v212_v33  ;;  %v620_v33 = vsub.s32 1, %v261_v29 }
  0x2d   : > { %v1058_v32 = vrot.slane %v259_v31, %v262_v30 }
  0x2f   : > { %431 = vmatmul.mubr.f32.gmra.mrb[2].mxu0 %v179_v34  ;;  %511 = vmatmul.mubr.f32.gmra.mrb[2].mxu1 %v211_v35 }
  0x30   : > { %755 = vmatprep.mubr.msk.f32.mxu0 %vm264_vm0, %v182_v36  ;;  %771 = vmatprep.mubr.msk.f32.mxu1 %vm264_vm0, %v214_v37  ;;  %v1062_v37 = vrot.slane %v259_v31, %v620_v33 }
  0x33   : > { %436 = vmatmul.mubr.f32.gmra.mrb[4].mxu0 %v181_v38  ;;  %516 = vmatmul.mubr.f32.gmra.mrb[4].mxu1 %v213_v39 }
  0x34   : > { %756 = vmatprep.mubr.msk.f32.mxu0 %vm264_vm0, %v184_v40  ;;  %772 = vmatprep.mubr.msk.f32.mxu1 %vm264_vm0, %v216_v41 }
  0x37   : > { %441 = vmatmul.mubr.f32.gmra.mrb[6].mxu0 %v183_v42  ;;  %521 = vmatmul.mubr.f32.gmra.mrb[6].mxu1 %v215_v43 }
  0x38   : > { %757 = vmatprep.mubr.msk.f32.mxu0 %vm264_vm0, %v186_v44  ;;  %773 = vmatprep.mubr.msk.f32.mxu1 %vm264_vm0, %v218_v45 }
  0x3b   : > { %446 = vmatmul.mubr.f32.gmra.mrb[8].mxu0 %v185_v46  ;;  %526 = vmatmul.mubr.f32.gmra.mrb[8].mxu1 %v217_v47 }
  0x3c   : > { %758 = vmatprep.mubr.msk.f32.mxu0 %vm264_vm0, %v188_v48  ;;  %774 = vmatprep.mubr.msk.f32.mxu1 %vm264_vm0, %v220_v49 }
  0x3f   : > { %451 = vmatmul.mubr.f32.gmra.mrb[10].mxu0 %v187_v50  ;;  %531 = vmatmul.mubr.f32.gmra.mrb[10].mxu1 %v219_v51 }
  0x40   : > { %759 = vmatprep.mubr.msk.f32.mxu0 %vm264_vm0, %v190_v52  ;;  %775 = vmatprep.mubr.msk.f32.mxu1 %vm264_vm0, %v222_v53 }
  0x43   : > { %456 = vmatmul.mubr.f32.gmra.mrb[12].mxu0 %v189_v54  ;;  %536 = vmatmul.mubr.f32.gmra.mrb[12].mxu1 %v221_v55 }
  0x44   : > { %760 = vmatprep.mubr.msk.f32.mxu0 %vm264_vm0, %v192_v56  ;;  %776 = vmatprep.mubr.msk.f32.mxu1 %vm264_vm0, %v224_v57 }
  0x47   : > { %461 = vmatmul.mubr.f32.gmra.mrb[14].mxu0 %v191_v58  ;;  %541 = vmatmul.mubr.f32.gmra.mrb[14].mxu1 %v223_v59 }
  0x48   : > { %761 = vmatprep.mubr.msk.f32.mxu0 %vm264_vm0, %v194_v60  ;;  %777 = vmatprep.mubr.msk.f32.mxu1 %vm264_vm0, %v226_v61 }
  0x4b   : > { %466 = vmatmul.mubr.f32.gmra.mrb[16].mxu0 %v193_v62  ;;  %546 = vmatmul.mubr.f32.gmra.mrb[16].mxu1 %v225_v63 }
  0x4c   : > { %762 = vmatprep.mubr.msk.f32.mxu0 %vm264_vm0, %v196_v0  ;;  %778 = vmatprep.mubr.msk.f32.mxu1 %vm264_vm0, %v228_v1 }
  0x4f   : > { %471 = vmatmul.mubr.f32.gmra.mrb[18].mxu0 %v195_v2  ;;  %551 = vmatmul.mubr.f32.gmra.mrb[18].mxu1 %v227_v3 }
  0x50   : > { %763 = vmatprep.mubr.msk.f32.mxu0 %vm264_vm0, %v198_v4  ;;  %779 = vmatprep.mubr.msk.f32.mxu1 %vm264_vm0, %v230_v5 }
  0x53   : > { %476 = vmatmul.mubr.f32.gmra.mrb[20].mxu0 %v197_v6  ;;  %556 = vmatmul.mubr.f32.gmra.mrb[20].mxu1 %v229_v7 }
  0x54   : > { %764 = vmatprep.mubr.msk.f32.mxu0 %vm264_vm0, %v200_v8  ;;  %780 = vmatprep.mubr.msk.f32.mxu1 %vm264_vm0, %v232_v9 }
  0x57   : > { %481 = vmatmul.mubr.f32.gmra.mrb[22].mxu0 %v199_v10  ;;  %561 = vmatmul.mubr.f32.gmra.mrb[22].mxu1 %v231_v11 }
  0x58   : > { %765 = vmatprep.mubr.msk.f32.mxu0 %vm264_vm0, %v202_v12  ;;  %781 = vmatprep.mubr.msk.f32.mxu1 %vm264_vm0, %v234_v13 }
  0x5b   : > { %486 = vmatmul.mubr.f32.gmra.mrb[24].mxu0 %v201_v14  ;;  %566 = vmatmul.mubr.f32.gmra.mrb[24].mxu1 %v233_v15 }
  0x5c   : > { %766 = vmatprep.mubr.msk.f32.mxu0 %vm264_vm0, %v204_v16  ;;  %782 = vmatprep.mubr.msk.f32.mxu1 %vm264_vm0, %v236_v17 }
  0x5f   : > { %491 = vmatmul.mubr.f32.gmra.mrb[26].mxu0 %v203_v18  ;;  %571 = vmatmul.mubr.f32.gmra.mrb[26].mxu1 %v235_v19 }
  0x60   : > { %767 = vmatprep.mubr.msk.f32.mxu0 %vm264_vm0, %v206_v20  ;;  %783 = vmatprep.mubr.msk.f32.mxu1 %vm264_vm0, %v238_v21 }
  0x63   : > { %496 = vmatmul.mubr.f32.gmra.mrb[28].mxu0 %v205_v22  ;;  %576 = vmatmul.mubr.f32.gmra.mrb[28].mxu1 %v237_v23 }
  0x64   : > { %768 = vmatprep.mubr.msk.f32.mxu0 %vm264_vm0, %v208_v24  ;;  %784 = vmatprep.mubr.msk.f32.mxu1 %vm264_vm0, %v240_v25 }
  0x67   : > { %501 = vmatmul.mubr.f32.gmra.mrb[30].mxu0 %v207_v26  ;;  %581 = vmatmul.mubr.f32.gmra.mrb[30].mxu1 %v239_v27 }
  0xfe   : > { %v427_v34 = vpop.f32.mrb[0].mxu0  ;;  %v507_v35 = vpop.f32.mrb[0].mxu1 }
  0xff   : > { %v428_v36 = vadd.f32 %v427_v34, %v1058_v32  ;;  %v508_v38 = vadd.f32 %v507_v35, %v1058_v32  ;;  %v429_v39 = vpop.f32.mrb[1].mxu0  ;;  %v509_v40 = vpop.f32.mrb[1].mxu1 }
 0x101   : > { %v586_v41 = vmax.f32 %v428_v36, 0.0  ;;  %v602_v42 = vmax.f32 %v508_v38, 0.0 }
 0x102   : > { %v432_v43 = vpop.f32.mrb[2].mxu0  ;;  %v512_v44 = vpop.f32.mrb[2].mxu1 }
 0x103   : > { %v622_v45 = vadd.f32 %v1062_v37, %v586_v41  ;;  %v638_v46 = vadd.f32 %v1062_v37, %v602_v42  ;;  %v433_v47 = vadd.f32 %v432_v43, %v1058_v32  ;;  %v513_v48 = vadd.f32 %v512_v44, %v1058_v32  ;;  %v434_v49 = vpop.f32.mrb[3].mxu0  ;;  %v514_v50 = vpop.f32.mrb[3].mxu1 }
 0x105   : > { %655 = vst.msk [vmem:[%s1068_s8] sm:$0xff] %vm654_vm1, %v622_v45  ;;  %671 = vst.msk [vmem:[%s1068_s8 + $0x80] sm:$0xff] %vm654_vm1, %v638_v46  ;;  %v587_v51 = vmax.f32 %v433_v47, 0.0  ;;  %v603_v52 = vmax.f32 %v513_v48, 0.0 }
 0x106   : > { %v437_v53 = vpop.f32.mrb[4].mxu0  ;;  %v517_v54 = vpop.f32.mrb[4].mxu1 }
 0x107   : > { %v623_v55 = vadd.f32 %v1062_v37, %v587_v51  ;;  %v639_v56 = vadd.f32 %v1062_v37, %v603_v52  ;;  %v438_v57 = vadd.f32 %v437_v53, %v1058_v32  ;;  %v518_v58 = vadd.f32 %v517_v54, %v1058_v32  ;;  %v439_v59 = vpop.f32.mrb[5].mxu0  ;;  %v519_v60 = vpop.f32.mrb[5].mxu1 }
 0x109   : > { %656 = vst.msk [vmem:[%s1068_s8 + $0x8] sm:$0xff] %vm654_vm1, %v623_v55  ;;  %672 = vst.msk [vmem:[%s1068_s8 + $0x88] sm:$0xff] %vm654_vm1, %v639_v56  ;;  %v588_v61 = vmax.f32 %v438_v57, 0.0  ;;  %v604_v62 = vmax.f32 %v518_v58, 0.0 }
 0x10a   : > { %v442_v63 = vpop.f32.mrb[6].mxu0  ;;  %v522_v0 = vpop.f32.mrb[6].mxu1 }
 0x10b   : > { %v624_v1 = vadd.f32 %v1062_v37, %v588_v61  ;;  %v640_v2 = vadd.f32 %v1062_v37, %v604_v62  ;;  %v443_v3 = vadd.f32 %v442_v63, %v1058_v32  ;;  %v523_v4 = vadd.f32 %v522_v0, %v1058_v32  ;;  %v444_v5 = vpop.f32.mrb[7].mxu0  ;;  %v524_v6 = vpop.f32.mrb[7].mxu1 }
 0x10d   : > { %657 = vst.msk [vmem:[%s1068_s8 + $0x10] sm:$0xff] %vm654_vm1, %v624_v1  ;;  %673 = vst.msk [vmem:[%s1068_s8 + $0x90] sm:$0xff] %vm654_vm1, %v640_v2  ;;  %v589_v7 = vmax.f32 %v443_v3, 0.0  ;;  %v605_v8 = vmax.f32 %v523_v4, 0.0 }
 0x10e   : > { %v447_v9 = vpop.f32.mrb[8].mxu0  ;;  %v527_v10 = vpop.f32.mrb[8].mxu1 }
 0x10f   : > { %v625_v11 = vadd.f32 %v1062_v37, %v589_v7  ;;  %v641_v12 = vadd.f32 %v1062_v37, %v605_v8  ;;  %v448_v13 = vadd.f32 %v447_v9, %v1058_v32  ;;  %v528_v14 = vadd.f32 %v527_v10, %v1058_v32  ;;  %v449_v15 = vpop.f32.mrb[9].mxu0  ;;  %v529_v16 = vpop.f32.mrb[9].mxu1 }
 0x111   : > { %658 = vst.msk [vmem:[%s1068_s8 + $0x18] sm:$0xff] %vm654_vm1, %v625_v11  ;;  %674 = vst.msk [vmem:[%s1068_s8 + $0x98] sm:$0xff] %vm654_vm1, %v641_v12  ;;  %v590_v17 = vmax.f32 %v448_v13, 0.0  ;;  %v606_v18 = vmax.f32 %v528_v14, 0.0 }
 0x112   : > { %v452_v19 = vpop.f32.mrb[10].mxu0  ;;  %v532_v20 = vpop.f32.mrb[10].mxu1 }
 0x113   : > { %v626_v21 = vadd.f32 %v1062_v37, %v590_v17  ;;  %v642_v22 = vadd.f32 %v1062_v37, %v606_v18  ;;  %v453_v23 = vadd.f32 %v452_v19, %v1058_v32  ;;  %v533_v24 = vadd.f32 %v532_v20, %v1058_v32  ;;  %v454_v25 = vpop.f32.mrb[11].mxu0  ;;  %v534_v26 = vpop.f32.mrb[11].mxu1 }
 0x115   : > { %659 = vst.msk [vmem:[%s1068_s8 + $0x20] sm:$0xff] %vm654_vm1, %v626_v21  ;;  %675 = vst.msk [vmem:[%s1068_s8 + $0xa0] sm:$0xff] %vm654_vm1, %v642_v22  ;;  %v591_v27 = vmax.f32 %v453_v23, 0.0  ;;  %v607_v28 = vmax.f32 %v533_v24, 0.0 }
 0x116   : > { %v457_v29 = vpop.f32.mrb[12].mxu0  ;;  %v537_v30 = vpop.f32.mrb[12].mxu1 }
 0x117   : > { %v627_v31 = vadd.f32 %v1062_v37, %v591_v27  ;;  %v643_v33 = vadd.f32 %v1062_v37, %v607_v28  ;;  %v458_v34 = vadd.f32 %v457_v29, %v1058_v32  ;;  %v538_v35 = vadd.f32 %v537_v30, %v1058_v32  ;;  %v459_v36 = vpop.f32.mrb[13].mxu0  ;;  %v539_v38 = vpop.f32.mrb[13].mxu1 }
 0x119   : > { %660 = vst.msk [vmem:[%s1068_s8 + $0x28] sm:$0xff] %vm654_vm1, %v627_v31  ;;  %676 = vst.msk [vmem:[%s1068_s8 + $0xa8] sm:$0xff] %vm654_vm1, %v643_v33  ;;  %v592_v39 = vmax.f32 %v458_v34, 0.0  ;;  %v608_v40 = vmax.f32 %v538_v35, 0.0 }
 0x11a   : > { %v462_v41 = vpop.f32.mrb[14].mxu0  ;;  %v542_v42 = vpop.f32.mrb[14].mxu1 }
 0x11b   : > { %v628_v43 = vadd.f32 %v1062_v37, %v592_v39  ;;  %v644_v44 = vadd.f32 %v1062_v37, %v608_v40  ;;  %v463_v45 = vadd.f32 %v462_v41, %v1058_v32  ;;  %v543_v46 = vadd.f32 %v542_v42, %v1058_v32  ;;  %v464_v47 = vpop.f32.mrb[15].mxu0  ;;  %v544_v48 = vpop.f32.mrb[15].mxu1 }
 0x11d   : > { %661 = vst.msk [vmem:[%s1068_s8 + $0x30] sm:$0xff] %vm654_vm1, %v628_v43  ;;  %677 = vst.msk [vmem:[%s1068_s8 + $0xb0] sm:$0xff] %vm654_vm1, %v644_v44  ;;  %v593_v49 = vmax.f32 %v463_v45, 0.0  ;;  %v609_v50 = vmax.f32 %v543_v46, 0.0 }
 0x11e   : > { %v467_v51 = vpop.f32.mrb[16].mxu0  ;;  %v547_v52 = vpop.f32.mrb[16].mxu1 }
 0x11f   : > { %v629_v53 = vadd.f32 %v1062_v37, %v593_v49  ;;  %v645_v54 = vadd.f32 %v1062_v37, %v609_v50  ;;  %v468_v55 = vadd.f32 %v467_v51, %v1058_v32  ;;  %v548_v56 = vadd.f32 %v547_v52, %v1058_v32  ;;  %v469_v57 = vpop.f32.mrb[17].mxu0  ;;  %v549_v58 = vpop.f32.mrb[17].mxu1 }
 0x121   : > { %662 = vst.msk [vmem:[%s1068_s8 + $0x38] sm:$0xff] %vm654_vm1, %v629_v53  ;;  %678 = vst.msk [vmem:[%s1068_s8 + $0xb8] sm:$0xff] %vm654_vm1, %v645_v54  ;;  %v594_v59 = vmax.f32 %v468_v55, 0.0  ;;  %v610_v60 = vmax.f32 %v548_v56, 0.0 }
 0x122   : > { %v472_v61 = vpop.f32.mrb[18].mxu0  ;;  %v552_v62 = vpop.f32.mrb[18].mxu1 }
 0x123   : > { %v630_v63 = vadd.f32 %v1062_v37, %v594_v59  ;;  %v646_v0 = vadd.f32 %v1062_v37, %v610_v60  ;;  %v473_v1 = vadd.f32 %v472_v61, %v1058_v32  ;;  %v553_v2 = vadd.f32 %v552_v62, %v1058_v32  ;;  %v474_v3 = vpop.f32.mrb[19].mxu0  ;;  %v554_v4 = vpop.f32.mrb[19].mxu1 }
 0x125   : > { %663 = vst.msk [vmem:[%s1068_s8 + $0x40] sm:$0xff] %vm654_vm1, %v630_v63  ;;  %679 = vst.msk [vmem:[%s1068_s8 + $0xc0] sm:$0xff] %vm654_vm1, %v646_v0  ;;  %v595_v5 = vmax.f32 %v473_v1, 0.0  ;;  %v611_v6 = vmax.f32 %v553_v2, 0.0 }
 0x126   : > { %v477_v7 = vpop.f32.mrb[20].mxu0  ;;  %v557_v8 = vpop.f32.mrb[20].mxu1 }
 0x127   : > { %v631_v9 = vadd.f32 %v1062_v37, %v595_v5  ;;  %v647_v10 = vadd.f32 %v1062_v37, %v611_v6  ;;  %v478_v11 = vadd.f32 %v477_v7, %v1058_v32  ;;  %v558_v12 = vadd.f32 %v557_v8, %v1058_v32  ;;  %v479_v13 = vpop.f32.mrb[21].mxu0  ;;  %v559_v14 = vpop.f32.mrb[21].mxu1 }
 0x129   : > { %664 = vst.msk [vmem:[%s1068_s8 + $0x48] sm:$0xff] %vm654_vm1, %v631_v9  ;;  %680 = vst.msk [vmem:[%s1068_s8 + $0xc8] sm:$0xff] %vm654_vm1, %v647_v10  ;;  %v596_v15 = vmax.f32 %v478_v11, 0.0  ;;  %v612_v16 = vmax.f32 %v558_v12, 0.0 }
 0x12a   : > { %v482_v17 = vpop.f32.mrb[22].mxu0  ;;  %v562_v18 = vpop.f32.mrb[22].mxu1 }
 0x12b   : > { %v632_v19 = vadd.f32 %v1062_v37, %v596_v15  ;;  %v648_v20 = vadd.f32 %v1062_v37, %v612_v16  ;;  %v483_v21 = vadd.f32 %v482_v17, %v1058_v32  ;;  %v563_v22 = vadd.f32 %v562_v18, %v1058_v32  ;;  %v484_v23 = vpop.f32.mrb[23].mxu0  ;;  %v564_v24 = vpop.f32.mrb[23].mxu1 }
 0x12d   : > { %665 = vst.msk [vmem:[%s1068_s8 + $0x50] sm:$0xff] %vm654_vm1, %v632_v19  ;;  %681 = vst.msk [vmem:[%s1068_s8 + $0xd0] sm:$0xff] %vm654_vm1, %v648_v20  ;;  %v597_v25 = vmax.f32 %v483_v21, 0.0  ;;  %v613_v26 = vmax.f32 %v563_v22, 0.0 }
 0x12e   : > { %v487_v27 = vpop.f32.mrb[24].mxu0  ;;  %v567_v28 = vpop.f32.mrb[24].mxu1 }
 0x12f   : > { %v633_v29 = vadd.f32 %v1062_v37, %v597_v25  ;;  %v649_v30 = vadd.f32 %v1062_v37, %v613_v26  ;;  %v488_v31 = vadd.f32 %v487_v27, %v1058_v32  ;;  %v568_v33 = vadd.f32 %v567_v28, %v1058_v32  ;;  %v489_v34 = vpop.f32.mrb[25].mxu0  ;;  %v569_v35 = vpop.f32.mrb[25].mxu1 }
 0x131   : > { %666 = vst.msk [vmem:[%s1068_s8 + $0x58] sm:$0xff] %vm654_vm1, %v633_v29  ;;  %682 = vst.msk [vmem:[%s1068_s8 + $0xd8] sm:$0xff] %vm654_vm1, %v649_v30  ;;  %v598_v36 = vmax.f32 %v488_v31, 0.0  ;;  %v614_v38 = vmax.f32 %v568_v33, 0.0 }
 0x132   : > { %v492_v39 = vpop.f32.mrb[26].mxu0  ;;  %v572_v40 = vpop.f32.mrb[26].mxu1 }
 0x133   : > { %v634_v41 = vadd.f32 %v1062_v37, %v598_v36  ;;  %v650_v42 = vadd.f32 %v1062_v37, %v614_v38  ;;  %v493_v43 = vadd.f32 %v492_v39, %v1058_v32  ;;  %v573_v44 = vadd.f32 %v572_v40, %v1058_v32  ;;  %v494_v45 = vpop.f32.mrb[27].mxu0  ;;  %v574_v46 = vpop.f32.mrb[27].mxu1 }
 0x135   : > { %667 = vst.msk [vmem:[%s1068_s8 + $0x60] sm:$0xff] %vm654_vm1, %v634_v41  ;;  %683 = vst.msk [vmem:[%s1068_s8 + $0xe0] sm:$0xff] %vm654_vm1, %v650_v42  ;;  %v599_v47 = vmax.f32 %v493_v43, 0.0  ;;  %v615_v48 = vmax.f32 %v573_v44, 0.0 }
 0x136   : > { %v497_v49 = vpop.f32.mrb[28].mxu0  ;;  %v577_v50 = vpop.f32.mrb[28].mxu1 }
 0x137   : > { %v635_v51 = vadd.f32 %v1062_v37, %v599_v47  ;;  %v651_v52 = vadd.f32 %v1062_v37, %v615_v48  ;;  %v498_v53 = vadd.f32 %v497_v49, %v1058_v32  ;;  %v578_v54 = vadd.f32 %v577_v50, %v1058_v32  ;;  %v499_v55 = vpop.f32.mrb[29].mxu0  ;;  %v579_v56 = vpop.f32.mrb[29].mxu1 }
 0x139   : > { %668 = vst.msk [vmem:[%s1068_s8 + $0x68] sm:$0xff] %vm654_vm1, %v635_v51  ;;  %684 = vst.msk [vmem:[%s1068_s8 + $0xe8] sm:$0xff] %vm654_vm1, %v651_v52  ;;  %v600_v57 = vmax.f32 %v498_v53, 0.0  ;;  %v616_v58 = vmax.f32 %v578_v54, 0.0 }
 0x13a   : > { %v502_v59 = vpop.f32.mrb[30].mxu0  ;;  %v582_v60 = vpop.f32.mrb[30].mxu1 }
 0x13b   : > { %v636_v61 = vadd.f32 %v1062_v37, %v600_v57  ;;  %v652_v62 = vadd.f32 %v1062_v37, %v616_v58  ;;  %v503_v63 = vadd.f32 %v502_v59, %v1058_v32  ;;  %v583_v0 = vadd.f32 %v582_v60, %v1058_v32  ;;  %v504_v1 = vpop.f32.mrb[31].mxu0  ;;  %v584_v2 = vpop.f32.mrb[31].mxu1 }
 0x13d   : > { %669 = vst.msk [vmem:[%s1068_s8 + $0x70] sm:$0xff] %vm654_vm1, %v636_v61  ;;  %685 = vst.msk [vmem:[%s1068_s8 + $0xf0] sm:$0xff] %vm654_vm1, %v652_v62  ;;  %v601_v3 = vmax.f32 %v503_v63, 0.0  ;;  %v617_v4 = vmax.f32 %v583_v0, 0.0 }
 0x13f   : > { %v637_v5 = vadd.f32 %v1062_v37, %v601_v3  ;;  %v653_v6 = vadd.f32 %v1062_v37, %v617_v4 }
 0x141   : > { %670 = vst.msk [vmem:[%s1068_s8 + $0x78] sm:$0xff] %vm654_vm1, %v637_v5  ;;  %686 = vst.msk [vmem:[%s1068_s8 + $0xf8] sm:$0xff] %vm654_vm1, %v653_v6 }
 0x142 PF: > { %s13_s12 = sadd.s32 1, %s848_s12  }
 0x143   : > { %p10_p4 = scmp.ge.s32.totalorder %s13_s12, 4  }
 0x145   :  { %12 = sbr.rel (!%p10_p4) target bundleno = 1 (0x1), region = 62 }

// kernel: base_cnn_forward.6
= control target key start
LH: loop header
LB: loop body
LE: loop exit
PB: predicated region body
PF: predicated region fallthrough
CT: control target
= control target key end

     0   :  { %vm103_vm0 = vcmask 261120   ;;  %vm478_vm1 = vcmask 523264   ;;  %s1106_s1 = inlined_call_operand.vmem [shape: f32[288,64], index: 1, kind: input, shape index: {}]   ;;  %s1107_s0 = inlined_call_operand.vmem [shape: f32[128,288], index: 0, kind: input, shape index: {}]   ;;  %s1108_s2 = inlined_call_operand.vmem [shape: f32[2,64], index: 2, kind: input, shape index: {}]   ;;  %s1109_s3 = inlined_call_operand.vmem [shape: f32[128,64], index: 3, kind: output, shape index: {}]  }
   0x1   :  { %v78_v0 = vld [vmem:[%s1106_s1 + $0x80] sm:$0xff]  ;;  %v79_v1 = vld [vmem:[%s1106_s1 + $0x88] sm:$0xff]  ;;  %v80_v5 = vld [vmem:[%s1106_s1 + $0x90] sm:$0xff] }
   0x2   :  { %v62_v2 = vld [vmem:[%s1106_s1] sm:$0xff]  ;;  %v647_v3 = vpack.c.bf16 %v79_v1, %v78_v0  ;;  %v63_v4 = vld [vmem:[%s1106_s1 + $0x8] sm:$0xff]  ;;  %v81_v6 = vld [vmem:[%s1106_s1 + $0x98] sm:$0xff] }
   0x3   :  { %v649_v7 = vpack.c.bf16 %v63_v4, %v62_v2  ;;  %v651_v8 = vpack.c.bf16 %v81_v6, %v80_v5  ;;  %v64_v9 = vld [vmem:[%s1106_s1 + $0x10] sm:$0xff]  ;;  %v65_v10 = vld [vmem:[%s1106_s1 + $0x18] sm:$0xff]  ;;  %v82_v11 = vld [vmem:[%s1106_s1 + $0xa0] sm:$0xff] }
   0x4   :  { %648 = vmatprep.subr.bf16.mxu0 %v647_v3  ;;  %687 = vmatprep.subr.bf16.mxu1 %v647_v3  ;;  %v83_v12 = vld [vmem:[%s1106_s1 + $0xa8] sm:$0xff]  ;;  %v653_v13 = vpack.c.bf16 %v65_v10, %v64_v9  ;;  %v66_v15 = vld [vmem:[%s1106_s1 + $0x20] sm:$0xff]  ;;  %v84_v17 = vld [vmem:[%s1106_s1 + $0xb0] sm:$0xff] }
   0x5   :  { %650 = vmatpush3.bf16.msra.mxu0 %v649_v7  ;;  %695 = vmatpush3.bf16.msra.mxu1 %v649_v7  ;;  %v655_v14 = vpack.c.bf16 %v83_v12, %v82_v11  ;;  %v67_v16 = vld [vmem:[%s1106_s1 + $0x28] sm:$0xff]  ;;  %v85_v18 = vld [vmem:[%s1106_s1 + $0xb8] sm:$0xff]  ;;  %v68_v21 = vld [vmem:[%s1106_s1 + $0x30] sm:$0xff] }
   0x6   :  { %652 = vmatprep.subr.bf16.mxu0 %v651_v8  ;;  %688 = vmatprep.subr.bf16.mxu1 %v651_v8  ;;  %v657_v19 = vpack.c.bf16 %v67_v16, %v66_v15  ;;  %v659_v20 = vpack.c.bf16 %v85_v18, %v84_v17  ;;  %v69_v22 = vld [vmem:[%s1106_s1 + $0x38] sm:$0xff]  ;;  %v86_v23 = vld [vmem:[%s1106_s1 + $0xc0] sm:$0xff]  ;;  %v87_v24 = vld [vmem:[%s1106_s1 + $0xc8] sm:$0xff] }
   0x7   :  { %v15_v25 = vld [vmem:[%s1107_s0 + $0x8] sm:$0xff]  ;;  %v661_v27 = vpack.c.bf16 %v69_v22, %v68_v21  ;;  %v663_v28 = vpack.c.bf16 %v87_v24, %v86_v23  ;;  %v70_v29 = vld [vmem:[%s1106_s1 + $0x40] sm:$0xff]  ;;  %v88_v31 = vld [vmem:[%s1106_s1 + $0xd0] sm:$0xff] }
   0x8   :  { %216 = vmatprep.mubr.f32.mxu0 %v15_v25  ;;  %v51_v26 = vld [vmem:[%s1107_s0 + $0x128] sm:$0xff]  ;;  %v89_v32 = vld [vmem:[%s1106_s1 + $0xd8] sm:$0xff]  ;;  %v72_v35 = vld [vmem:[%s1106_s1 + $0x50] sm:$0xff] }
   0x9   :  { %654 = vmatpush3.bf16.msra.mxu0 %v653_v13  ;;  %696 = vmatpush3.bf16.msra.mxu1 %v653_v13  ;;  %v71_v30 = vld [vmem:[%s1106_s1 + $0x48] sm:$0xff]  ;;  %v667_v34 = vpack.c.bf16 %v89_v32, %v88_v31  ;;  %v73_v36 = vld [vmem:[%s1106_s1 + $0x58] sm:$0xff]  ;;  %v90_v37 = vld [vmem:[%s1106_s1 + $0xe0] sm:$0xff] }
   0xa   :  { %656 = vmatprep.subr.bf16.mxu0 %v655_v14  ;;  %689 = vmatprep.subr.bf16.mxu1 %v655_v14  ;;  %v665_v33 = vpack.c.bf16 %v71_v30, %v70_v29  ;;  %v91_v38 = vld [vmem:[%s1106_s1 + $0xe8] sm:$0xff]  ;;  %v669_v39 = vpack.c.bf16 %v73_v36, %v72_v35  ;;  %v74_v41 = vld [vmem:[%s1106_s1 + $0x60] sm:$0xff]  ;;  %v92_v43 = vld [vmem:[%s1106_s1 + $0xf0] sm:$0xff] }
   0xb   :  { %276 = vmatprep.mubr.f32.mxu1 %v51_v26  ;;  %v671_v40 = vpack.c.bf16 %v91_v38, %v90_v37  ;;  %v75_v42 = vld [vmem:[%s1106_s1 + $0x68] sm:$0xff]  ;;  %v93_v44 = vld [vmem:[%s1106_s1 + $0xf8] sm:$0xff]  ;;  %v76_v47 = vld [vmem:[%s1106_s1 + $0x70] sm:$0xff] }
   0xc   :  { %v673_v45 = vpack.c.bf16 %v75_v42, %v74_v41  ;;  %v675_v46 = vpack.c.bf16 %v93_v44, %v92_v43  ;;  %v77_v48 = vld [vmem:[%s1106_s1 + $0x78] sm:$0xff]  ;;  %v94_v49 = vld [vmem:[%s1106_s1 + $0x100] sm:$0xff]  ;;  %v95_v50 = vld [vmem:[%s1106_s1 + $0x108] sm:$0xff] }
   0xd   :  { %658 = vmatpush3.bf16.msra.mxu0 %v657_v19  ;;  %697 = vmatpush3.bf16.msra.mxu1 %v657_v19  ;;  %v677_v51 = vpack.c.bf16 %v77_v48, %v76_v47  ;;  %v679_v52 = vpack.c.bf16 %v95_v50, %v94_v49  ;;  %v96_v53 = vld [vmem:[%s1106_s1 + $0x110] sm:$0xff]  ;;  %v97_v54 = vld [vmem:[%s1106_s1 + $0x118] sm:$0xff]  ;;  %v14_v55 = vld [vmem:[%s1107_s0] sm:$0xff] }
   0xe   :  { %660 = vmatprep.subr.bf16.mxu0 %v659_v20  ;;  %690 = vmatprep.subr.bf16.mxu1 %v659_v20  ;;  %v50_v56 = vld [vmem:[%s1107_s0 + $0x120] sm:$0xff]  ;;  %v683_v59 = vpack.c.bf16 %v97_v54, %v96_v53  ;;  %v17_v60 = vld [vmem:[%s1107_s0 + $0x18] sm:$0xff]  ;;  %v20_v0 = vld [vmem:[%s1107_s0 + $0x30] sm:$0xff] }
   0xf   :  { %v18_v57 = vld [vmem:[%s1107_s0 + $0x20] sm:$0xff]  ;;  %v53_v61 = vld [vmem:[%s1107_s0 + $0x138] sm:$0xff]  ;;  %v56_v1 = vld [vmem:[%s1107_s0 + $0x150] sm:$0xff] }
  0x10   :  { %v54_v58 = vld [vmem:[%s1107_s0 + $0x140] sm:$0xff]  ;;  %v21_v62 = vld [vmem:[%s1107_s0 + $0x38] sm:$0xff]  ;;  %v24_v2 = vld [vmem:[%s1107_s0 + $0x50] sm:$0xff] }
  0x11   :  { %662 = vmatpush3.bf16.msra.mxu0 %v661_v27  ;;  %698 = vmatpush3.bf16.msra.mxu1 %v661_v27  ;;  %v57_v63 = vld [vmem:[%s1107_s0 + $0x158] sm:$0xff]  ;;  %v60_v3 = vld [vmem:[%s1107_s0 + $0x170] sm:$0xff]  ;;  %v23_v4 = vld [vmem:[%s1107_s0 + $0x48] sm:$0xff] }
  0x12   :  { %664 = vmatprep.subr.bf16.mxu0 %v663_v28  ;;  %691 = vmatprep.subr.bf16.mxu1 %v663_v28  ;;  %v59_v5 = vld [vmem:[%s1107_s0 + $0x168] sm:$0xff]  ;;  %v16_v7 = vld [vmem:[%s1107_s0 + $0x10] sm:$0xff]  ;;  %v26_v8 = vld [vmem:[%s1107_s0 + $0x60] sm:$0xff] }
  0x13   :  { %v27_v6 = vld [vmem:[%s1107_s0 + $0x68] sm:$0xff]  ;;  %v30_v10 = vld [vmem:[%s1107_s0 + $0x80] sm:$0xff]  ;;  %v29_v12 = vld [vmem:[%s1107_s0 + $0x78] sm:$0xff] }
  0x14   :  { %v19_v9 = vld [vmem:[%s1107_s0 + $0x28] sm:$0xff]  ;;  %v22_v11 = vld [vmem:[%s1107_s0 + $0x40] sm:$0xff]  ;;  %v25_v13 = vld [vmem:[%s1107_s0 + $0x58] sm:$0xff] }
  0x15   :  { %666 = vmatpush3.bf16.msra.mxu0 %v665_v33  ;;  %699 = vmatpush3.bf16.msra.mxu1 %v665_v33  ;;  %v33_v14 = vld [vmem:[%s1107_s0 + $0x98] sm:$0xff]  ;;  %v28_v15 = vld [vmem:[%s1107_s0 + $0x70] sm:$0xff]  ;;  %v31_v17 = vld [vmem:[%s1107_s0 + $0x88] sm:$0xff] }
  0x16   :  { %668 = vmatprep.subr.bf16.mxu0 %v667_v34  ;;  %692 = vmatprep.subr.bf16.mxu1 %v667_v34  ;;  %v32_v16 = vld [vmem:[%s1107_s0 + $0x90] sm:$0xff]  ;;  %v34_v19 = vld [vmem:[%s1107_s0 + $0xa0] sm:$0xff]  ;;  %v35_v20 = vld [vmem:[%s1107_s0 + $0xa8] sm:$0xff] }
  0x17   :  { %v36_v18 = vld [vmem:[%s1107_s0 + $0xb0] sm:$0xff]  ;;  %v37_v21 = vld [vmem:[%s1107_s0 + $0xb8] sm:$0xff]  ;;  %v39_v22 = vld [vmem:[%s1107_s0 + $0xc8] sm:$0xff] }
  0x18   :  { %v40_v23 = vld [vmem:[%s1107_s0 + $0xd0] sm:$0xff]  ;;  %v38_v24 = vld [vmem:[%s1107_s0 + $0xc0] sm:$0xff]  ;;  %v43_v25 = vld [vmem:[%s1107_s0 + $0xe8] sm:$0xff] }
  0x19   :  { %670 = vmatpush3.bf16.msra.mxu0 %v669_v39  ;;  %700 = vmatpush3.bf16.msra.mxu1 %v669_v39  ;;  %v42_v26 = vld [vmem:[%s1107_s0 + $0xe0] sm:$0xff]  ;;  %v41_v28 = vld [vmem:[%s1107_s0 + $0xd8] sm:$0xff]  ;;  %v52_v31 = vld [vmem:[%s1107_s0 + $0x130] sm:$0xff] }
  0x1a   :  { %672 = vmatprep.subr.bf16.mxu0 %v671_v40  ;;  %693 = vmatprep.subr.bf16.mxu1 %v671_v40  ;;  %v46_v27 = vld [vmem:[%s1107_s0 + $0x100] sm:$0xff]  ;;  %v49_v29 = vld [vmem:[%s1107_s0 + $0x118] sm:$0xff]  ;;  %v44_v32 = vld [vmem:[%s1107_s0 + $0xf0] sm:$0xff]  ;;  %v99_v40 = vlaneseq }
  0x1b   :  { %v45_v30 = vld [vmem:[%s1107_s0 + $0xf8] sm:$0xff]  ;;  %v55_v33 = vld [vmem:[%s1107_s0 + $0x148] sm:$0xff]  ;;  %v48_v34 = vld [vmem:[%s1107_s0 + $0x110] sm:$0xff] }
  0x1c   :  { %v58_v35 = vld [vmem:[%s1107_s0 + $0x160] sm:$0xff]  ;;  %v47_v36 = vld [vmem:[%s1107_s0 + $0x108] sm:$0xff]  ;;  %v61_v37 = vld [vmem:[%s1107_s0 + $0x178] sm:$0xff]  ;;  %v100_v47 = vshrl.u32 %v99_v40, 7 }
  0x1d   :  { %674 = vmatpush3.bf16.msra.mxu0 %v673_v45  ;;  %701 = vmatpush3.bf16.msra.mxu1 %v673_v45 }
  0x1e   :  { %676 = vmatprep.subr.bf16.mxu0 %v675_v46  ;;  %694 = vmatprep.subr.bf16.mxu1 %v675_v46  ;;  %v101_v54 = vsub.s32 0, %v100_v47 }
  0x21   :  { %678 = vmatpush3.bf16.msra.mxu0 %v677_v51  ;;  %702 = vmatpush3.bf16.msra.mxu1 %v677_v51 }
  0x22   :  { %680 = vmatprep.subr.bf16.mxu1 %v679_v52 }
  0x24   :  { %217 = vmatmul.mubr.f32.vlgmr.msra.gmra.mrb[0].mxu0 %v14_v55  ;;  %277 = vmatmul.mubr.f32.vlgmr.msra.gmra.mrb[0].mxu1 %v50_v56 }
  0x25   :  { %221 = vmatprep.mubr.f32.mxu0 %v18_v57  ;;  %281 = vmatprep.mubr.f32.mxu1 %v54_v58  ;;  %v98_v57 = vld [vmem:[%s1108_s2] sm:$0x3] }
  0x26   :  { %682 = vmatpush3.bf16.msra.mxu1 %v679_v52 }
  0x27   :  { %684 = vmatprep.subr.bf16.mxu1 %v683_v59 }
  0x28   :  { %222 = vmatmul.mubr.f32.gmra.mrb[2].mxu0 %v17_v60  ;;  %282 = vmatmul.mubr.f32.gmra.mrb[2].mxu1 %v53_v61 }
  0x29   :  { %226 = vmatprep.mubr.f32.mxu0 %v21_v62  ;;  %286 = vmatprep.mubr.f32.mxu1 %v57_v63  ;;  %v1000_v62 = vrot.slane %v98_v57, %v101_v54 }
  0x2a   :  { %686 = vmatpush3.bf16.msra.mxu1 %v683_v59 }
  0x2c   :  { %227 = vmatmul.mubr.f32.gmra.mrb[4].mxu0 %v20_v0  ;;  %287 = vmatmul.mubr.f32.gmra.mrb[4].mxu1 %v56_v1  ;;  %v460_v1 = vsub.s32 1, %v100_v47 }
  0x2d   :  { %231 = vmatprep.mubr.f32.mxu0 %v24_v2  ;;  %291 = vmatprep.mubr.f32.mxu1 %v60_v3 }
  0x30   :  { %232 = vmatmul.mubr.f32.gmra.mrb[6].mxu0 %v23_v4  ;;  %292 = vmatmul.mubr.f32.gmra.mrb[6].mxu1 %v59_v5 }
  0x31   :  { %236 = vmatprep.mubr.f32.mxu0 %v27_v6  ;;  %623 = vmatprep.mubr.msk.f32.mxu1 %vm103_vm0, %v16_v7 }
  0x34   :  { %237 = vmatmul.mubr.f32.gmra.mrb[8].mxu0 %v26_v8  ;;  %624 = vmatmul.mubr.msk.f32.vlgmr.msra.gmra.mrb[8].mxu1 %vm103_vm0, %v19_v9  ;;  %v1006_v9 = vrot.slane %v98_v57, %v460_v1 }
  0x35   :  { %241 = vmatprep.mubr.f32.mxu0 %v30_v10  ;;  %626 = vmatprep.mubr.msk.f32.mxu1 %vm103_vm0, %v22_v11 }
  0x38   :  { %242 = vmatmul.mubr.f32.gmra.mrb[10].mxu0 %v29_v12  ;;  %627 = vmatmul.mubr.msk.f32.gmra.mrb[10].mxu1 %vm103_vm0, %v25_v13 }
  0x39   :  { %246 = vmatprep.mubr.f32.mxu0 %v33_v14  ;;  %629 = vmatprep.mubr.msk.f32.mxu1 %vm103_vm0, %v28_v15 }
  0x3c   :  { %247 = vmatmul.mubr.f32.gmra.mrb[12].mxu0 %v32_v16  ;;  %630 = vmatmul.mubr.msk.f32.gmra.mrb[12].mxu1 %vm103_vm0, %v31_v17 }
  0x3d   :  { %251 = vmatprep.mubr.f32.mxu0 %v36_v18  ;;  %632 = vmatprep.mubr.msk.f32.mxu1 %vm103_vm0, %v34_v19 }
  0x40   :  { %252 = vmatmul.mubr.f32.gmra.mrb[14].mxu0 %v35_v20  ;;  %633 = vmatmul.mubr.msk.f32.gmra.mrb[14].mxu1 %vm103_vm0, %v37_v21 }
  0x41   :  { %256 = vmatprep.mubr.f32.mxu0 %v39_v22  ;;  %635 = vmatprep.mubr.msk.f32.mxu1 %vm103_vm0, %v40_v23 }
  0x44   :  { %257 = vmatmul.mubr.f32.gmra.mrb[16].mxu0 %v38_v24  ;;  %636 = vmatmul.mubr.msk.f32.gmra.mrb[16].mxu1 %vm103_vm0, %v43_v25 }
  0x45   :  { %261 = vmatprep.mubr.f32.mxu0 %v42_v26  ;;  %638 = vmatprep.mubr.msk.f32.mxu1 %vm103_vm0, %v46_v27 }
  0x48   :  { %262 = vmatmul.mubr.f32.gmra.mrb[18].mxu0 %v41_v28  ;;  %639 = vmatmul.mubr.msk.f32.gmra.mrb[18].mxu1 %vm103_vm0, %v49_v29 }
  0x49   :  { %266 = vmatprep.mubr.f32.mxu0 %v45_v30  ;;  %641 = vmatprep.mubr.msk.f32.mxu1 %vm103_vm0, %v52_v31 }
  0x4c   :  { %267 = vmatmul.mubr.f32.gmra.mrb[20].mxu0 %v44_v32  ;;  %642 = vmatmul.mubr.msk.f32.gmra.mrb[20].mxu1 %vm103_vm0, %v55_v33 }
  0x4d   :  { %271 = vmatprep.mubr.f32.mxu0 %v48_v34  ;;  %644 = vmatprep.mubr.msk.f32.mxu1 %vm103_vm0, %v58_v35 }
  0x50   :  { %272 = vmatmul.mubr.f32.gmra.mrb[22].mxu0 %v47_v36  ;;  %645 = vmatmul.mubr.msk.f32.gmra.mrb[22].mxu1 %vm103_vm0, %v61_v37 }
  0xf7   :  { %v547_v38 = vpop.f32.mrb[0].mxu0  ;;  %v583_v39 = vpop.f32.mrb[0].mxu1 }
  0xf8   :  { %v548_v41 = vpop.f32.mrb[1].mxu0  ;;  %v584_v42 = vpop.f32.mrb[1].mxu1 }
  0xf9   :  { %v549_v43 = vadd.f32 %v548_v41, %v547_v38  ;;  %v991_v44 = vadd.f32 %v584_v42, %v583_v39 }
  0xfb   :  { %v550_v45 = vpop.f32.mrb[2].mxu0  ;;  %v586_v46 = vpop.f32.mrb[2].mxu1  ;;  %v219_v7 = vadd.f32 %v549_v43, %v1000_v62 }
  0xfc   :  { %v551_v48 = vpop.f32.mrb[3].mxu0  ;;  %v587_v49 = vpop.f32.mrb[3].mxu1 }
  0xfd   :  { %v552_v50 = vadd.f32 %v551_v48, %v550_v45  ;;  %v993_v51 = vadd.f32 %v587_v49, %v586_v46 }
  0xff   :  { %v553_v52 = vpop.f32.mrb[4].mxu0  ;;  %v589_v53 = vpop.f32.mrb[4].mxu1  ;;  %v224_v4 = vadd.f32 %v552_v50, %v1000_v62 }
 0x100   :  { %v554_v55 = vpop.f32.mrb[5].mxu0  ;;  %v590_v56 = vpop.f32.mrb[5].mxu1 }
 0x101   :  { %v555_v58 = vadd.f32 %v554_v55, %v553_v52  ;;  %v998_v59 = vadd.f32 %v590_v56, %v589_v53 }
 0x103   :  { %v556_v60 = vpop.f32.mrb[6].mxu0  ;;  %v592_v61 = vpop.f32.mrb[6].mxu1  ;;  %v229_v19 = vadd.f32 %v555_v58, %v1000_v62 }
 0x104   :  { %v557_v63 = vpop.f32.mrb[7].mxu0  ;;  %v593_v0 = vpop.f32.mrb[7].mxu1 }
 0x105   :  { %v558_v2 = vadd.f32 %v557_v63, %v556_v60  ;;  %v1002_v3 = vadd.f32 %v593_v0, %v592_v61 }
 0x107   :  { %v559_v5 = vpop.f32.mrb[8].mxu0  ;;  %v625_v6 = vpop.f32.mrb[8].mxu1  ;;  %v234_v15 = vadd.f32 %v558_v2, %v1000_v62 }
 0x108   :  { %v369_v8 = vadd.f32 %v625_v6, %v224_v4  ;;  %v560_v10 = vpop.f32.mrb[9].mxu0  ;;  %v363_v11 = vpop.f32.mrb[9].mxu1 }
 0x109   :  { %v561_v12 = vadd.f32 %v560_v10, %v559_v5  ;;  %v364_v13 = vadd.f32 %v363_v11, %v219_v7  ;;  %v284_v11 = vadd.f32 %v993_v51, %v1000_v62 }
 0x10a   :  { %v443_v14 = vmax.f32 %v369_v8, 0.0 }
 0x10b   :  { %v442_v16 = vmax.f32 %v364_v13, 0.0  ;;  %v562_v17 = vpop.f32.mrb[10].mxu0  ;;  %v628_v18 = vpop.f32.mrb[10].mxu1  ;;  %v239_v32 = vadd.f32 %v561_v12, %v1000_v62 }
 0x10c   :  { %v463_v20 = vadd.f32 %v1006_v9, %v443_v14  ;;  %v379_v21 = vadd.f32 %v628_v18, %v234_v15  ;;  %v563_v22 = vpop.f32.mrb[11].mxu0  ;;  %v373_v23 = vpop.f32.mrb[11].mxu1 }
 0x10d   :  { %v462_v24 = vadd.f32 %v1006_v9, %v442_v16  ;;  %v564_v25 = vadd.f32 %v563_v22, %v562_v17  ;;  %v374_v26 = vadd.f32 %v373_v23, %v229_v19  ;;  %v279_v16 = vadd.f32 %v991_v44, %v1000_v62 }
 0x10e   :  { %480 = vst.msk [vmem:[%s1109_s3 + $0x8] sm:$0xff] %vm478_vm1, %v463_v20  ;;  %v445_v27 = vmax.f32 %v379_v21, 0.0 }
 0x10f   :  { %479 = vst.msk [vmem:[%s1109_s3] sm:$0xff] %vm478_vm1, %v462_v24  ;;  %v444_v28 = vmax.f32 %v374_v26, 0.0  ;;  %v565_v29 = vpop.f32.mrb[12].mxu0  ;;  %v244_v30 = vadd.f32 %v564_v25, %v1000_v62  ;;  %v631_v31 = vpop.f32.mrb[12].mxu1  ;;  %v294_v24 = vadd.f32 %v1002_v3, %v1000_v62 }
 0x110   :  { %v465_v33 = vadd.f32 %v1006_v9, %v445_v27  ;;  %v566_v34 = vpop.f32.mrb[13].mxu0  ;;  %v383_v35 = vpop.f32.mrb[13].mxu1 }
 0x111   :  { %v464_v36 = vadd.f32 %v1006_v9, %v444_v28  ;;  %v389_v37 = vadd.f32 %v631_v31, %v244_v30  ;;  %v567_v38 = vadd.f32 %v566_v34, %v565_v29  ;;  %v384_v39 = vadd.f32 %v383_v35, %v239_v32 }
 0x112   :  { %482 = vst.msk [vmem:[%s1109_s3 + $0x18] sm:$0xff] %vm478_vm1, %v465_v33  ;;  %v289_v32 = vadd.f32 %v998_v59, %v1000_v62 }
 0x113   :  { %481 = vst.msk [vmem:[%s1109_s3 + $0x10] sm:$0xff] %vm478_vm1, %v464_v36  ;;  %v447_v40 = vmax.f32 %v389_v37, 0.0  ;;  %v446_v41 = vmax.f32 %v384_v39, 0.0  ;;  %v568_v42 = vpop.f32.mrb[14].mxu0  ;;  %v634_v43 = vpop.f32.mrb[14].mxu1  ;;  %v249_v45 = vadd.f32 %v567_v38, %v1000_v62 }
 0x114   :  { %v569_v46 = vpop.f32.mrb[15].mxu0  ;;  %v393_v47 = vpop.f32.mrb[15].mxu1 }
 0x115   :  { %v467_v48 = vadd.f32 %v1006_v9, %v447_v40  ;;  %v466_v49 = vadd.f32 %v1006_v9, %v446_v41  ;;  %v570_v50 = vadd.f32 %v569_v46, %v568_v42  ;;  %v394_v52 = vadd.f32 %v393_v47, %v249_v45 }
 0x117   :  { %484 = vst.msk [vmem:[%s1109_s3 + $0x28] sm:$0xff] %vm478_vm1, %v467_v48  ;;  %483 = vst.msk [vmem:[%s1109_s3 + $0x20] sm:$0xff] %vm478_vm1, %v466_v49  ;;  %v254_v53 = vadd.f32 %v570_v50, %v1000_v62  ;;  %v448_v54 = vmax.f32 %v394_v52, 0.0  ;;  %v571_v55 = vpop.f32.mrb[16].mxu0  ;;  %v637_v56 = vpop.f32.mrb[16].mxu1 }
 0x118   :  { %v572_v57 = vpop.f32.mrb[17].mxu0  ;;  %v403_v58 = vpop.f32.mrb[17].mxu1 }
 0x119   :  { %v399_v60 = vadd.f32 %v634_v43, %v254_v53  ;;  %v468_v61 = vadd.f32 %v1006_v9, %v448_v54  ;;  %v573_v63 = vadd.f32 %v572_v57, %v571_v55 }
 0x11b   :  { %v449_v0 = vmax.f32 %v399_v60, 0.0  ;;  %485 = vst.msk [vmem:[%s1109_s3 + $0x30] sm:$0xff] %vm478_vm1, %v468_v61  ;;  %v574_v1 = vpop.f32.mrb[18].mxu0  ;;  %v259_v2 = vadd.f32 %v573_v63, %v1000_v62  ;;  %v640_v4 = vpop.f32.mrb[18].mxu1 }
 0x11c   :  { %v575_v5 = vpop.f32.mrb[19].mxu0  ;;  %v413_v6 = vpop.f32.mrb[19].mxu1 }
 0x11d   :  { %v469_v7 = vadd.f32 %v1006_v9, %v449_v0  ;;  %v404_v8 = vadd.f32 %v403_v58, %v259_v2  ;;  %v576_v10 = vadd.f32 %v575_v5, %v574_v1 }
 0x11f   :  { %486 = vst.msk [vmem:[%s1109_s3 + $0x38] sm:$0xff] %vm478_vm1, %v469_v7  ;;  %v450_v12 = vmax.f32 %v404_v8, 0.0  ;;  %v264_v13 = vadd.f32 %v576_v10, %v1000_v62  ;;  %v577_v14 = vpop.f32.mrb[20].mxu0  ;;  %v643_v15 = vpop.f32.mrb[20].mxu1 }
 0x120   :  { %v429_v17 = vadd.f32 %v643_v15, %v284_v11  ;;  %v578_v18 = vpop.f32.mrb[21].mxu0  ;;  %v423_v19 = vpop.f32.mrb[21].mxu1 }
 0x121   :  { %v470_v20 = vadd.f32 %v1006_v9, %v450_v12  ;;  %v409_v21 = vadd.f32 %v637_v56, %v264_v13  ;;  %v579_v51 = vadd.f32 %v578_v18, %v577_v14  ;;  %v424_v22 = vadd.f32 %v423_v19, %v279_v16 }
 0x122   :  { %v455_v23 = vmax.f32 %v429_v17, 0.0 }
 0x123   :  { %487 = vst.msk [vmem:[%s1109_s3 + $0x40] sm:$0xff] %vm478_vm1, %v470_v20  ;;  %v451_v25 = vmax.f32 %v409_v21, 0.0  ;;  %v269_v44 = vadd.f32 %v579_v51, %v1000_v62  ;;  %v454_v26 = vmax.f32 %v424_v22, 0.0  ;;  %v580_v27 = vpop.f32.mrb[22].mxu0  ;;  %v646_v28 = vpop.f32.mrb[22].mxu1 }
 0x124   :  { %v475_v29 = vadd.f32 %v1006_v9, %v455_v23  ;;  %v439_v30 = vadd.f32 %v646_v28, %v294_v24  ;;  %v581_v31 = vpop.f32.mrb[23].mxu0  ;;  %v433_v33 = vpop.f32.mrb[23].mxu1 }
 0x125   :  { %v471_v3 = vadd.f32 %v1006_v9, %v451_v25  ;;  %v414_v34 = vadd.f32 %v413_v6, %v269_v44  ;;  %v474_v35 = vadd.f32 %v1006_v9, %v454_v26  ;;  %v582_v36 = vadd.f32 %v581_v31, %v580_v27 }
 0x126   :  { %492 = vst.msk [vmem:[%s1109_s3 + $0x68] sm:$0xff] %vm478_vm1, %v475_v29  ;;  %v457_v37 = vmax.f32 %v439_v30, 0.0  ;;  %v434_v38 = vadd.f32 %v433_v33, %v289_v32 }
 0x127   :  { %488 = vst.msk [vmem:[%s1109_s3 + $0x48] sm:$0xff] %vm478_vm1, %v471_v3  ;;  %v452_v59 = vmax.f32 %v414_v34, 0.0  ;;  %491 = vst.msk [vmem:[%s1109_s3 + $0x60] sm:$0xff] %vm478_vm1, %v474_v35  ;;  %v274_v39 = vadd.f32 %v582_v36, %v1000_v62 }
 0x128   :  { %v477_v40 = vadd.f32 %v1006_v9, %v457_v37  ;;  %v456_v41 = vmax.f32 %v434_v38, 0.0 }
 0x129   :  { %v472_v42 = vadd.f32 %v1006_v9, %v452_v59  ;;  %v419_v43 = vadd.f32 %v640_v4, %v274_v39 }
 0x12a   :  { %494 = vst.msk [vmem:[%s1109_s3 + $0x78] sm:$0xff] %vm478_vm1, %v477_v40  ;;  %v476_v45 = vadd.f32 %v1006_v9, %v456_v41 }
 0x12b   :  { %489 = vst.msk [vmem:[%s1109_s3 + $0x50] sm:$0xff] %vm478_vm1, %v472_v42  ;;  %v453_v46 = vmax.f32 %v419_v43, 0.0 }
 0x12c   :  { %493 = vst.msk [vmem:[%s1109_s3 + $0x70] sm:$0xff] %vm478_vm1, %v476_v45 }
 0x12d   :  { %v473_v62 = vadd.f32 %v1006_v9, %v453_v46 }
 0x12f   :  { %490 = vst.msk [vmem:[%s1109_s3 + $0x58] sm:$0xff] %vm478_vm1, %v473_v62 }

// kernel: base_cnn_forward.7
= control target key start
LH: loop header
LB: loop body
LE: loop exit
PB: predicated region body
PF: predicated region fallthrough
CT: control target
= control target key end

     0   :  { %vm138_vm0 = vcmask 523264   ;;  %vm454_vm1 = vcmask 261120   ;;  %vm3699_vm2 = vmmov 0   ;;  %vm2617_vm3 = vcmask 80896   ;;  %s5705_s1 = inlined_call_operand.vmem [shape: f32[576,128], index: 1, kind: input, shape index: {}]   ;;  %s5706_s0 = inlined_call_operand.vmem [shape: f32[32,576], index: 0, kind: input, shape index: {}]   ;;  %s5707_s3 = inlined_call_operand.vmem [shape: f32[288,32], index: 3, kind: input, shape index: {}]   ;;  %s5708_s4 = inlined_call_operand.vmem [shape: f32[1152,256], index: 4, kind: input, shape index: {}]   ;;  %s5709_s2 = inlined_call_operand.vmem [shape: f32[2,128], index: 2, kind: input, shape index: {}]   ;;  %s5710_s6 = inlined_call_operand.vmem [shape: f32[1024,64], index: 6, kind: input, shape index: {}]   ;;  %s5711_s5 = inlined_call_operand.vmem [shape: f32[2,256], index: 5, kind: input, shape index: {}]   ;;  %s5712_s8 = inlined_call_operand.vmem [shape: f32[64,64], index: 8, kind: input, shape index: {}]   ;;  %s5713_s7 = inlined_call_operand.vmem [shape: f32[2,64], index: 7, kind: input, shape index: {}]   ;;  %s5714_s10 = inlined_call_operand.vmem [shape: f32[64,10], index: 10, kind: input, shape index: {}]   ;;  %s5715_s9 = inlined_call_operand.vmem [shape: f32[2,64], index: 9, kind: input, shape index: {}]   ;;  %s5716_s11 = inlined_call_operand.vmem [shape: f32[1,10], index: 11, kind: input, shape index: {}]   ;;  %s5717_s12 = inlined_call_operand.vmem [shape: f32[8,10], index: 12, kind: output, shape index: {}]  }
   0x1   :  { %v78_v0 = vld [vmem:[%s5705_s1 + $0x80] sm:$0xff]  ;;  %v79_v1 = vld [vmem:[%s5705_s1 + $0x88] sm:$0xff]  ;;  %v80_v5 = vld [vmem:[%s5705_s1 + $0x90] sm:$0xff] }
   0x2   :  { %v62_v2 = vld [vmem:[%s5705_s1] sm:$0xff]  ;;  %v3098_v3 = vpack.c.bf16 %v79_v1, %v78_v0  ;;  %v63_v4 = vld [vmem:[%s5705_s1 + $0x8] sm:$0xff]  ;;  %v81_v6 = vld [vmem:[%s5705_s1 + $0x98] sm:$0xff] }
   0x3   :  { %v3100_v7 = vpack.c.bf16 %v63_v4, %v62_v2  ;;  %v3102_v8 = vpack.c.bf16 %v81_v6, %v80_v5  ;;  %v64_v9 = vld [vmem:[%s5705_s1 + $0x10] sm:$0xff]  ;;  %v65_v10 = vld [vmem:[%s5705_s1 + $0x18] sm:$0xff]  ;;  %v82_v11 = vld [vmem:[%s5705_s1 + $0xa0] sm:$0xff] }
   0x4   :  { %3099 = vmatprep.subr.bf16.mxu1 %v3098_v3  ;;  %v83_v12 = vld [vmem:[%s5705_s1 + $0xa8] sm:$0xff]  ;;  %v3104_v13 = vpack.c.bf16 %v65_v10, %v64_v9  ;;  %v66_v15 = vld [vmem:[%s5705_s1 + $0x20] sm:$0xff]  ;;  %v84_v17 = vld [vmem:[%s5705_s1 + $0xb0] sm:$0xff] }
   0x5   :  { %3101 = vmatpush3.bf16.msra.mxu1 %v3100_v7  ;;  %v3106_v14 = vpack.c.bf16 %v83_v12, %v82_v11  ;;  %v67_v16 = vld [vmem:[%s5705_s1 + $0x28] sm:$0xff]  ;;  %v85_v18 = vld [vmem:[%s5705_s1 + $0xb8] sm:$0xff]  ;;  %v68_v21 = vld [vmem:[%s5705_s1 + $0x30] sm:$0xff] }
   0x6   :  { %3103 = vmatprep.subr.bf16.mxu1 %v3102_v8  ;;  %v3108_v19 = vpack.c.bf16 %v67_v16, %v66_v15  ;;  %v3110_v20 = vpack.c.bf16 %v85_v18, %v84_v17  ;;  %v69_v22 = vld [vmem:[%s5705_s1 + $0x38] sm:$0xff]  ;;  %v86_v23 = vld [vmem:[%s5705_s1 + $0xc0] sm:$0xff]  ;;  %v87_v24 = vld [vmem:[%s5705_s1 + $0xc8] sm:$0xff] }
   0x7   :  { %v43_v25 = vld [vmem:[%s5706_s0 + $0x8] sm:$0xff]  ;;  %v3112_v26 = vpack.c.bf16 %v69_v22, %v68_v21  ;;  %v3114_v27 = vpack.c.bf16 %v87_v24, %v86_v23  ;;  %v70_v28 = vld [vmem:[%s5705_s1 + $0x40] sm:$0xff]  ;;  %v88_v30 = vld [vmem:[%s5705_s1 + $0xd0] sm:$0xff] }
   0x8   :  { %215 = vmatprep.mubr.f32.mxu1 %v43_v25  ;;  %v71_v29 = vld [vmem:[%s5705_s1 + $0x48] sm:$0xff]  ;;  %v89_v31 = vld [vmem:[%s5705_s1 + $0xd8] sm:$0xff]  ;;  %v72_v34 = vld [vmem:[%s5705_s1 + $0x50] sm:$0xff] }
   0x9   :  { %3105 = vmatpush3.bf16.msra.mxu1 %v3104_v13  ;;  %v3116_v32 = vpack.c.bf16 %v71_v29, %v70_v28  ;;  %v3118_v33 = vpack.c.bf16 %v89_v31, %v88_v30  ;;  %v73_v35 = vld [vmem:[%s5705_s1 + $0x58] sm:$0xff]  ;;  %v90_v36 = vld [vmem:[%s5705_s1 + $0xe0] sm:$0xff]  ;;  %v91_v37 = vld [vmem:[%s5705_s1 + $0xe8] sm:$0xff] }
   0xa   :  { %3107 = vmatprep.subr.bf16.mxu1 %v3106_v14  ;;  %v3120_v38 = vpack.c.bf16 %v73_v35, %v72_v34  ;;  %v3122_v39 = vpack.c.bf16 %v91_v37, %v90_v36  ;;  %v74_v40 = vld [vmem:[%s5705_s1 + $0x60] sm:$0xff]  ;;  %v75_v41 = vld [vmem:[%s5705_s1 + $0x68] sm:$0xff]  ;;  %v92_v42 = vld [vmem:[%s5705_s1 + $0xf0] sm:$0xff] }
   0xb   :  { %v93_v43 = vld [vmem:[%s5705_s1 + $0xf8] sm:$0xff]  ;;  %v3124_v44 = vpack.c.bf16 %v75_v41, %v74_v40  ;;  %v76_v46 = vld [vmem:[%s5705_s1 + $0x70] sm:$0xff]  ;;  %v110_v48 = vld [vmem:[%s5705_s1 + $0x180] sm:$0xff] }
   0xc   :  { %v3126_v45 = vpack.c.bf16 %v93_v43, %v92_v42  ;;  %v77_v47 = vld [vmem:[%s5705_s1 + $0x78] sm:$0xff]  ;;  %v111_v49 = vld [vmem:[%s5705_s1 + $0x188] sm:$0xff]  ;;  %v94_v52 = vld [vmem:[%s5705_s1 + $0x100] sm:$0xff] }
   0xd   :  { %3109 = vmatpush3.bf16.msra.mxu1 %v3108_v19  ;;  %v3128_v50 = vpack.c.bf16 %v77_v47, %v76_v46  ;;  %v3130_v51 = vpack.c.bf16 %v111_v49, %v110_v48  ;;  %v95_v53 = vld [vmem:[%s5705_s1 + $0x108] sm:$0xff]  ;;  %v112_v54 = vld [vmem:[%s5705_s1 + $0x190] sm:$0xff]  ;;  %v113_v55 = vld [vmem:[%s5705_s1 + $0x198] sm:$0xff] }
   0xe   :  { %3111 = vmatprep.subr.bf16.mxu1 %v3110_v20  ;;  %v42_v56 = vld [vmem:[%s5706_s0] sm:$0xff]  ;;  %v3132_v57 = vpack.c.bf16 %v95_v53, %v94_v52  ;;  %v3134_v58 = vpack.c.bf16 %v113_v55, %v112_v54  ;;  %v96_v59 = vld [vmem:[%s5705_s1 + $0x110] sm:$0xff]  ;;  %v97_v60 = vld [vmem:[%s5705_s1 + $0x118] sm:$0xff] }
   0xf   :  { %v48_v61 = vld [vmem:[%s5706_s0 + $0x30] sm:$0xff]  ;;  %v114_v62 = vld [vmem:[%s5705_s1 + $0x1a0] sm:$0xff]  ;;  %v115_v63 = vld [vmem:[%s5705_s1 + $0x1a8] sm:$0xff]  ;;  %v3136_v0 = vpack.c.bf16 %v97_v60, %v96_v59 }
  0x10   :  { %v47_v1 = vld [vmem:[%s5706_s0 + $0x28] sm:$0xff]  ;;  %v3138_v2 = vpack.c.bf16 %v115_v63, %v114_v62  ;;  %v98_v3 = vld [vmem:[%s5705_s1 + $0x120] sm:$0xff]  ;;  %v53_v5 = vld [vmem:[%s5706_s0 + $0x58] sm:$0xff] }
  0x11   :  { %3113 = vmatpush3.bf16.msra.mxu1 %v3112_v26  ;;  %v99_v4 = vld [vmem:[%s5705_s1 + $0x128] sm:$0xff]  ;;  %v116_v6 = vld [vmem:[%s5705_s1 + $0x1b0] sm:$0xff]  ;;  %v117_v7 = vld [vmem:[%s5705_s1 + $0x1b8] sm:$0xff] }
  0x12   :  { %3115 = vmatprep.subr.bf16.mxu1 %v3114_v27  ;;  %v3140_v8 = vpack.c.bf16 %v99_v4, %v98_v3  ;;  %v52_v9 = vld [vmem:[%s5706_s0 + $0x50] sm:$0xff]  ;;  %v3142_v10 = vpack.c.bf16 %v117_v7, %v116_v6  ;;  %v101_v12 = vld [vmem:[%s5705_s1 + $0x138] sm:$0xff]  ;;  %v58_v13 = vld [vmem:[%s5706_s0 + $0x80] sm:$0xff] }
  0x13   :  { %v100_v11 = vld [vmem:[%s5705_s1 + $0x130] sm:$0xff]  ;;  %v118_v14 = vld [vmem:[%s5705_s1 + $0x1c0] sm:$0xff]  ;;  %v119_v15 = vld [vmem:[%s5705_s1 + $0x1c8] sm:$0xff] }
  0x14   :  { %v3144_v16 = vpack.c.bf16 %v101_v12, %v100_v11  ;;  %v57_v17 = vld [vmem:[%s5706_s0 + $0x78] sm:$0xff]  ;;  %v3146_v18 = vpack.c.bf16 %v119_v15, %v118_v14  ;;  %v102_v19 = vld [vmem:[%s5705_s1 + $0x140] sm:$0xff]  ;;  %v103_v20 = vld [vmem:[%s5705_s1 + $0x148] sm:$0xff] }
  0x15   :  { %3117 = vmatpush3.bf16.msra.mxu1 %v3116_v32  ;;  %v45_v21 = vld [vmem:[%s5706_s0 + $0x18] sm:$0xff]  ;;  %v120_v22 = vld [vmem:[%s5705_s1 + $0x1d0] sm:$0xff]  ;;  %v3148_v24 = vpack.c.bf16 %v103_v20, %v102_v19  ;;  %v122_v28 = vld [vmem:[%s5705_s1 + $0x1e0] sm:$0xff] }
  0x16   :  { %3119 = vmatprep.subr.bf16.mxu1 %v3118_v33  ;;  %v121_v23 = vld [vmem:[%s5705_s1 + $0x1d8] sm:$0xff]  ;;  %v104_v26 = vld [vmem:[%s5705_s1 + $0x150] sm:$0xff]  ;;  %v123_v29 = vld [vmem:[%s5705_s1 + $0x1e8] sm:$0xff] }
  0x17   :  { %v3150_v25 = vpack.c.bf16 %v121_v23, %v120_v22  ;;  %v105_v27 = vld [vmem:[%s5705_s1 + $0x158] sm:$0xff]  ;;  %v3154_v31 = vpack.c.bf16 %v123_v29, %v122_v28  ;;  %v106_v32 = vld [vmem:[%s5705_s1 + $0x160] sm:$0xff]  ;;  %v107_v33 = vld [vmem:[%s5705_s1 + $0x168] sm:$0xff] }
  0x18   :  { %v3152_v30 = vpack.c.bf16 %v105_v27, %v104_v26  ;;  %v124_v34 = vld [vmem:[%s5705_s1 + $0x1f0] sm:$0xff]  ;;  %v125_v35 = vld [vmem:[%s5705_s1 + $0x1f8] sm:$0xff]  ;;  %v3156_v36 = vpack.c.bf16 %v107_v33, %v106_v32  ;;  %v126_v40 = vld [vmem:[%s5705_s1 + $0x200] sm:$0xff] }
  0x19   :  { %3121 = vmatpush3.bf16.msra.mxu1 %v3120_v38  ;;  %v3158_v37 = vpack.c.bf16 %v125_v35, %v124_v34  ;;  %v108_v38 = vld [vmem:[%s5705_s1 + $0x170] sm:$0xff]  ;;  %v127_v41 = vld [vmem:[%s5705_s1 + $0x208] sm:$0xff]  ;;  %v50_v47 = vld [vmem:[%s5706_s0 + $0x40] sm:$0xff] }
  0x1a   :  { %3123 = vmatprep.subr.bf16.mxu1 %v3122_v39  ;;  %v109_v39 = vld [vmem:[%s5705_s1 + $0x178] sm:$0xff]  ;;  %v3162_v43 = vpack.c.bf16 %v127_v41, %v126_v40  ;;  %v44_v46 = vld [vmem:[%s5706_s0 + $0x10] sm:$0xff]  ;;  %v130_v49 = vld [vmem:[%s5705_s1 + $0x220] sm:$0xff] }
  0x1b   :  { %v3160_v42 = vpack.c.bf16 %v109_v39, %v108_v38  ;;  %v55_v52 = vld [vmem:[%s5706_s0 + $0x68] sm:$0xff]  ;;  %v132_v54 = vld [vmem:[%s5705_s1 + $0x230] sm:$0xff]  ;;  %v133_v55 = vld [vmem:[%s5705_s1 + $0x238] sm:$0xff] }
  0x1c   :  { %v59_v59 = vld [vmem:[%s5706_s0 + $0x88] sm:$0xff]  ;;  %v46_v60 = vld [vmem:[%s5706_s0 + $0x20] sm:$0xff]  ;;  %v56_v62 = vld [vmem:[%s5706_s0 + $0x70] sm:$0xff] }
  0x1d   :  { %3125 = vmatpush3.bf16.msra.mxu1 %v3124_v44  ;;  %v128_v44 = vld [vmem:[%s5705_s1 + $0x210] sm:$0xff]  ;;  %v61_v63 = vld [vmem:[%s5706_s0 + $0x98] sm:$0xff]  ;;  %v840_v3 = vld [vmem:[%s5708_s4 + $0x100] sm:$0xff] }
  0x1e   :  { %3127 = vmatprep.subr.bf16.mxu1 %v3126_v45  ;;  %v129_v45 = vld [vmem:[%s5705_s1 + $0x218] sm:$0xff]  ;;  %v845_v6 = vld [vmem:[%s5708_s4 + $0x128] sm:$0xff]  ;;  %v846_v11 = vld [vmem:[%s5708_s4 + $0x130] sm:$0xff] }
  0x1f   :  { %v3166_v48 = vpack.c.bf16 %v129_v45, %v128_v44  ;;  %v847_v7 = vld [vmem:[%s5708_s4 + $0x138] sm:$0xff]  ;;  %v849_v12 = vld [vmem:[%s5708_s4 + $0x148] sm:$0xff]  ;;  %v852_v22 = vld [vmem:[%s5708_s4 + $0x160] sm:$0xff] }
  0x20   :  { %v855_v19 = vld [vmem:[%s5708_s4 + $0x178] sm:$0xff]  ;;  %v854_v23 = vld [vmem:[%s5708_s4 + $0x170] sm:$0xff]  ;;  %v856_v28 = vld [vmem:[%s5708_s4 + $0x180] sm:$0xff] }
  0x21   :  { %3129 = vmatpush3.bf16.msra.mxu1 %v3128_v50  ;;  %v131_v50 = vld [vmem:[%s5705_s1 + $0x228] sm:$0xff]  ;;  %v3200_v26 = vpack.c.bf16 %v854_v23, %v852_v22  ;;  %v858_v29 = vld [vmem:[%s5708_s4 + $0x190] sm:$0xff]  ;;  %v860_v35 = vld [vmem:[%s5708_s4 + $0x1a0] sm:$0xff] }
  0x22   :  { %3131 = vmatprep.subr.bf16.mxu1 %v3130_v51  ;;  %v49_v51 = vld [vmem:[%s5706_s0 + $0x38] sm:$0xff]  ;;  %v3170_v53 = vpack.c.bf16 %v131_v50, %v130_v49  ;;  %v3204_v32 = vpack.c.bf16 %v858_v29, %v856_v28  ;;  %v134_v49 = vlaneseq }
  0x24   :  { %216 = vmatmul.mubr.f32.vlgmr.msra.gmra.mrb[0].mxu1 %v42_v56  ;;  %v54_v56 = vld [vmem:[%s5706_s0 + $0x60] sm:$0xff]  ;;  %v4121_v50 = vshrl.u32 %v134_v49, 7 }
  0x25   :  { %3133 = vmatpush3.bf16.msra.mxu1 %v3132_v57  ;;  %220 = vmatprep.mubr.f32.mxu1 %v48_v61  ;;  %v60_v57 = vld [vmem:[%s5706_s0 + $0x90] sm:$0xff]  ;;  %v51_v61 = vld [vmem:[%s5706_s0 + $0x48] sm:$0xff]  ;;  %v438_v49 = vld [vmem:[%s5707_s3 + $0xa0] sm:$0xff] }
  0x26   :  { %3135 = vmatprep.subr.bf16.mxu1 %v3134_v58  ;;  %v3174_v58 = vpack.c.bf16 %v133_v55, %v132_v54 }
  0x28   :  { %221 = vmatmul.mubr.f32.gmra.mrb[2].mxu1 %v47_v1  ;;  %v841_v1 = vld [vmem:[%s5708_s4 + $0x108] sm:$0xff] }
  0x29   :  { %3137 = vmatpush3.bf16.msra.mxu1 %v3136_v0  ;;  %225 = vmatprep.mubr.f32.mxu1 %v53_v5  ;;  %v418_v0 = vld [vmem:[%s5707_s3] sm:$0xff]  ;;  %v842_v5 = vld [vmem:[%s5708_s4 + $0x110] sm:$0xff] }
  0x2a   :  { %3139 = vmatprep.subr.bf16.mxu1 %v3138_v2  ;;  %v843_v2 = vld [vmem:[%s5708_s4 + $0x118] sm:$0xff] }
  0x2b   :  { %v3186_v4 = vpack.c.bf16 %v843_v2, %v841_v1 }
  0x2c   :  { %226 = vmatmul.mubr.f32.gmra.mrb[4].mxu1 %v52_v9  ;;  %v3190_v9 = vpack.c.bf16 %v847_v7, %v845_v6  ;;  %v4131_v7 = vsub.s32 1, %v4121_v50 }
  0x2d   :  { %3141 = vmatpush3.bf16.msra.mxu1 %v3140_v8  ;;  %230 = vmatprep.mubr.f32.mxu1 %v58_v13  ;;  %v3188_v8 = vpack.c.bf16 %v842_v5, %v840_v3  ;;  %v851_v13 = vld [vmem:[%s5708_s4 + $0x158] sm:$0xff] }
  0x2e   :  { %3143 = vmatprep.subr.bf16.mxu1 %v3142_v10  ;;  %v844_v10 = vld [vmem:[%s5708_s4 + $0x120] sm:$0xff]  ;;  %3187 = vmatprep.subr.bf16.mxu0 %v3186_v4  ;;  %v3194_v15 = vpack.c.bf16 %v851_v13, %v849_v12 }
  0x2f   :  { %3189 = vmatpush1.bf16.msra.mxu0 %v3188_v8  ;;  %v3192_v14 = vpack.c.bf16 %v846_v11, %v844_v10 }
  0x30   :  { %231 = vmatmul.mubr.f32.gmra.mrb[6].mxu1 %v57_v17  ;;  %3191 = vmatprep.subr.bf16.mxu0 %v3190_v9  ;;  %v850_v17 = vld [vmem:[%s5708_s4 + $0x150] sm:$0xff] }
  0x31   :  { %3145 = vmatpush3.bf16.msra.mxu1 %v3144_v16  ;;  %300 = vmatprep.mubr.f32.mxu1 %v45_v21  ;;  %v848_v16 = vld [vmem:[%s5708_s4 + $0x140] sm:$0xff] }
  0x32   :  { %3147 = vmatprep.subr.bf16.mxu1 %v3146_v18  ;;  %v853_v18 = vld [vmem:[%s5708_s4 + $0x168] sm:$0xff]  ;;  %v3196_v20 = vpack.c.bf16 %v850_v17, %v848_v16 }
  0x33   :  { %3193 = vmatpush1.bf16.msra.mxu0 %v3192_v14  ;;  %v3198_v21 = vpack.c.bf16 %v855_v19, %v853_v18 }
  0x34   :  { %3195 = vmatprep.subr.bf16.mxu0 %v3194_v15 }
  0x35   :  { %3149 = vmatpush3.bf16.msra.mxu1 %v3148_v24  ;;  %v857_v24 = vld [vmem:[%s5708_s4 + $0x188] sm:$0xff] }
  0x36   :  { %3151 = vmatprep.subr.bf16.mxu1 %v3150_v25  ;;  %v859_v25 = vld [vmem:[%s5708_s4 + $0x198] sm:$0xff] }
  0x37   :  { %3197 = vmatpush1.bf16.msra.mxu0 %v3196_v20  ;;  %v3202_v27 = vpack.c.bf16 %v859_v25, %v857_v24 }
  0x38   :  { %3199 = vmatprep.subr.bf16.mxu0 %v3198_v21 }
  0x39   :  { %3153 = vmatpush3.bf16.msra.mxu1 %v3152_v30  ;;  %v861_v30 = vld [vmem:[%s5708_s4 + $0x1a8] sm:$0xff] }
  0x3a   :  { %3155 = vmatprep.subr.bf16.mxu1 %v3154_v31  ;;  %v863_v31 = vld [vmem:[%s5708_s4 + $0x1b8] sm:$0xff] }
  0x3b   :  { %3201 = vmatpush1.bf16.msra.mxu0 %v3200_v26  ;;  %v3206_v34 = vpack.c.bf16 %v863_v31, %v861_v30  ;;  %v419_v30 = vld [vmem:[%s5707_s3 + $0x8] sm:$0xff]  ;;  %v420_v31 = vld [vmem:[%s5707_s3 + $0x10] sm:$0xff] }
  0x3c   :  { %3203 = vmatprep.subr.bf16.mxu0 %v3202_v27 }
  0x3d   :  { %3157 = vmatpush3.bf16.msra.mxu1 %v3156_v36  ;;  %v862_v36 = vld [vmem:[%s5708_s4 + $0x1b0] sm:$0xff] }
  0x3e   :  { %3159 = vmatprep.subr.bf16.mxu1 %v3158_v37  ;;  %v3208_v39 = vpack.c.bf16 %v862_v36, %v860_v35  ;;  %v424_v35 = vld [vmem:[%s5707_s3 + $0x30] sm:$0xff]  ;;  %v425_v36 = vld [vmem:[%s5707_s3 + $0x38] sm:$0xff] }
  0x3f   :  { %3205 = vmatpush1.bf16.msra.mxu0 %v3204_v32  ;;  %v421_v32 = vld [vmem:[%s5707_s3 + $0x18] sm:$0xff] }
  0x40   :  { %3207 = vmatprep.subr.bf16.mxu0 %v3206_v34  ;;  %v423_v34 = vld [vmem:[%s5707_s3 + $0x28] sm:$0xff] }
  0x41   :  { %3161 = vmatpush3.bf16.msra.mxu1 %v3160_v42 }
  0x42   :  { %3163 = vmatprep.subr.bf16.mxu1 %v3162_v43 }
  0x43   :  { %3209 = vmatpush1.bf16.msra.mxu0 %v3208_v39  ;;  %v428_v39 = vld [vmem:[%s5707_s3 + $0x50] sm:$0xff] }
  0x44   :  { %301 = vmatmul.mubr.f32.vlgmr.msra.gmra.mrb[8].mxu1 %v44_v46 }
  0x45   :  { %3165 = vmatpush3.bf16.msra.mxu1 %v3162_v43  ;;  %305 = vmatprep.mubr.f32.mxu1 %v50_v47 }
  0x46   :  { %3167 = vmatprep.subr.bf16.mxu1 %v3166_v48 }
  0x48   :  { %306 = vmatmul.mubr.f32.gmra.mrb[10].mxu1 %v49_v51  ;;  %v4124_v51 = vsub.s32 0, %v4121_v50 }
  0x49   :  { %3169 = vmatpush3.bf16.msra.mxu1 %v3166_v48  ;;  %310 = vmatprep.mubr.f32.mxu1 %v55_v52  ;;  %v41_v52 = vld [vmem:[%s5709_s2] sm:$0x3] }
  0x4a   :  { %3171 = vmatprep.subr.bf16.mxu1 %v3170_v53  ;;  %v413_v13 = vrot.slane %v41_v52, %v4131_v7 }
  0x4c   :  { %311 = vmatmul.mubr.f32.gmra.mrb[12].mxu1 %v54_v56 }
  0x4d   :  { %3173 = vmatpush3.bf16.msra.mxu1 %v3170_v53  ;;  %315 = vmatprep.mubr.f32.mxu1 %v60_v57  ;;  %v137_v53 = vrot.slane %v41_v52, %v4124_v51  ;;  %v439_v52 = vld [vmem:[%s5707_s3 + $0xa8] sm:$0xff] }
  0x4e   :  { %3175 = vmatprep.subr.bf16.mxu1 %v3174_v58 }
  0x50   :  { %316 = vmatmul.mubr.f32.gmra.mrb[14].mxu1 %v59_v59 }
  0x51   :  { %3177 = vmatpush3.bf16.msra.mxu1 %v3174_v58  ;;  %2992 = vmatprep.mubr.msk.f32.mxu1 %vm138_vm0, %v46_v60 }
  0x54   :  { %2993 = vmatmul.mubr.msk.f32.vlgmr.msra.gmra.mrb[16].mxu1 %vm138_vm0, %v51_v61 }
  0x55   :  { %2995 = vmatprep.mubr.msk.f32.mxu1 %vm138_vm0, %v56_v62 }
  0x58   :  { %2996 = vmatmul.mubr.msk.f32.gmra.mrb[18].mxu1 %vm138_vm0, %v61_v63 }
  0x59   :  { %3006 = vmatprep.mubr.msk.f32.mxu1 %vm454_vm1, %v418_v0 }
  0xf7   :  { %v2710_v33 = vpop.f32.mrb[0].mxu1 }
  0xf8   :  { %v2711_v37 = vpop.f32.mrb[1].mxu1 }
  0xf9   :  { %v2712_v38 = vadd.f32 %v2711_v37, %v2710_v33  ;;  %v422_v33 = vld [vmem:[%s5707_s3 + $0x20] sm:$0xff] }
  0xfa   :  { %v426_v37 = vld [vmem:[%s5707_s3 + $0x40] sm:$0xff] }
  0xfb   :  { %v2713_v40 = vpop.f32.mrb[2].mxu1  ;;  %v218_v56 = vadd.f32 %v2712_v38, %v137_v53  ;;  %v427_v38 = vld [vmem:[%s5707_s3 + $0x48] sm:$0xff] }
  0xfc   :  { %v2714_v41 = vpop.f32.mrb[3].mxu1 }
  0xfd   :  { %v2715_v42 = vadd.f32 %v2714_v41, %v2713_v40  ;;  %v429_v40 = vld [vmem:[%s5707_s3 + $0x58] sm:$0xff]  ;;  %v430_v41 = vld [vmem:[%s5707_s3 + $0x60] sm:$0xff] }
  0xff   :  { %v2716_v43 = vpop.f32.mrb[4].mxu1  ;;  %v223_v61 = vadd.f32 %v2715_v42, %v137_v53  ;;  %v431_v42 = vld [vmem:[%s5707_s3 + $0x68] sm:$0xff] }
 0x100   :  { %v2717_v44 = vpop.f32.mrb[5].mxu1 }
 0x101   :  { %v2718_v45 = vadd.f32 %v2717_v44, %v2716_v43  ;;  %v432_v43 = vld [vmem:[%s5707_s3 + $0x70] sm:$0xff]  ;;  %v433_v44 = vld [vmem:[%s5707_s3 + $0x78] sm:$0xff] }
 0x103   :  { %v2719_v46 = vpop.f32.mrb[6].mxu1  ;;  %v228_v2 = vadd.f32 %v2718_v45, %v137_v53  ;;  %v434_v45 = vld [vmem:[%s5707_s3 + $0x80] sm:$0xff] }
 0x104   :  { %v2720_v47 = vpop.f32.mrb[7].mxu1 }
 0x105   :  { %v2721_v48 = vadd.f32 %v2720_v47, %v2719_v46  ;;  %v435_v46 = vld [vmem:[%s5707_s3 + $0x88] sm:$0xff]  ;;  %v436_v47 = vld [vmem:[%s5707_s3 + $0x90] sm:$0xff] }
 0x107   :  { %v233_v8 = vadd.f32 %v2721_v48, %v137_v53  ;;  %v437_v48 = vld [vmem:[%s5707_s3 + $0x98] sm:$0xff]  ;;  %v440_v53 = vld [vmem:[%s5707_s3 + $0xb0] sm:$0xff] }
 0x117   :  { %v2754_v54 = vpop.f32.mrb[8].mxu1 }
 0x118   :  { %v2755_v55 = vpop.f32.mrb[9].mxu1 }
 0x119   :  { %v2756_v57 = vadd.f32 %v2755_v55, %v2754_v54  ;;  %v441_v54 = vld [vmem:[%s5707_s3 + $0xb8] sm:$0xff]  ;;  %v442_v55 = vld [vmem:[%s5707_s3 + $0xc0] sm:$0xff] }
 0x11b   :  { %v2757_v58 = vpop.f32.mrb[10].mxu1  ;;  %v303_v59 = vadd.f32 %v2756_v57, %v218_v56  ;;  %v443_v56 = vld [vmem:[%s5707_s3 + $0xc8] sm:$0xff] }
 0x11c   :  { %v2758_v60 = vpop.f32.mrb[11].mxu1  ;;  %v865_v57 = vld [vmem:[%s5708_s4 + $0x1c8] sm:$0xff] }
 0x11d   :  { %v2759_v62 = vadd.f32 %v2758_v60, %v2757_v58  ;;  %v867_v58 = vld [vmem:[%s5708_s4 + $0x1d8] sm:$0xff]  ;;  %v864_v60 = vld [vmem:[%s5708_s4 + $0x1c0] sm:$0xff] }
 0x11f   :  { %v2760_v63 = vpop.f32.mrb[12].mxu1  ;;  %v308_v0 = vadd.f32 %v2759_v62, %v223_v61  ;;  %v866_v61 = vld [vmem:[%s5708_s4 + $0x1d0] sm:$0xff] }
 0x120   :  { %v2761_v1 = vpop.f32.mrb[13].mxu1  ;;  %v3212_v62 = vpack.c.bf16 %v866_v61, %v864_v60  ;;  %v831_v60 = vld [vmem:[%s5708_s4 + $0xb8] sm:$0xff] }
 0x121   :  { %v2762_v3 = vadd.f32 %v2761_v1, %v2760_v63  ;;  %v869_v63 = vld [vmem:[%s5708_s4 + $0x1e8] sm:$0xff] }
 0x123   :  { %v2763_v4 = vpop.f32.mrb[14].mxu1  ;;  %v313_v5 = vadd.f32 %v2762_v3, %v228_v2  ;;  %v868_v2 = vld [vmem:[%s5708_s4 + $0x1e0] sm:$0xff]  ;;  %v870_v3 = vld [vmem:[%s5708_s4 + $0x1f0] sm:$0xff] }
 0x124   :  { %v2764_v6 = vpop.f32.mrb[15].mxu1 }
 0x125   :  { %v2765_v9 = vadd.f32 %v2764_v6, %v2763_v4  ;;  %v3216_v4 = vpack.c.bf16 %v870_v3, %v868_v2  ;;  %v809_v6 = vld [vmem:[%s5708_s4 + $0x8] sm:$0xff] }
 0x126   :  { %v833_v3 = vld [vmem:[%s5708_s4 + $0xc8] sm:$0xff] }
 0x127   :  { %v2994_v10 = vpop.f32.mrb[16].mxu1  ;;  %v318_v11 = vadd.f32 %v2765_v9, %v233_v8  ;;  %v811_v8 = vld [vmem:[%s5708_s4 + $0x18] sm:$0xff] }
 0x128   :  { %v393_v12 = vadd.f32 %v2994_v10, %v308_v0  ;;  %v387_v14 = vpop.f32.mrb[17].mxu1  ;;  %v871_v0 = vld [vmem:[%s5708_s4 + $0x1f8] sm:$0xff]  ;;  %v3218_v10 = vpack.c.bf16 %v811_v8, %v809_v6 }
 0x129   :  { %v388_v15 = vadd.f32 %v387_v14, %v303_v59  ;;  %v3210_v59 = vpack.c.bf16 %v867_v58, %v865_v57  ;;  %v3214_v1 = vpack.c.bf16 %v871_v0, %v869_v63  ;;  %v445_v9 = vld [vmem:[%s5707_s3 + $0xd8] sm:$0xff]  ;;  %v448_v14 = vld [vmem:[%s5707_s3 + $0xf0] sm:$0xff]  ;;  %v828_v0 = vld [vmem:[%s5708_s4 + $0xa0] sm:$0xff] }
 0x12a   :  { %v407_v16 = vmax.f32 %v393_v12, 0.0  ;;  %v446_v12 = vld [vmem:[%s5707_s3 + $0xe0] sm:$0xff]  ;;  %v826_v57 = vld [vmem:[%s5708_s4 + $0x90] sm:$0xff] }
 0x12b   :  { %v406_v17 = vmax.f32 %v388_v15, 0.0  ;;  %v2997_v18 = vpop.f32.mrb[18].mxu1  ;;  %3211 = vmatprep.subr.bf16.mxu0 %v3210_v59  ;;  %v449_v15 = vld [vmem:[%s5707_s3 + $0xf8] sm:$0xff]  ;;  %v829_v59 = vld [vmem:[%s5708_s4 + $0xa8] sm:$0xff] }
 0x12c   :  { %v415_v19 = vadd.f32 %v413_v13, %v407_v16  ;;  %v403_v20 = vadd.f32 %v2997_v18, %v318_v11  ;;  %v397_v21 = vpop.f32.mrb[19].mxu1  ;;  %3213 = vmatpush1.bf16.msra.mxu0 %v3212_v62  ;;  %v3697_v11 = vmov 0.0   ;;  %v450_v16 = vld [vmem:[%s5707_s3 + $0x100] sm:$0xff]  ;;  %v452_v18 = vld [vmem:[%s5707_s3 + $0x110] sm:$0xff]  ;;  %v3238_v63 = vpack.c.bf16 %v831_v60, %v829_v59 }
 0x12d   :  { %v414_v22 = vadd.f32 %v413_v13, %v406_v17  ;;  %v398_v23 = vadd.f32 %v397_v21, %v313_v5  ;;  %3215 = vmatprep.subr.bf16.mxu0 %v3214_v1  ;;  %v444_v5 = vld [vmem:[%s5707_s3 + $0xd0] sm:$0xff]  ;;  %936 = vmatprep.mubr.f32.mxu0 %v3697_v11  ;;  %v451_v17 = vld [vmem:[%s5707_s3 + $0x108] sm:$0xff] }
 0x12e   :  { %v409_v24 = vmax.f32 %v403_v20, 0.0  ;;  %v830_v1 = vld [vmem:[%s5708_s4 + $0xb0] sm:$0xff] }
 0x12f   :  { %v408_v25 = vmax.f32 %v398_v23, 0.0  ;;  %v3178_v26 = vpack.c.bf16 %v415_v19, %v414_v22  ;;  %v453_v19 = vld [vmem:[%s5707_s3 + $0x118] sm:$0xff]  ;;  %v808_v23 = vld [vmem:[%s5708_s4] sm:$0xff]  ;;  %v3240_v6 = vpack.c.bf16 %v830_v1, %v828_v0  ;;  %v1071_v0 = vld [vmem:[%s5708_s4 + $0x2a8] sm:$0xff] }
 0x130   :  { %v417_v27 = vadd.f32 %v413_v13, %v409_v24  ;;  %3217 = vmatpush1.bf16.msra.mxu0 %v3216_v4  ;;  %v810_v24 = vld [vmem:[%s5708_s4 + $0x10] sm:$0xff]  ;;  %v835_v4 = vld [vmem:[%s5708_s4 + $0xd8] sm:$0xff] }
 0x131   :  { %v416_v28 = vadd.f32 %v413_v13, %v408_v25  ;;  %3179 = vmatprep.subr.bf16.mxu1 %v3178_v26  ;;  %3219 = vmatprep.subr.bf16.mxu0 %v3218_v10  ;;  %v447_v13 = vld [vmem:[%s5707_s3 + $0xe8] sm:$0xff]  ;;  %v3242_v8 = vpack.c.bf16 %v835_v4, %v833_v3  ;;  %v834_v10 = vld [vmem:[%s5708_s4 + $0xd0] sm:$0xff]  ;;  %v1070_v4 = vld [vmem:[%s5708_s4 + $0x2a0] sm:$0xff] }
 0x132   :  { %3181 = vmatpush3.bf16.msra.mxu1 %v3178_v26  ;;  %v813_v26 = vld [vmem:[%s5708_s4 + $0x28] sm:$0xff] }
 0x133   :  { %v3182_v29 = vpack.c.bf16 %v417_v27, %v416_v28  ;;  %v815_v27 = vld [vmem:[%s5708_s4 + $0x38] sm:$0xff]  ;;  %v3220_v28 = vpack.c.bf16 %v810_v24, %v808_v23  ;;  %v1051_v24 = vld [vmem:[%s5708_s4 + $0x208] sm:$0xff] }
 0x135   :  { %3183 = vmatprep.subr.bf16.mxu1 %v3182_v29 }
 0x136   :  { %3185 = vmatpush3.bf16.msra.mxu1 %v3182_v29 }
 0x139   :  { %3007 = vmatmul.mubr.msk.f32.vlgmr.msra.gmra.mrb[20].mxu1 %vm454_vm1, %v419_v30  ;;  %v3222_v30 = vpack.c.bf16 %v815_v27, %v813_v26  ;;  %v1053_v26 = vld [vmem:[%s5708_s4 + $0x218] sm:$0xff] }
 0x13a   :  { %3009 = vmatprep.mubr.msk.f32.mxu1 %vm454_vm1, %v420_v31  ;;  %v812_v31 = vld [vmem:[%s5708_s4 + $0x20] sm:$0xff] }
 0x13d   :  { %3010 = vmatmul.mubr.msk.f32.gmra.mrb[22].mxu1 %vm454_vm1, %v421_v32  ;;  %v814_v32 = vld [vmem:[%s5708_s4 + $0x30] sm:$0xff] }
 0x13e   :  { %3012 = vmatprep.mubr.msk.f32.mxu1 %vm454_vm1, %v422_v33 }
 0x141   :  { %3013 = vmatmul.mubr.msk.f32.gmra.mrb[24].mxu1 %vm454_vm1, %v423_v34  ;;  %v817_v34 = vld [vmem:[%s5708_s4 + $0x48] sm:$0xff] }
 0x142   :  { %3015 = vmatprep.mubr.msk.f32.mxu1 %vm454_vm1, %v424_v35  ;;  %v819_v35 = vld [vmem:[%s5708_s4 + $0x58] sm:$0xff] }
 0x145   :  { %3016 = vmatmul.mubr.msk.f32.gmra.mrb[26].mxu1 %vm454_vm1, %v425_v36  ;;  %v3224_v36 = vpack.c.bf16 %v814_v32, %v812_v31  ;;  %v1052_v31 = vld [vmem:[%s5708_s4 + $0x210] sm:$0xff] }
 0x146   :  { %3018 = vmatprep.mubr.msk.f32.mxu1 %vm454_vm1, %v426_v37  ;;  %v3226_v37 = vpack.c.bf16 %v819_v35, %v817_v34  ;;  %v1057_v34 = vld [vmem:[%s5708_s4 + $0x238] sm:$0xff] }
 0x149   :  { %3019 = vmatmul.mubr.msk.f32.gmra.mrb[28].mxu1 %vm454_vm1, %v427_v38  ;;  %v816_v38 = vld [vmem:[%s5708_s4 + $0x40] sm:$0xff] }
 0x14a   :  { %3021 = vmatprep.mubr.msk.f32.mxu1 %vm454_vm1, %v428_v39  ;;  %v818_v39 = vld [vmem:[%s5708_s4 + $0x50] sm:$0xff] }
 0x14d   :  { %3022 = vmatmul.mubr.msk.f32.gmra.mrb[30].mxu1 %vm454_vm1, %v429_v40 }
 0x14e   :  { %3024 = vmatprep.mubr.msk.f32.mxu1 %vm454_vm1, %v430_v41  ;;  %v821_v41 = vld [vmem:[%s5708_s4 + $0x68] sm:$0xff] }
 0x151   :  { %3025 = vmatmul.mubr.msk.f32.gmra.mrb[32].mxu1 %vm454_vm1, %v431_v42  ;;  %v823_v42 = vld [vmem:[%s5708_s4 + $0x78] sm:$0xff] }
 0x152   :  { %3027 = vmatprep.mubr.msk.f32.mxu1 %vm454_vm1, %v432_v43 }
 0x155   :  { %3028 = vmatmul.mubr.msk.f32.gmra.mrb[34].mxu1 %vm454_vm1, %v433_v44  ;;  %v3228_v44 = vpack.c.bf16 %v818_v39, %v816_v38  ;;  %v1054_v38 = vld [vmem:[%s5708_s4 + $0x220] sm:$0xff]  ;;  %v1056_v39 = vld [vmem:[%s5708_s4 + $0x230] sm:$0xff] }
 0x156   :  { %3030 = vmatprep.mubr.msk.f32.mxu1 %vm454_vm1, %v434_v45  ;;  %v3230_v45 = vpack.c.bf16 %v823_v42, %v821_v41  ;;  %v1059_v41 = vld [vmem:[%s5708_s4 + $0x248] sm:$0xff]  ;;  %v1061_v42 = vld [vmem:[%s5708_s4 + $0x258] sm:$0xff] }
 0x159   :  { %3031 = vmatmul.mubr.msk.f32.gmra.mrb[36].mxu1 %vm454_vm1, %v435_v46  ;;  %v820_v46 = vld [vmem:[%s5708_s4 + $0x60] sm:$0xff] }
 0x15a   :  { %3033 = vmatprep.mubr.msk.f32.mxu1 %vm454_vm1, %v436_v47  ;;  %v822_v47 = vld [vmem:[%s5708_s4 + $0x70] sm:$0xff] }
 0x15d   :  { %3034 = vmatmul.mubr.msk.f32.gmra.mrb[38].mxu1 %vm454_vm1, %v437_v48 }
 0x15e   :  { %3036 = vmatprep.mubr.msk.f32.mxu1 %vm454_vm1, %v438_v49  ;;  %v825_v49 = vld [vmem:[%s5708_s4 + $0x88] sm:$0xff] }
 0x161   :  { %3037 = vmatmul.mubr.msk.f32.gmra.mrb[40].mxu1 %vm454_vm1, %v439_v52  ;;  %v827_v52 = vld [vmem:[%s5708_s4 + $0x98] sm:$0xff] }
 0x162   :  { %3039 = vmatprep.mubr.msk.f32.mxu1 %vm454_vm1, %v440_v53 }
 0x165   :  { %3040 = vmatmul.mubr.msk.f32.gmra.mrb[42].mxu1 %vm454_vm1, %v441_v54  ;;  %v3232_v54 = vpack.c.bf16 %v822_v47, %v820_v46  ;;  %v1058_v46 = vld [vmem:[%s5708_s4 + $0x240] sm:$0xff]  ;;  %v1060_v47 = vld [vmem:[%s5708_s4 + $0x250] sm:$0xff] }
 0x166   :  { %3042 = vmatprep.mubr.msk.f32.mxu1 %vm454_vm1, %v442_v55  ;;  %v3234_v55 = vpack.c.bf16 %v827_v52, %v825_v49  ;;  %v1063_v49 = vld [vmem:[%s5708_s4 + $0x268] sm:$0xff]  ;;  %v3260_v52 = vpack.c.bf16 %v1060_v47, %v1058_v46  ;;  %v1185_v46 = vld [vmem:[%s5708_s4 + $0x330] sm:$0xff] }
 0x169   :  { %3043 = vmatmul.mubr.msk.f32.gmra.mrb[44].mxu1 %vm454_vm1, %v443_v56  ;;  %v824_v56 = vld [vmem:[%s5708_s4 + $0x80] sm:$0xff] }
 0x16a   :  { %3045 = vmatprep.mubr.msk.f32.mxu1 %vm454_vm1, %v444_v5  ;;  %v3236_v62 = vpack.c.bf16 %v826_v57, %v824_v56  ;;  %v1064_v56 = vld [vmem:[%s5708_s4 + $0x270] sm:$0xff]  ;;  %v1067_v57 = vld [vmem:[%s5708_s4 + $0x288] sm:$0xff] }
 0x16d   :  { %3046 = vmatmul.mubr.msk.f32.gmra.mrb[46].mxu1 %vm454_vm1, %v445_v9  ;;  %v832_v9 = vld [vmem:[%s5708_s4 + $0xc0] sm:$0xff] }
 0x16e   :  { %3048 = vmatprep.mubr.msk.f32.mxu1 %vm454_vm1, %v446_v12 }
 0x171   :  { %3049 = vmatmul.mubr.msk.f32.gmra.mrb[48].mxu1 %vm454_vm1, %v447_v13  ;;  %v837_v13 = vld [vmem:[%s5708_s4 + $0xe8] sm:$0xff] }
 0x172   :  { %3051 = vmatprep.mubr.msk.f32.mxu1 %vm454_vm1, %v448_v14  ;;  %v839_v14 = vld [vmem:[%s5708_s4 + $0xf8] sm:$0xff] }
 0x175   :  { %3052 = vmatmul.mubr.msk.f32.gmra.mrb[50].mxu1 %vm454_vm1, %v449_v15 }
 0x176   :  { %3054 = vmatprep.mubr.msk.f32.mxu1 %vm454_vm1, %v450_v16  ;;  %v3244_v16 = vpack.c.bf16 %v834_v10, %v832_v9 }
 0x179   :  { %3055 = vmatmul.mubr.msk.f32.gmra.mrb[52].mxu1 %vm454_vm1, %v451_v17  ;;  %v3246_v17 = vpack.c.bf16 %v839_v14, %v837_v13  ;;  %v1074_v14 = vld [vmem:[%s5708_s4 + $0x2c0] sm:$0xff] }
 0x17a   :  { %3057 = vmatprep.mubr.msk.f32.mxu1 %vm454_vm1, %v452_v18  ;;  %v836_v18 = vld [vmem:[%s5708_s4 + $0xe0] sm:$0xff] }
 0x17d   :  { %3058 = vmatmul.mubr.msk.f32.gmra.mrb[54].mxu1 %vm454_vm1, %v453_v19  ;;  %v838_v19 = vld [vmem:[%s5708_s4 + $0xf0] sm:$0xff] }
 0x20c   :  { %v4305_v20 = vpop.f32.mrb[20].mxu1 }
 0x20d   :  { %v4307_v21 = vpop.f32.mrb[21].mxu1 }
 0x210   :  { %v4309_v22 = vpop.f32.mrb[22].mxu1 }
 0x211   :  { %v4317_v25 = vpop.f32.mrb[23].mxu1 }
 0x214   :  { %v3014_v29 = vpop.f32.mrb[24].mxu1 }
 0x215   :  { %v649_v33 = vpop.f32.mrb[25].mxu1 }
 0x216   :  { %937 = vmatmul.mubr.f32.vlgmr.msra.gmra.mrb[0].mxu0 %v649_v33  ;;  %v1055_v33 = vld [vmem:[%s5708_s4 + $0x228] sm:$0xff] }
 0x217   :  { %3221 = vmatpush1.bf16.msra.mxu0 %v3220_v28  ;;  %942 = vmatprep.mubr.f32.mxu0 %v3697_v11  ;;  %v3248_v28 = vpack.c.bf16 %v838_v19, %v836_v18  ;;  %v1079_v18 = vld [vmem:[%s5708_s4 + $0x2e8] sm:$0xff]  ;;  %v1081_v19 = vld [vmem:[%s5708_s4 + $0x2f8] sm:$0xff] }
 0x218   :  { %3223 = vmatprep.subr.bf16.mxu0 %v3222_v30  ;;  %v3017_v40 = vpop.f32.mrb[26].mxu1  ;;  %v1050_v30 = vld [vmem:[%s5708_s4 + $0x200] sm:$0xff] }
 0x219   :  { %v659_v43 = vpop.f32.mrb[27].mxu1 }
 0x21a   :  { %943 = vmatmul.mubr.f32.gmra.mrb[2].mxu0 %v3014_v29  ;;  %v3250_v29 = vpack.c.bf16 %v1053_v26, %v1051_v24  ;;  %v3278_v26 = vpack.c.bf16 %v1081_v19, %v1079_v18  ;;  %v1203_v19 = vld [vmem:[%s5708_s4 + $0x3c0] sm:$0xff] }
 0x21b   :  { %3225 = vmatpush1.bf16.msra.mxu0 %v3224_v36  ;;  %948 = vmatprep.mubr.f32.mxu0 %v3697_v11  ;;  %v3252_v36 = vpack.c.bf16 %v1052_v31, %v1050_v30  ;;  %v1180_v30 = vld [vmem:[%s5708_s4 + $0x308] sm:$0xff]  ;;  %v1182_v31 = vld [vmem:[%s5708_s4 + $0x318] sm:$0xff] }
 0x21c   :  { %3227 = vmatprep.subr.bf16.mxu0 %v3226_v37  ;;  %v4357_v48 = vpop.f32.mrb[28].mxu1  ;;  %v3254_v37 = vpack.c.bf16 %v1057_v34, %v1055_v33  ;;  %v3282_v34 = vpack.c.bf16 %v1182_v31, %v1180_v30 }
 0x21d   :  { %v4365_v53 = vpop.f32.mrb[29].mxu1 }
 0x21e   :  { %949 = vmatmul.mubr.f32.gmra.mrb[4].mxu0 %v659_v43 }
 0x21f   :  { %3229 = vmatpush1.bf16.msra.mxu0 %v3228_v44  ;;  %954 = vmatprep.mubr.f32.mxu0 %v3697_v11  ;;  %v3256_v44 = vpack.c.bf16 %v1056_v39, %v1054_v38  ;;  %v1184_v38 = vld [vmem:[%s5708_s4 + $0x328] sm:$0xff]  ;;  %v1186_v39 = vld [vmem:[%s5708_s4 + $0x338] sm:$0xff] }
 0x220   :  { %3231 = vmatprep.subr.bf16.mxu0 %v3230_v45  ;;  %v4374_v58 = vpop.f32.mrb[30].mxu1  ;;  %v3258_v45 = vpack.c.bf16 %v1061_v42, %v1059_v41 }
 0x221   :  { %v4382_v61 = vpop.f32.mrb[31].mxu1 }
 0x222   :  { %955 = vmatmul.mubr.f32.gmra.mrb[6].mxu0 %v3017_v40 }
 0x223   :  { %3233 = vmatpush1.bf16.msra.mxu0 %v3232_v54  ;;  %1025 = vmatprep.mubr.f32.mxu0 %v3697_v11 }
 0x224   :  { %3235 = vmatprep.subr.bf16.mxu0 %v3234_v55  ;;  %v4391_v2 = vpop.f32.mrb[32].mxu1  ;;  %v1062_v55 = vld [vmem:[%s5708_s4 + $0x260] sm:$0xff] }
 0x225   :  { %v4399_v5 = vpop.f32.mrb[33].mxu1  ;;  %v3264_v59 = vpack.c.bf16 %v1064_v56, %v1062_v55  ;;  %v1187_v55 = vld [vmem:[%s5708_s4 + $0x340] sm:$0xff]  ;;  %v1189_v56 = vld [vmem:[%s5708_s4 + $0x350] sm:$0xff] }
 0x227   :  { %3237 = vmatpush1.bf16.msra.mxu0 %v3236_v62  ;;  %v1066_v62 = vld [vmem:[%s5708_s4 + $0x280] sm:$0xff] }
 0x228   :  { %3239 = vmatprep.subr.bf16.mxu0 %v3238_v63  ;;  %v4407_v12 = vpop.f32.mrb[34].mxu1  ;;  %v1068_v63 = vld [vmem:[%s5708_s4 + $0x290] sm:$0xff] }
 0x229   :  { %v4415_v15 = vpop.f32.mrb[35].mxu1  ;;  %v3268_v1 = vpack.c.bf16 %v1068_v63, %v1066_v62  ;;  %v1193_v62 = vld [vmem:[%s5708_s4 + $0x370] sm:$0xff]  ;;  %v1196_v63 = vld [vmem:[%s5708_s4 + $0x388] sm:$0xff] }
 0x22b   :  { %3241 = vmatpush1.bf16.msra.mxu0 %v3240_v6  ;;  %v1072_v6 = vld [vmem:[%s5708_s4 + $0x2b0] sm:$0xff] }
 0x22c   :  { %3243 = vmatprep.subr.bf16.mxu0 %v3242_v8  ;;  %v4423_v23 = vpop.f32.mrb[36].mxu1  ;;  %v1075_v8 = vld [vmem:[%s5708_s4 + $0x2c8] sm:$0xff]  ;;  %v3272_v9 = vpack.c.bf16 %v1072_v6, %v1070_v4 }
 0x22d   :  { %v4431_v27 = vpop.f32.mrb[37].mxu1  ;;  %v1200_v4 = vld [vmem:[%s5708_s4 + $0x3a8] sm:$0xff] }
 0x22f   :  { %3245 = vmatpush1.bf16.msra.mxu0 %v3244_v16  ;;  %v1076_v16 = vld [vmem:[%s5708_s4 + $0x2d0] sm:$0xff] }
 0x230   :  { %3247 = vmatprep.subr.bf16.mxu0 %v3246_v17  ;;  %v4439_v32 = vpop.f32.mrb[38].mxu1  ;;  %v3276_v24 = vpack.c.bf16 %v1076_v16, %v1074_v14 }
 0x231   :  { %v4447_v35 = vpop.f32.mrb[39].mxu1 }
 0x233   :  { %3249 = vmatpush1.bf16.msra.mxu0 %v3248_v28  ;;  %v1078_v28 = vld [vmem:[%s5708_s4 + $0x2e0] sm:$0xff] }
 0x234   :  { %3251 = vmatprep.subr.bf16.mxu0 %v3250_v29  ;;  %v4455_v40 = vpop.f32.mrb[40].mxu1  ;;  %v1080_v29 = vld [vmem:[%s5708_s4 + $0x2f0] sm:$0xff] }
 0x235   :  { %v4463_v43 = vpop.f32.mrb[41].mxu1  ;;  %v3280_v33 = vpack.c.bf16 %v1080_v29, %v1078_v28  ;;  %v1208_v28 = vld [vmem:[%s5708_s4 + $0x3e8] sm:$0xff]  ;;  %v1210_v29 = vld [vmem:[%s5708_s4 + $0x3f8] sm:$0xff] }
 0x236   :  { %1026 = vmatmul.mubr.f32.vlgmr.msra.gmra.mrb[0].mxu0 %v4307_v21  ;;  %v1065_v21 = vld [vmem:[%s5708_s4 + $0x278] sm:$0xff]  ;;  %v3310_v31 = vpack.c.bf16 %v1210_v29, %v1208_v28  ;;  %v1332_v29 = vld [vmem:[%s5708_s4 + $0x4c0] sm:$0xff] }
 0x237   :  { %3253 = vmatpush1.bf16.msra.mxu0 %v3252_v36  ;;  %1031 = vmatprep.mubr.f32.mxu0 %v3697_v11  ;;  %v3262_v54 = vpack.c.bf16 %v1065_v21, %v1063_v49  ;;  %v1179_v36 = vld [vmem:[%s5708_s4 + $0x300] sm:$0xff]  ;;  %v1188_v49 = vld [vmem:[%s5708_s4 + $0x348] sm:$0xff]  ;;  %v1190_v21 = vld [vmem:[%s5708_s4 + $0x358] sm:$0xff] }
 0x238   :  { %3255 = vmatprep.subr.bf16.mxu0 %v3254_v37  ;;  %v4521_v10 = vpop.f32.mrb[42].mxu1  ;;  %v1181_v37 = vld [vmem:[%s5708_s4 + $0x310] sm:$0xff] }
 0x239   :  { %v4529_v17 = vpop.f32.mrb[43].mxu1  ;;  %v3284_v41 = vpack.c.bf16 %v1181_v37, %v1179_v36  ;;  %v1309_v36 = vld [vmem:[%s5708_s4 + $0x408] sm:$0xff]  ;;  %v1311_v37 = vld [vmem:[%s5708_s4 + $0x418] sm:$0xff] }
 0x23a   :  { %1032 = vmatmul.mubr.f32.gmra.mrb[2].mxu0 %v4305_v20  ;;  %v1069_v20 = vld [vmem:[%s5708_s4 + $0x298] sm:$0xff] }
 0x23b   :  { %3257 = vmatpush1.bf16.msra.mxu0 %v3256_v44  ;;  %1037 = vmatprep.mubr.f32.mxu0 %v3697_v11  ;;  %v3266_v60 = vpack.c.bf16 %v1069_v20, %v1067_v57  ;;  %v3286_v44 = vpack.c.bf16 %v1186_v39, %v1184_v38  ;;  %v1192_v57 = vld [vmem:[%s5708_s4 + $0x368] sm:$0xff]  ;;  %v3292_v20 = vpack.c.bf16 %v1189_v56, %v1187_v55 }
 0x23c   :  { %3259 = vmatprep.subr.bf16.mxu0 %v3258_v45  ;;  %v4561_v42 = vpop.f32.mrb[44].mxu1  ;;  %v1183_v45 = vld [vmem:[%s5708_s4 + $0x320] sm:$0xff]  ;;  %v3314_v39 = vpack.c.bf16 %v1311_v37, %v1309_v36  ;;  %v1317_v56 = vld [vmem:[%s5708_s4 + $0x448] sm:$0xff] }
 0x23d   :  { %v4569_v47 = vpop.f32.mrb[45].mxu1 }
 0x23e   :  { %1038 = vmatmul.mubr.f32.gmra.mrb[4].mxu0 %v4317_v25  ;;  %v1073_v25 = vld [vmem:[%s5708_s4 + $0x2b8] sm:$0xff] }
 0x23f   :  { %3261 = vmatpush1.bf16.msra.mxu0 %v3260_v52  ;;  %1043 = vmatprep.mubr.f32.mxu0 %v3697_v11  ;;  %v3270_v3 = vpack.c.bf16 %v1073_v25, %v1071_v0  ;;  %v3288_v52 = vpack.c.bf16 %v1185_v46, %v1183_v45  ;;  %v1313_v45 = vld [vmem:[%s5708_s4 + $0x428] sm:$0xff]  ;;  %v1315_v46 = vld [vmem:[%s5708_s4 + $0x438] sm:$0xff] }
 0x240   :  { %3263 = vmatprep.subr.bf16.mxu0 %v3262_v54  ;;  %v3290_v54 = vpack.c.bf16 %v1190_v21, %v1188_v49  ;;  %v4633_v16 = vpop.f32.mrb[46].mxu1  ;;  %v3318_v21 = vpack.c.bf16 %v1315_v46, %v1313_v45 }
 0x242   :  { %1044 = vmatmul.mubr.f32.gmra.mrb[6].mxu0 %v4309_v22  ;;  %v1077_v22 = vld [vmem:[%s5708_s4 + $0x2d8] sm:$0xff] }
 0x243   :  { %3265 = vmatpush1.bf16.msra.mxu0 %v3264_v59  ;;  %1146 = vmatprep.mubr.f32.mxu0 %v3697_v11  ;;  %v3274_v13 = vpack.c.bf16 %v1077_v22, %v1075_v8  ;;  %v1199_v22 = vld [vmem:[%s5708_s4 + $0x3a0] sm:$0xff] }
 0x244   :  { %3267 = vmatprep.subr.bf16.mxu0 %v3266_v60  ;;  %v1191_v60 = vld [vmem:[%s5708_s4 + $0x360] sm:$0xff] }
 0x245   :  { %v3296_v0 = vpack.c.bf16 %v1193_v62, %v1191_v60  ;;  %v1316_v60 = vld [vmem:[%s5708_s4 + $0x440] sm:$0xff]  ;;  %v1318_v62 = vld [vmem:[%s5708_s4 + $0x450] sm:$0xff] }
 0x247   :  { %3269 = vmatpush1.bf16.msra.mxu0 %v3268_v1  ;;  %v1195_v1 = vld [vmem:[%s5708_s4 + $0x380] sm:$0xff] }
 0x248   :  { %3271 = vmatprep.subr.bf16.mxu0 %v3270_v3  ;;  %v1197_v3 = vld [vmem:[%s5708_s4 + $0x390] sm:$0xff] }
 0x249   :  { %v3300_v6 = vpack.c.bf16 %v1197_v3, %v1195_v1  ;;  %v1322_v1 = vld [vmem:[%s5708_s4 + $0x470] sm:$0xff]  ;;  %v1325_v3 = vld [vmem:[%s5708_s4 + $0x488] sm:$0xff] }
 0x24b   :  { %3273 = vmatpush1.bf16.msra.mxu0 %v3272_v9  ;;  %v1201_v9 = vld [vmem:[%s5708_s4 + $0x3b0] sm:$0xff] }
 0x24c   :  { %3275 = vmatprep.subr.bf16.mxu0 %v3274_v13  ;;  %v1204_v13 = vld [vmem:[%s5708_s4 + $0x3c8] sm:$0xff]  ;;  %v3304_v14 = vpack.c.bf16 %v1201_v9, %v1199_v22 }
 0x24d   :  { %v1329_v22 = vld [vmem:[%s5708_s4 + $0x4a8] sm:$0xff] }
 0x24f   :  { %3277 = vmatpush1.bf16.msra.mxu0 %v3276_v24  ;;  %v1205_v24 = vld [vmem:[%s5708_s4 + $0x3d0] sm:$0xff] }
 0x250   :  { %3279 = vmatprep.subr.bf16.mxu0 %v3278_v26  ;;  %v4641_v26 = vpop.f32.mrb[47].mxu1  ;;  %v3308_v30 = vpack.c.bf16 %v1205_v24, %v1203_v19 }
 0x251   :  { %v4679_v55 = vpop.f32.mrb[48].mxu1 }
 0x253   :  { %3281 = vmatpush1.bf16.msra.mxu0 %v3280_v33  ;;  %v1207_v33 = vld [vmem:[%s5708_s4 + $0x3e0] sm:$0xff] }
 0x254   :  { %3283 = vmatprep.subr.bf16.mxu0 %v3282_v34  ;;  %v1209_v34 = vld [vmem:[%s5708_s4 + $0x3f0] sm:$0xff] }
 0x255   :  { %v3312_v38 = vpack.c.bf16 %v1209_v34, %v1207_v33  ;;  %v1337_v33 = vld [vmem:[%s5708_s4 + $0x4e8] sm:$0xff]  ;;  %v1339_v34 = vld [vmem:[%s5708_s4 + $0x4f8] sm:$0xff] }
 0x256   :  { %1147 = vmatmul.mubr.f32.vlgmr.msra.gmra.mrb[0].mxu0 %v4365_v53  ;;  %v1194_v53 = vld [vmem:[%s5708_s4 + $0x378] sm:$0xff]  ;;  %v3342_v37 = vpack.c.bf16 %v1339_v34, %v1337_v33  ;;  %v2063_v33 = vld [vmem:[%s5710_s6 + $0x180] sm:$0xff] }
 0x257   :  { %3285 = vmatpush1.bf16.msra.mxu0 %v3284_v41  ;;  %1152 = vmatprep.mubr.f32.mxu0 %v3697_v11  ;;  %v3294_v59 = vpack.c.bf16 %v1194_v53, %v1192_v57  ;;  %v1308_v41 = vld [vmem:[%s5708_s4 + $0x400] sm:$0xff]  ;;  %v1319_v57 = vld [vmem:[%s5708_s4 + $0x458] sm:$0xff]  ;;  %v4687_v53 = vpop.f32.mrb[49].mxu1 }
 0x258   :  { %3287 = vmatprep.subr.bf16.mxu0 %v3286_v44  ;;  %v1310_v44 = vld [vmem:[%s5708_s4 + $0x410] sm:$0xff]  ;;  %v4745_v24 = vpop.f32.mrb[50].mxu1  ;;  %v2047_v34 = vld [vmem:[%s5710_s6 + $0x100] sm:$0xff] }
 0x259   :  { %v3316_v49 = vpack.c.bf16 %v1310_v44, %v1308_v41  ;;  %v1438_v41 = vld [vmem:[%s5708_s4 + $0x508] sm:$0xff]  ;;  %v1440_v44 = vld [vmem:[%s5708_s4 + $0x518] sm:$0xff] }
 0x25a   :  { %1153 = vmatmul.mubr.f32.gmra.mrb[2].mxu0 %v4357_v48  ;;  %v1198_v48 = vld [vmem:[%s5708_s4 + $0x398] sm:$0xff]  ;;  %v3346_v46 = vpack.c.bf16 %v1440_v44, %v1438_v41 }
 0x25b   :  { %3289 = vmatpush1.bf16.msra.mxu0 %v3288_v52  ;;  %1158 = vmatprep.mubr.f32.mxu0 %v3697_v11  ;;  %v3298_v25 = vpack.c.bf16 %v1198_v48, %v1196_v63  ;;  %v1312_v52 = vld [vmem:[%s5708_s4 + $0x420] sm:$0xff]  ;;  %v1321_v63 = vld [vmem:[%s5708_s4 + $0x468] sm:$0xff]  ;;  %v3324_v48 = vpack.c.bf16 %v1318_v62, %v1316_v60  ;;  %v1443_v60 = vld [vmem:[%s5708_s4 + $0x530] sm:$0xff] }
 0x25c   :  { %3291 = vmatprep.subr.bf16.mxu0 %v3290_v54  ;;  %v1314_v54 = vld [vmem:[%s5708_s4 + $0x430] sm:$0xff]  ;;  %v2066_v41 = vld [vmem:[%s5710_s6 + $0x198] sm:$0xff] }
 0x25e   :  { %1159 = vmatmul.mubr.f32.gmra.mrb[4].mxu0 %v4382_v61  ;;  %v1202_v61 = vld [vmem:[%s5708_s4 + $0x3b8] sm:$0xff] }
 0x25f   :  { %3293 = vmatpush1.bf16.msra.mxu0 %v3292_v20  ;;  %1164 = vmatprep.mubr.f32.mxu0 %v3697_v11  ;;  %v3302_v8 = vpack.c.bf16 %v1202_v61, %v1200_v4  ;;  %v3320_v20 = vpack.c.bf16 %v1314_v54, %v1312_v52  ;;  %v1442_v52 = vld [vmem:[%s5708_s4 + $0x528] sm:$0xff]  ;;  %v1444_v54 = vld [vmem:[%s5708_s4 + $0x538] sm:$0xff] }
 0x260   :  { %3295 = vmatprep.subr.bf16.mxu0 %v3294_v59  ;;  %v3322_v59 = vpack.c.bf16 %v1319_v57, %v1317_v56 }
 0x262   :  { %1165 = vmatmul.mubr.f32.gmra.mrb[6].mxu0 %v4374_v58  ;;  %v1206_v58 = vld [vmem:[%s5708_s4 + $0x3d8] sm:$0xff] }
 0x263   :  { %3297 = vmatpush1.bf16.msra.mxu0 %v3296_v0  ;;  %1275 = vmatprep.mubr.f32.mxu0 %v3697_v11  ;;  %v3306_v18 = vpack.c.bf16 %v1206_v58, %v1204_v13  ;;  %v1328_v58 = vld [vmem:[%s5708_s4 + $0x4a0] sm:$0xff] }
 0x264   :  { %3299 = vmatprep.subr.bf16.mxu0 %v3298_v25  ;;  %v1320_v25 = vld [vmem:[%s5708_s4 + $0x460] sm:$0xff] }
 0x265   :  { %v3328_v4 = vpack.c.bf16 %v1322_v1, %v1320_v25  ;;  %v1445_v25 = vld [vmem:[%s5708_s4 + $0x540] sm:$0xff]  ;;  %v1447_v1 = vld [vmem:[%s5708_s4 + $0x550] sm:$0xff] }
 0x267   :  { %3301 = vmatpush1.bf16.msra.mxu0 %v3300_v6  ;;  %v1324_v6 = vld [vmem:[%s5708_s4 + $0x480] sm:$0xff] }
 0x268   :  { %3303 = vmatprep.subr.bf16.mxu0 %v3302_v8  ;;  %v1326_v8 = vld [vmem:[%s5708_s4 + $0x490] sm:$0xff] }
 0x269   :  { %v3332_v9 = vpack.c.bf16 %v1326_v8, %v1324_v6  ;;  %v1451_v6 = vld [vmem:[%s5708_s4 + $0x570] sm:$0xff] }
 0x26b   :  { %3305 = vmatpush1.bf16.msra.mxu0 %v3304_v14  ;;  %v1330_v14 = vld [vmem:[%s5708_s4 + $0x4b0] sm:$0xff] }
 0x26c   :  { %3307 = vmatprep.subr.bf16.mxu0 %v3306_v18  ;;  %v1333_v18 = vld [vmem:[%s5708_s4 + $0x4c8] sm:$0xff]  ;;  %v3336_v19 = vpack.c.bf16 %v1330_v14, %v1328_v58  ;;  %v1453_v58 = vld [vmem:[%s5708_s4 + $0x580] sm:$0xff]  ;;  %v1455_v14 = vld [vmem:[%s5708_s4 + $0x590] sm:$0xff] }
 0x26f   :  { %3309 = vmatpush1.bf16.msra.mxu0 %v3308_v30  ;;  %v1334_v30 = vld [vmem:[%s5708_s4 + $0x4d0] sm:$0xff] }
 0x270   :  { %3311 = vmatprep.subr.bf16.mxu0 %v3310_v31  ;;  %v4753_v31 = vpop.f32.mrb[51].mxu1  ;;  %v3340_v36 = vpack.c.bf16 %v1334_v30, %v1332_v29  ;;  %v1462_v29 = vld [vmem:[%s5708_s4 + $0x5c8] sm:$0xff]  ;;  %v1464_v30 = vld [vmem:[%s5708_s4 + $0x5d8] sm:$0xff] }
 0x271   :  { %v4785_v57 = vpop.f32.mrb[52].mxu1 }
 0x272   :  { %v4793_v62 = vpop.f32.mrb[53].mxu1 }
 0x273   :  { %3313 = vmatpush1.bf16.msra.mxu0 %v3312_v38  ;;  %v1336_v38 = vld [vmem:[%s5708_s4 + $0x4e0] sm:$0xff]  ;;  %v4823_v8 = vpop.f32.mrb[54].mxu1 }
 0x274   :  { %3315 = vmatprep.subr.bf16.mxu0 %v3314_v39  ;;  %v1338_v39 = vld [vmem:[%s5708_s4 + $0x4f0] sm:$0xff] }
 0x275   :  { %v3344_v45 = vpack.c.bf16 %v1338_v39, %v1336_v38  ;;  %v2048_v38 = vld [vmem:[%s5710_s6 + $0x108] sm:$0xff]  ;;  %v2065_v39 = vld [vmem:[%s5710_s6 + $0x190] sm:$0xff] }
 0x276   :  { %1276 = vmatmul.mubr.f32.vlgmr.msra.gmra.mrb[0].mxu0 %v4399_v5  ;;  %v1323_v5 = vld [vmem:[%s5708_s4 + $0x478] sm:$0xff]  ;;  %v3476_v44 = vpack.c.bf16 %v2048_v38, %v2047_v34  ;;  %v2055_v34 = vld [vmem:[%s5710_s6 + $0x140] sm:$0xff] }
 0x277   :  { %3317 = vmatpush1.bf16.msra.mxu0 %v3316_v49  ;;  %1281 = vmatprep.mubr.f32.mxu0 %v3697_v11  ;;  %v3326_v0 = vpack.c.bf16 %v1323_v5, %v1321_v63  ;;  %v1437_v49 = vld [vmem:[%s5708_s4 + $0x500] sm:$0xff]  ;;  %v1446_v63 = vld [vmem:[%s5708_s4 + $0x548] sm:$0xff]  ;;  %v1448_v5 = vld [vmem:[%s5708_s4 + $0x558] sm:$0xff] }
 0x278   :  { %3319 = vmatprep.subr.bf16.mxu0 %v3318_v21  ;;  %v1439_v21 = vld [vmem:[%s5708_s4 + $0x510] sm:$0xff]  ;;  %v2074_v38 = vld [vmem:[%s5710_s6 + $0x1d8] sm:$0xff] }
 0x279   :  { %v3348_v56 = vpack.c.bf16 %v1439_v21, %v1437_v49  ;;  %v2050_v49 = vld [vmem:[%s5710_s6 + $0x118] sm:$0xff]  ;;  %v2067_v21 = vld [vmem:[%s5710_s6 + $0x1a0] sm:$0xff] }
 0x27a   :  { %1282 = vmatmul.mubr.f32.gmra.mrb[2].mxu0 %v4391_v2  ;;  %v1327_v2 = vld [vmem:[%s5708_s4 + $0x498] sm:$0xff] }
 0x27b   :  { %3321 = vmatpush1.bf16.msra.mxu0 %v3320_v20  ;;  %1287 = vmatprep.mubr.f32.mxu0 %v3697_v11  ;;  %v3330_v61 = vpack.c.bf16 %v1327_v2, %v1325_v3  ;;  %v3350_v20 = vpack.c.bf16 %v1444_v54, %v1442_v52  ;;  %v1450_v3 = vld [vmem:[%s5708_s4 + $0x568] sm:$0xff]  ;;  %v3356_v2 = vpack.c.bf16 %v1447_v1, %v1445_v25  ;;  %v1468_v25 = vld [vmem:[%s5708_s4 + $0x5f8] sm:$0xff]  ;;  %v2069_v1 = vld [vmem:[%s5710_s6 + $0x1b0] sm:$0xff] }
 0x27c   :  { %3323 = vmatprep.subr.bf16.mxu0 %v3322_v59  ;;  %v1441_v59 = vld [vmem:[%s5708_s4 + $0x520] sm:$0xff]  ;;  %v2068_v52 = vld [vmem:[%s5710_s6 + $0x1a8] sm:$0xff] }
 0x27e   :  { %1288 = vmatmul.mubr.f32.gmra.mrb[4].mxu0 %v4415_v15  ;;  %v1331_v15 = vld [vmem:[%s5708_s4 + $0x4b8] sm:$0xff] }
 0x27f   :  { %3325 = vmatpush1.bf16.msra.mxu0 %v3324_v48  ;;  %1293 = vmatprep.mubr.f32.mxu0 %v3697_v11  ;;  %v3334_v13 = vpack.c.bf16 %v1331_v15, %v1329_v22  ;;  %v3352_v48 = vpack.c.bf16 %v1443_v60, %v1441_v59  ;;  %v1456_v22 = vld [vmem:[%s5708_s4 + $0x598] sm:$0xff]  ;;  %v4831_v15 = vpop.f32.mrb[55].mxu1  ;;  %v3370_v60 = vpack.c.bf16 %v1464_v30, %v1462_v29  ;;  %v1568_v29 = vld [vmem:[%s5708_s4 + $0x610] sm:$0xff]  ;;  %v1571_v30 = vld [vmem:[%s5708_s4 + $0x628] sm:$0xff] }
 0x280   :  { %3327 = vmatprep.subr.bf16.mxu0 %v3326_v0  ;;  %v3354_v0 = vpack.c.bf16 %v1448_v5, %v1446_v63  ;;  %v1466_v63 = vld [vmem:[%s5708_s4 + $0x5e8] sm:$0xff]  ;;  %v3482_v5 = vpack.c.bf16 %v2068_v52, %v2067_v21  ;;  %v1577_v21 = vld [vmem:[%s5708_s4 + $0x658] sm:$0xff] }
 0x282   :  { %1294 = vmatmul.mubr.f32.gmra.mrb[6].mxu0 %v4407_v12  ;;  %v1335_v12 = vld [vmem:[%s5708_s4 + $0x4d8] sm:$0xff] }
 0x283   :  { %3329 = vmatpush1.bf16.msra.mxu0 %v3328_v4  ;;  %1404 = vmatprep.mubr.f32.mxu0 %v3697_v11  ;;  %v3338_v28 = vpack.c.bf16 %v1335_v12, %v1333_v18  ;;  %v1458_v18 = vld [vmem:[%s5708_s4 + $0x5a8] sm:$0xff]  ;;  %v1457_v12 = vld [vmem:[%s5708_s4 + $0x5a0] sm:$0xff] }
 0x284   :  { %3331 = vmatprep.subr.bf16.mxu0 %v3330_v61  ;;  %v1449_v61 = vld [vmem:[%s5708_s4 + $0x560] sm:$0xff] }
 0x287   :  { %3333 = vmatpush1.bf16.msra.mxu0 %v3332_v9  ;;  %v3360_v9 = vpack.c.bf16 %v1451_v6, %v1449_v61  ;;  %v3374_v6 = vpack.c.bf16 %v1468_v25, %v1466_v63  ;;  %v1581_v25 = vld [vmem:[%s5708_s4 + $0x678] sm:$0xff] }
 0x288   :  { %3335 = vmatprep.subr.bf16.mxu0 %v3334_v13 }
 0x28b   :  { %3337 = vmatpush1.bf16.msra.mxu0 %v3336_v19  ;;  %v1459_v19 = vld [vmem:[%s5708_s4 + $0x5b0] sm:$0xff] }
 0x28c   :  { %3339 = vmatprep.subr.bf16.mxu0 %v3338_v28  ;;  %v3364_v28 = vpack.c.bf16 %v1455_v14, %v1453_v58  ;;  %v3368_v54 = vpack.c.bf16 %v1459_v19, %v1457_v12  ;;  %v1569_v58 = vld [vmem:[%s5708_s4 + $0x618] sm:$0xff]  ;;  %v2071_v14 = vld [vmem:[%s5710_s6 + $0x1c0] sm:$0xff] }
 0x28f   :  { %3341 = vmatpush1.bf16.msra.mxu0 %v3340_v36 }
 0x290   :  { %3343 = vmatprep.subr.bf16.mxu0 %v3342_v37 }
 0x293   :  { %3345 = vmatpush1.bf16.msra.mxu0 %v3344_v45  ;;  %v3478_v45 = vpack.c.bf16 %v2066_v41, %v2065_v39 }
 0x294   :  { %3347 = vmatprep.subr.bf16.mxu0 %v3346_v46  ;;  %v2049_v46 = vld [vmem:[%s5710_s6 + $0x110] sm:$0xff] }
 0x295   :  { %v3480_v59 = vpack.c.bf16 %v2050_v49, %v2049_v46  ;;  %v1575_v46 = vld [vmem:[%s5708_s4 + $0x648] sm:$0xff] }
 0x296   :  { %1405 = vmatmul.mubr.f32.vlgmr.msra.gmra.mrb[0].mxu0 %v4431_v27  ;;  %v1452_v27 = vld [vmem:[%s5708_s4 + $0x578] sm:$0xff]  ;;  %v3386_v63 = vpack.c.bf16 %v1577_v21, %v1575_v46 }
 0x297   :  { %3349 = vmatpush1.bf16.msra.mxu0 %v3348_v56  ;;  %1410 = vmatprep.mubr.f32.mxu0 %v3697_v11  ;;  %v3358_v4 = vpack.c.bf16 %v1452_v27, %v1450_v3  ;;  %v1461_v56 = vld [vmem:[%s5708_s4 + $0x5c0] sm:$0xff]  ;;  %v2070_v3 = vld [vmem:[%s5710_s6 + $0x1b8] sm:$0xff] }
 0x298   :  { %3351 = vmatprep.subr.bf16.mxu0 %v3350_v20  ;;  %v1463_v20 = vld [vmem:[%s5708_s4 + $0x5d0] sm:$0xff]  ;;  %v1698_v46 = vld [vmem:[%s5708_s4 + $0x718] sm:$0xff] }
 0x299   :  { %v3372_v27 = vpack.c.bf16 %v1463_v20, %v1461_v56  ;;  %v2058_v56 = vld [vmem:[%s5710_s6 + $0x158] sm:$0xff]  ;;  %v2075_v20 = vld [vmem:[%s5710_s6 + $0x1e0] sm:$0xff] }
 0x29a   :  { %1411 = vmatmul.mubr.f32.gmra.mrb[2].mxu0 %v4423_v23  ;;  %v1454_v23 = vld [vmem:[%s5708_s4 + $0x588] sm:$0xff] }
 0x29b   :  { %3353 = vmatpush1.bf16.msra.mxu0 %v3352_v48  ;;  %1416 = vmatprep.mubr.f32.mxu0 %v3697_v11  ;;  %v3362_v13 = vpack.c.bf16 %v1456_v22, %v1454_v23  ;;  %v2051_v48 = vld [vmem:[%s5710_s6 + $0x120] sm:$0xff]  ;;  %v1567_v23 = vld [vmem:[%s5708_s4 + $0x608] sm:$0xff]  ;;  %v3486_v22 = vpack.c.bf16 %v2070_v3, %v2069_v1 }
 0x29c   :  { %3355 = vmatprep.subr.bf16.mxu0 %v3354_v0  ;;  %v2052_v0 = vld [vmem:[%s5710_s6 + $0x128] sm:$0xff]  ;;  %v3378_v19 = vpack.c.bf16 %v1569_v58, %v1567_v23  ;;  %v2059_v3 = vld [vmem:[%s5710_s6 + $0x160] sm:$0xff] }
 0x29d   :  { %v3484_v61 = vpack.c.bf16 %v2052_v0, %v2051_v48  ;;  %v1579_v48 = vld [vmem:[%s5708_s4 + $0x668] sm:$0xff]  ;;  %v1582_v58 = vld [vmem:[%s5708_s4 + $0x680] sm:$0xff] }
 0x29e   :  { %1417 = vmatmul.mubr.f32.gmra.mrb[4].mxu0 %v4447_v35  ;;  %v1460_v35 = vld [vmem:[%s5708_s4 + $0x5b8] sm:$0xff] }
 0x29f   :  { %3357 = vmatpush1.bf16.msra.mxu0 %v3356_v2  ;;  %1422 = vmatprep.mubr.f32.mxu0 %v3697_v11  ;;  %v3366_v36 = vpack.c.bf16 %v1460_v35, %v1458_v18  ;;  %v1465_v2 = vld [vmem:[%s5708_s4 + $0x5e0] sm:$0xff]  ;;  %v2072_v18 = vld [vmem:[%s5710_s6 + $0x1c8] sm:$0xff] }
 0x2a0   :  { %3359 = vmatprep.subr.bf16.mxu0 %v3358_v4  ;;  %v1467_v4 = vld [vmem:[%s5708_s4 + $0x5f0] sm:$0xff] }
 0x2a1   :  { %v3376_v35 = vpack.c.bf16 %v1467_v4, %v1465_v2  ;;  %v3390_v4 = vpack.c.bf16 %v1581_v25, %v1579_v48  ;;  %v1706_v48 = vld [vmem:[%s5708_s4 + $0x758] sm:$0xff] }
 0x2a2   :  { %1423 = vmatmul.mubr.f32.gmra.mrb[6].mxu0 %v4439_v32  ;;  %v2064_v32 = vld [vmem:[%s5710_s6 + $0x188] sm:$0xff] }
 0x2a3   :  { %3361 = vmatpush1.bf16.msra.mxu0 %v3360_v9  ;;  %1533 = vmatprep.mubr.f32.mxu0 %v3697_v11  ;;  %v3474_v37 = vpack.c.bf16 %v2064_v32, %v2063_v33  ;;  %v2053_v9 = vld [vmem:[%s5710_s6 + $0x130] sm:$0xff]  ;;  %v3490_v33 = vpack.c.bf16 %v2072_v18, %v2071_v14  ;;  %v1573_v32 = vld [vmem:[%s5708_s4 + $0x638] sm:$0xff]  ;;  %v1587_v18 = vld [vmem:[%s5708_s4 + $0x6a8] sm:$0xff] }
 0x2a4   :  { %3363 = vmatprep.subr.bf16.mxu0 %v3362_v13  ;;  %v2054_v13 = vld [vmem:[%s5710_s6 + $0x138] sm:$0xff]  ;;  %v3382_v41 = vpack.c.bf16 %v1573_v32, %v1571_v30  ;;  %v1584_v14 = vld [vmem:[%s5708_s4 + $0x690] sm:$0xff]  ;;  %v1590_v32 = vld [vmem:[%s5708_s4 + $0x6c0] sm:$0xff] }
 0x2a5   :  { %3475 = vmatprep.subr.bf16.mxu1 %v3474_v37  ;;  %v3488_v12 = vpack.c.bf16 %v2054_v13, %v2053_v9  ;;  %v2073_v37 = vld [vmem:[%s5710_s6 + $0x1d0] sm:$0xff] }
 0x2a6   :  { %3477 = vmatpush3.bf16.msra.mxu1 %v3476_v44  ;;  %v1570_v44 = vld [vmem:[%s5708_s4 + $0x620] sm:$0xff]  ;;  %v3494_v52 = vpack.c.bf16 %v2074_v38, %v2073_v37  ;;  %v1597_v37 = vld [vmem:[%s5708_s4 + $0x6f8] sm:$0xff] }
 0x2a7   :  { %3365 = vmatpush1.bf16.msra.mxu0 %v3364_v28  ;;  %3479 = vmatprep.subr.bf16.mxu1 %v3478_v45  ;;  %v1566_v28 = vld [vmem:[%s5708_s4 + $0x600] sm:$0xff]  ;;  %v1572_v45 = vld [vmem:[%s5708_s4 + $0x630] sm:$0xff] }
 0x2a8   :  { %3367 = vmatprep.subr.bf16.mxu0 %v3366_v36  ;;  %v2056_v36 = vld [vmem:[%s5710_s6 + $0x148] sm:$0xff]  ;;  %v3380_v39 = vpack.c.bf16 %v1568_v29, %v1566_v28  ;;  %v1588_v28 = vld [vmem:[%s5708_s4 + $0x6b0] sm:$0xff] }
 0x2a9   :  { %v3492_v49 = vpack.c.bf16 %v2056_v36, %v2055_v34  ;;  %v1591_v29 = vld [vmem:[%s5708_s4 + $0x6c8] sm:$0xff]  ;;  %v1592_v34 = vld [vmem:[%s5708_s4 + $0x6d0] sm:$0xff] }
 0x2aa   :  { %3481 = vmatpush3.bf16.msra.mxu1 %v3480_v59  ;;  %v2076_v59 = vld [vmem:[%s5710_s6 + $0x1e8] sm:$0xff]  ;;  %v3404_v38 = vpack.c.bf16 %v1592_v34, %v1590_v32 }
 0x2ab   :  { %3369 = vmatpush1.bf16.msra.mxu0 %v3368_v54  ;;  %3483 = vmatprep.subr.bf16.mxu1 %v3482_v5  ;;  %v2057_v54 = vld [vmem:[%s5710_s6 + $0x150] sm:$0xff]  ;;  %v1574_v5 = vld [vmem:[%s5708_s4 + $0x640] sm:$0xff]  ;;  %v3498_v1 = vpack.c.bf16 %v2076_v59, %v2075_v20  ;;  %v1595_v36 = vld [vmem:[%s5708_s4 + $0x6e8] sm:$0xff] }
 0x2ac   :  { %3371 = vmatprep.subr.bf16.mxu0 %v3370_v60  ;;  %v3384_v60 = vpack.c.bf16 %v1572_v45, %v1570_v44  ;;  %v3496_v0 = vpack.c.bf16 %v2058_v56, %v2057_v54  ;;  %v1596_v44 = vld [vmem:[%s5708_s4 + $0x6f0] sm:$0xff]  ;;  %v1696_v45 = vld [vmem:[%s5708_s4 + $0x708] sm:$0xff]  ;;  %v1702_v20 = vld [vmem:[%s5708_s4 + $0x738] sm:$0xff] }
 0x2ad   :  { %v3410_v21 = vpack.c.bf16 %v1698_v46, %v1696_v45  ;;  %v1697_v54 = vld [vmem:[%s5708_s4 + $0x710] sm:$0xff]  ;;  %v1700_v56 = vld [vmem:[%s5708_s4 + $0x728] sm:$0xff]  ;;  %v1824_v45 = vld [vmem:[%s5708_s4 + $0x800] sm:$0xff] }
 0x2ae   :  { %3485 = vmatpush3.bf16.msra.mxu1 %v3484_v61  ;;  %v1578_v61 = vld [vmem:[%s5708_s4 + $0x660] sm:$0xff]  ;;  %v1826_v46 = vld [vmem:[%s5708_s4 + $0x810] sm:$0xff] }
 0x2af   :  { %3373 = vmatpush1.bf16.msra.mxu0 %v3372_v27  ;;  %3487 = vmatprep.subr.bf16.mxu1 %v3486_v22  ;;  %v2060_v27 = vld [vmem:[%s5710_s6 + $0x168] sm:$0xff]  ;;  %v1585_v22 = vld [vmem:[%s5708_s4 + $0x698] sm:$0xff] }
 0x2b0   :  { %3375 = vmatprep.subr.bf16.mxu0 %v3374_v6  ;;  %v1580_v6 = vld [vmem:[%s5708_s4 + $0x670] sm:$0xff]  ;;  %v3500_v23 = vpack.c.bf16 %v2060_v27, %v2059_v3  ;;  %v1708_v27 = vld [vmem:[%s5708_s4 + $0x768] sm:$0xff] }
 0x2b1   :  { %v3392_v9 = vpack.c.bf16 %v1580_v6, %v1578_v61  ;;  %v1705_v3 = vld [vmem:[%s5708_s4 + $0x750] sm:$0xff]  ;;  %v1707_v61 = vld [vmem:[%s5708_s4 + $0x760] sm:$0xff] }
 0x2b2   :  { %3489 = vmatpush3.bf16.msra.mxu1 %v3488_v12  ;;  %v1709_v6 = vld [vmem:[%s5708_s4 + $0x770] sm:$0xff] }
 0x2b3   :  { %3377 = vmatpush1.bf16.msra.mxu0 %v3376_v35  ;;  %3491 = vmatprep.subr.bf16.mxu1 %v3490_v33  ;;  %v3396_v35 = vpack.c.bf16 %v1584_v14, %v1582_v58  ;;  %v1716_v58 = vld [vmem:[%s5708_s4 + $0x7a8] sm:$0xff] }
 0x2b4   :  { %3379 = vmatprep.subr.bf16.mxu0 %v3378_v19  ;;  %v1586_v19 = vld [vmem:[%s5708_s4 + $0x6a0] sm:$0xff] }
 0x2b5   :  { %v3400_v30 = vpack.c.bf16 %v1588_v28, %v1586_v19 }
 0x2b6   :  { %1534 = vmatmul.mubr.f32.vlgmr.msra.gmra.mrb[0].mxu0 %v4463_v43  ;;  %v1576_v43 = vld [vmem:[%s5708_s4 + $0x650] sm:$0xff]  ;;  %3493 = vmatpush3.bf16.msra.mxu1 %v3492_v49 }
 0x2b7   :  { %3381 = vmatpush1.bf16.msra.mxu0 %v3380_v39  ;;  %1539 = vmatprep.mubr.f32.mxu0 %v3697_v11  ;;  %v3388_v2 = vpack.c.bf16 %v1576_v43, %v1574_v5  ;;  %v3406_v39 = vpack.c.bf16 %v1597_v37, %v1595_v36  ;;  %v1701_v5 = vld [vmem:[%s5708_s4 + $0x730] sm:$0xff]  ;;  %v1704_v43 = vld [vmem:[%s5708_s4 + $0x748] sm:$0xff]  ;;  %v1723_v36 = vld [vmem:[%s5708_s4 + $0x7e0] sm:$0xff] }
 0x2b8   :  { %3383 = vmatprep.subr.bf16.mxu0 %v3382_v41  ;;  %3495 = vmatprep.subr.bf16.mxu1 %v3494_v52  ;;  %v1594_v41 = vld [vmem:[%s5708_s4 + $0x6e0] sm:$0xff]  ;;  %v3418_v25 = vpack.c.bf16 %v1706_v48, %v1704_v43  ;;  %v1725_v37 = vld [vmem:[%s5708_s4 + $0x7f0] sm:$0xff] }
 0x2b9   :  { %v3408_v49 = vpack.c.bf16 %v1596_v44, %v1594_v41  ;;  %v1695_v52 = vld [vmem:[%s5708_s4 + $0x700] sm:$0xff]  ;;  %v3440_v41 = vpack.c.bf16 %v1725_v37, %v1723_v36  ;;  %v1834_v48 = vld [vmem:[%s5708_s4 + $0x850] sm:$0xff]  ;;  %v1961_v36 = vsub.s32 2, %v4121_v50 }
 0x2ba   :  { %1540 = vmatmul.mubr.f32.gmra.mrb[2].mxu0 %v4455_v40  ;;  %3497 = vmatpush3.bf16.msra.mxu1 %v3496_v0  ;;  %v1583_v40 = vld [vmem:[%s5708_s4 + $0x688] sm:$0xff]  ;;  %v3412_v59 = vpack.c.bf16 %v1697_v54, %v1695_v52  ;;  %v3444_v52 = vpack.c.bf16 %v1826_v46, %v1824_v45  ;;  %v1832_v43 = vld [vmem:[%s5708_s4 + $0x840] sm:$0xff]  ;;  %v1995_v45 = vsub.s32 3, %v4121_v50 }
 0x2bb   :  { %3385 = vmatpush1.bf16.msra.mxu0 %v3384_v60  ;;  %1545 = vmatprep.mubr.f32.mxu0 %v3697_v11  ;;  %v3394_v13 = vpack.c.bf16 %v1585_v22, %v1583_v40  ;;  %v3414_v60 = vpack.c.bf16 %v1702_v20, %v1700_v56  ;;  %v3424_v40 = vpack.c.bf16 %v1709_v6, %v1707_v61  ;;  %v1828_v56 = vld [vmem:[%s5708_s4 + $0x820] sm:$0xff]  ;;  %v1830_v20 = vld [vmem:[%s5708_s4 + $0x830] sm:$0xff] }
 0x2bc   :  { %3387 = vmatprep.subr.bf16.mxu0 %v3386_v63  ;;  %3499 = vmatprep.subr.bf16.mxu1 %v3498_v1  ;;  %v1699_v63 = vld [vmem:[%s5708_s4 + $0x720] sm:$0xff]  ;;  %v1842_v6 = vld [vmem:[%s5708_s4 + $0x890] sm:$0xff] }
 0x2bd   :  { %v3416_v0 = vpack.c.bf16 %v1701_v5, %v1699_v63  ;;  %v1703_v1 = vld [vmem:[%s5708_s4 + $0x740] sm:$0xff]  ;;  %v3448_v63 = vpack.c.bf16 %v1830_v20, %v1828_v56 }
 0x2be   :  { %1546 = vmatmul.mubr.f32.gmra.mrb[4].mxu0 %v4529_v17  ;;  %3501 = vmatpush3.bf16.msra.mxu1 %v3500_v23  ;;  %v1589_v17 = vld [vmem:[%s5708_s4 + $0x6b8] sm:$0xff]  ;;  %v1712_v23 = vld [vmem:[%s5708_s4 + $0x788] sm:$0xff]  ;;  %v1840_v61 = vld [vmem:[%s5708_s4 + $0x880] sm:$0xff] }
 0x2bf   :  { %3389 = vmatpush1.bf16.msra.mxu0 %v3388_v2  ;;  %1551 = vmatprep.mubr.f32.mxu0 %v3697_v11  ;;  %v3398_v12 = vpack.c.bf16 %v1589_v17, %v1587_v18  ;;  %v3420_v2 = vpack.c.bf16 %v1705_v3, %v1703_v1  ;;  %v1715_v17 = vld [vmem:[%s5708_s4 + $0x7a0] sm:$0xff] }
 0x2c0   :  { %3391 = vmatprep.subr.bf16.mxu0 %v3390_v4  ;;  %v1836_v3 = vld [vmem:[%s5708_s4 + $0x860] sm:$0xff] }
 0x2c1   :  { %v1953_v37 = vld [vmem:[%s5711_s5] sm:$0xf] }
 0x2c2   :  { %1552 = vmatmul.mubr.f32.gmra.mrb[6].mxu0 %v4521_v10  ;;  %v1593_v10 = vld [vmem:[%s5708_s4 + $0x6d8] sm:$0xff]  ;;  %v1992_v56 = vrot.slane %v1953_v37, %v4131_v7  ;;  %v2015_v50 = vld [vmem:[%s5710_s6] sm:$0xff] }
 0x2c3   :  { %3393 = vmatpush1.bf16.msra.mxu0 %v3392_v9  ;;  %1662 = vmatprep.mubr.f32.mxu0 %v3697_v11  ;;  %v3402_v33 = vpack.c.bf16 %v1593_v10, %v1591_v29  ;;  %v1711_v9 = vld [vmem:[%s5708_s4 + $0x780] sm:$0xff]  ;;  %v1721_v10 = vld [vmem:[%s5708_s4 + $0x7d0] sm:$0xff] }
 0x2c4   :  { %3395 = vmatprep.subr.bf16.mxu0 %v3394_v13  ;;  %v1713_v13 = vld [vmem:[%s5708_s4 + $0x790] sm:$0xff]  ;;  %v1719_v29 = vld [vmem:[%s5708_s4 + $0x7c0] sm:$0xff] }
 0x2c5   :  { %v3428_v14 = vpack.c.bf16 %v1713_v13, %v1711_v9  ;;  %v3436_v32 = vpack.c.bf16 %v1721_v10, %v1719_v29  ;;  %v1846_v9 = vld [vmem:[%s5708_s4 + $0x8b0] sm:$0xff]  ;;  %v1849_v13 = vld [vmem:[%s5708_s4 + $0x8c8] sm:$0xff] }
 0x2c6   :  { %v2077_v10 = vld [vmem:[%s5710_s6 + $0x1f0] sm:$0xff] }
 0x2c7   :  { %3397 = vmatpush1.bf16.msra.mxu0 %v3396_v35  ;;  %v1717_v35 = vld [vmem:[%s5708_s4 + $0x7b0] sm:$0xff] }
 0x2c8   :  { %3399 = vmatprep.subr.bf16.mxu0 %v3398_v12  ;;  %v1720_v12 = vld [vmem:[%s5708_s4 + $0x7c8] sm:$0xff]  ;;  %v3432_v19 = vpack.c.bf16 %v1717_v35, %v1715_v17  ;;  %v1855_v35 = vld [vmem:[%s5708_s4 + $0x8f8] sm:$0xff] }
 0x2c9   :  { %v1853_v17 = vld [vmem:[%s5708_s4 + $0x8e8] sm:$0xff] }
 0x2cb   :  { %3401 = vmatpush1.bf16.msra.mxu0 %v3400_v30  ;;  %v1724_v30 = vld [vmem:[%s5708_s4 + $0x7e8] sm:$0xff] }
 0x2cc   :  { %3403 = vmatprep.subr.bf16.mxu0 %v3402_v33  ;;  %v1726_v33 = vld [vmem:[%s5708_s4 + $0x7f8] sm:$0xff] }
 0x2cd   :  { %v3438_v34 = vpack.c.bf16 %v1726_v33, %v1724_v30 }
 0x2cf   :  { %3405 = vmatpush1.bf16.msra.mxu0 %v3404_v38  ;;  %v1825_v38 = vld [vmem:[%s5708_s4 + $0x808] sm:$0xff] }
 0x2d0   :  { %3407 = vmatprep.subr.bf16.mxu0 %v3406_v39  ;;  %v1827_v39 = vld [vmem:[%s5708_s4 + $0x818] sm:$0xff] }
 0x2d1   :  { %v3442_v44 = vpack.c.bf16 %v1827_v39, %v1825_v38  ;;  %v1962_v38 = vrot.slane %v1953_v37, %v1961_v36  ;;  %v1958_v39 = vrot.slane %v1953_v37, %v4124_v51  ;;  %v2023_v36 = vld [vmem:[%s5710_s6 + $0x40] sm:$0xff] }
 0x2d3   :  { %3409 = vmatpush1.bf16.msra.mxu0 %v3408_v49  ;;  %v1829_v49 = vld [vmem:[%s5708_s4 + $0x828] sm:$0xff] }
 0x2d4   :  { %3411 = vmatprep.subr.bf16.mxu0 %v3410_v21  ;;  %v1831_v21 = vld [vmem:[%s5708_s4 + $0x838] sm:$0xff] }
 0x2d5   :  { %v3446_v54 = vpack.c.bf16 %v1831_v21, %v1829_v49  ;;  %v5312_v49 = vrot.slane %v1958_v39, %v4124_v51  ;;  %v2042_v39 = vld [vmem:[%s5710_s6 + $0xd8] sm:$0xff] }
 0x2d6   :  { %1663 = vmatmul.mubr.f32.vlgmr.msra.gmra.mrb[0].mxu0 %v4569_v47  ;;  %v1710_v47 = vld [vmem:[%s5708_s4 + $0x778] sm:$0xff] }
 0x2d7   :  { %3413 = vmatpush1.bf16.msra.mxu0 %v3412_v59  ;;  %1668 = vmatprep.mubr.f32.mxu0 %v3697_v11  ;;  %v3422_v4 = vpack.c.bf16 %v1710_v47, %v1708_v27  ;;  %v1833_v59 = vld [vmem:[%s5708_s4 + $0x848] sm:$0xff]  ;;  %v1838_v27 = vld [vmem:[%s5708_s4 + $0x870] sm:$0xff] }
 0x2d8   :  { %3415 = vmatprep.subr.bf16.mxu0 %v3414_v60  ;;  %v1835_v60 = vld [vmem:[%s5708_s4 + $0x858] sm:$0xff]  ;;  %v1841_v47 = vld [vmem:[%s5708_s4 + $0x888] sm:$0xff] }
 0x2d9   :  { %v3450_v5 = vpack.c.bf16 %v1835_v60, %v1833_v59 }
 0x2da   :  { %1669 = vmatmul.mubr.f32.gmra.mrb[2].mxu0 %v4561_v42  ;;  %v1714_v42 = vld [vmem:[%s5708_s4 + $0x798] sm:$0xff] }
 0x2db   :  { %3417 = vmatpush1.bf16.msra.mxu0 %v3416_v0  ;;  %1674 = vmatprep.mubr.f32.mxu0 %v3697_v11  ;;  %v3426_v22 = vpack.c.bf16 %v1714_v42, %v1712_v23  ;;  %v1837_v0 = vld [vmem:[%s5708_s4 + $0x868] sm:$0xff]  ;;  %v3460_v42 = vpack.c.bf16 %v1842_v6, %v1840_v61 }
 0x2dc   :  { %3419 = vmatprep.subr.bf16.mxu0 %v3418_v25  ;;  %v3452_v25 = vpack.c.bf16 %v1834_v48, %v1832_v43  ;;  %v1845_v23 = vld [vmem:[%s5708_s4 + $0x8a8] sm:$0xff] }
 0x2de   :  { %1675 = vmatmul.mubr.f32.gmra.mrb[4].mxu0 %v4641_v26  ;;  %v1718_v26 = vld [vmem:[%s5708_s4 + $0x7b8] sm:$0xff] }
 0x2df   :  { %3421 = vmatpush1.bf16.msra.mxu0 %v3420_v2  ;;  %1680 = vmatprep.mubr.f32.mxu0 %v3697_v11  ;;  %v3430_v18 = vpack.c.bf16 %v1718_v26, %v1716_v58  ;;  %v3456_v2 = vpack.c.bf16 %v1838_v27, %v1836_v3  ;;  %v5334_v3 = vrot.slane %v1992_v56, %v4131_v7  ;;  %v2044_v56 = vld [vmem:[%s5710_s6 + $0xe8] sm:$0xff] }
 0x2e0   :  { %3423 = vmatprep.subr.bf16.mxu0 %v3422_v4 }
 0x2e2   :  { %1681 = vmatmul.mubr.f32.gmra.mrb[6].mxu0 %v4633_v16  ;;  %v1722_v16 = vld [vmem:[%s5708_s4 + $0x7d8] sm:$0xff] }
 0x2e3   :  { %3425 = vmatpush1.bf16.msra.mxu0 %v3424_v40  ;;  %1791 = vmatprep.mubr.f32.mxu0 %v3697_v11  ;;  %v3434_v28 = vpack.c.bf16 %v1722_v16, %v1720_v12  ;;  %v3470_v16 = vpack.c.bf16 %v1855_v35, %v1853_v17  ;;  %v2019_v35 = vld [vmem:[%s5710_s6 + $0x20] sm:$0xff] }
 0x2e4   :  { %3427 = vmatprep.subr.bf16.mxu0 %v3426_v22  ;;  %v1844_v22 = vld [vmem:[%s5708_s4 + $0x8a0] sm:$0xff] }
 0x2e5   :  { %v3464_v58 = vpack.c.bf16 %v1846_v9, %v1844_v22  ;;  %v2035_v22 = vld [vmem:[%s5710_s6 + $0xa0] sm:$0xff]  ;;  %v2036_v9 = vld [vmem:[%s5710_s6 + $0xa8] sm:$0xff] }
 0x2e6   :  { %v3514_v17 = vpack.c.bf16 %v2036_v9, %v2035_v22  ;;  %v2221_v22 = vld [vmem:[%s5710_s6 + $0x210] sm:$0xff]  ;;  %v2222_v9 = vld [vmem:[%s5710_s6 + $0x218] sm:$0xff] }
 0x2e7   :  { %3429 = vmatpush1.bf16.msra.mxu0 %v3428_v14  ;;  %v1848_v14 = vld [vmem:[%s5708_s4 + $0x8c0] sm:$0xff] }
 0x2e8   :  { %3431 = vmatprep.subr.bf16.mxu0 %v3430_v18  ;;  %v1850_v18 = vld [vmem:[%s5708_s4 + $0x8d0] sm:$0xff] }
 0x2e9   :  { %v3468_v12 = vpack.c.bf16 %v1850_v18, %v1848_v14 }
 0x2eb   :  { %3433 = vmatpush1.bf16.msra.mxu0 %v3432_v19  ;;  %v1852_v19 = vld [vmem:[%s5708_s4 + $0x8e0] sm:$0xff] }
 0x2ec   :  { %3435 = vmatprep.subr.bf16.mxu0 %v3434_v28  ;;  %v1854_v28 = vld [vmem:[%s5708_s4 + $0x8f0] sm:$0xff] }
 0x2ed   :  { %v3472_v29 = vpack.c.bf16 %v1854_v28, %v1852_v19  ;;  %v2037_v19 = vld [vmem:[%s5710_s6 + $0xb0] sm:$0xff]  ;;  %v2038_v28 = vld [vmem:[%s5710_s6 + $0xb8] sm:$0xff] }
 0x2ef   :  { %3437 = vmatpush1.bf16.msra.mxu0 %v3436_v32  ;;  %v2032_v32 = vld [vmem:[%s5710_s6 + $0x88] sm:$0xff] }
 0x2f0   :  { %3439 = vmatprep.subr.bf16.mxu0 %v3438_v34 }
 0x2f3   :  { %3441 = vmatpush1.bf16.msra.mxu0 %v3440_v41 }
 0x2f4   :  { %3443 = vmatprep.subr.bf16.mxu0 %v3442_v44  ;;  %v5308_v44 = vrot.slane %v1962_v38, %v4124_v51  ;;  %v2041_v38 = vld [vmem:[%s5710_s6 + $0xd0] sm:$0xff] }
 0x2f6   :  { %1792 = vmatmul.mubr.f32.vlgmr.msra.gmra.mrb[0].mxu0 %v4687_v53  ;;  %v1839_v53 = vld [vmem:[%s5708_s4 + $0x878] sm:$0xff] }
 0x2f7   :  { %3445 = vmatpush1.bf16.msra.mxu0 %v3444_v52  ;;  %1797 = vmatprep.mubr.f32.mxu0 %v3697_v11  ;;  %v3454_v1 = vpack.c.bf16 %v1839_v53, %v1837_v0  ;;  %v1996_v52 = vrot.slane %v1953_v37, %v1995_v45  ;;  %v2024_v37 = vld [vmem:[%s5710_s6 + $0x48] sm:$0xff] }
 0x2f8   :  { %3447 = vmatprep.subr.bf16.mxu0 %v3446_v54  ;;  %v3524_v45 = vpack.c.bf16 %v2024_v37, %v2023_v36 }
 0x2f9   :  { %v5325_v48 = vrot.slane %v1996_v52, %v4131_v7  ;;  %v2026_v52 = vld [vmem:[%s5710_s6 + $0x58] sm:$0xff] }
 0x2fa   :  { %1798 = vmatmul.mubr.f32.gmra.mrb[2].mxu0 %v4679_v55  ;;  %v1843_v55 = vld [vmem:[%s5708_s4 + $0x898] sm:$0xff] }
 0x2fb   :  { %3449 = vmatpush1.bf16.msra.mxu0 %v3448_v63  ;;  %1803 = vmatprep.mubr.f32.mxu0 %v3697_v11  ;;  %v3458_v4 = vpack.c.bf16 %v1843_v55, %v1841_v47 }
 0x2fc   :  { %3451 = vmatprep.subr.bf16.mxu0 %v3450_v5  ;;  %v2016_v5 = vld [vmem:[%s5710_s6 + $0x8] sm:$0xff] }
 0x2fe   :  { %1804 = vmatmul.mubr.f32.gmra.mrb[4].mxu0 %v4753_v31  ;;  %v1847_v31 = vld [vmem:[%s5708_s4 + $0x8b8] sm:$0xff] }
 0x2ff   :  { %3453 = vmatpush1.bf16.msra.mxu0 %v3452_v25  ;;  %1809 = vmatprep.mubr.f32.mxu0 %v3697_v11  ;;  %v3462_v40 = vpack.c.bf16 %v1847_v31, %v1845_v23  ;;  %v2033_v25 = vld [vmem:[%s5710_s6 + $0x90] sm:$0xff]  ;;  %v2018_v31 = vld [vmem:[%s5710_s6 + $0x18] sm:$0xff] }
 0x300   :  { %3455 = vmatprep.subr.bf16.mxu0 %v3454_v1  ;;  %v2034_v1 = vld [vmem:[%s5710_s6 + $0x98] sm:$0xff]  ;;  %v2017_v23 = vld [vmem:[%s5710_s6 + $0x10] sm:$0xff] }
 0x301   :  { %v3510_v6 = vpack.c.bf16 %v2034_v1, %v2033_v25  ;;  %v3512_v14 = vpack.c.bf16 %v2018_v31, %v2017_v23  ;;  %v2029_v25 = vld [vmem:[%s5710_s6 + $0x70] sm:$0xff]  ;;  %v2030_v1 = vld [vmem:[%s5710_s6 + $0x78] sm:$0xff] }
 0x302   :  { %1810 = vmatmul.mubr.f32.gmra.mrb[6].mxu0 %v4745_v24  ;;  %v1851_v24 = vld [vmem:[%s5708_s4 + $0x8d8] sm:$0xff] }
 0x303   :  { %3457 = vmatpush1.bf16.msra.mxu0 %v3456_v2  ;;  %1920 = vmatprep.mubr.f32.mxu0 %v3697_v11  ;;  %v3466_v26 = vpack.c.bf16 %v1851_v24, %v1849_v13  ;;  %v3508_v2 = vpack.c.bf16 %v2016_v5, %v2015_v50  ;;  %v2045_v50 = vld [vmem:[%s5710_s6 + $0xf0] sm:$0xff]  ;;  %v2046_v5 = vld [vmem:[%s5710_s6 + $0xf8] sm:$0xff] }
 0x304   :  { %3459 = vmatprep.subr.bf16.mxu0 %v3458_v4  ;;  %v2238_v23 = vld [vmem:[%s5710_s6 + $0x298] sm:$0xff] }
 0x307   :  { %3461 = vmatpush1.bf16.msra.mxu0 %v3460_v42 }
 0x308   :  { %3463 = vmatprep.subr.bf16.mxu0 %v3462_v40 }
 0x30b   :  { %3465 = vmatpush1.bf16.msra.mxu0 %v3464_v58 }
 0x30c   :  { %3467 = vmatprep.subr.bf16.mxu0 %v3466_v26 }
 0x30f   :  { %3469 = vmatpush1.bf16.msra.mxu0 %v3468_v12  ;;  %v2020_v12 = vld [vmem:[%s5710_s6 + $0x28] sm:$0xff] }
 0x310   :  { %3471 = vmatprep.subr.bf16.mxu0 %v3470_v16 }
 0x313   :  { %3473 = vmatpush1.bf16.msra.mxu0 %v3472_v29 }
 0x316   :  { %1921 = vmatmul.mubr.f32.vlgmr.msra.gmra.mrb[0].mxu0 %v4793_v62  ;;  %v2078_v62 = vld [vmem:[%s5710_s6 + $0x1f8] sm:$0xff] }
 0x317   :  { %1926 = vmatprep.mubr.f32.mxu0 %v3697_v11  ;;  %v3502_v30 = vpack.c.bf16 %v2078_v62, %v2077_v10  ;;  %v3516_v62 = vpack.c.bf16 %v2020_v12, %v2019_v35  ;;  %v2242_v35 = vld [vmem:[%s5710_s6 + $0x2b8] sm:$0xff] }
 0x319   :  { %3503 = vmatprep.subr.bf16.mxu1 %v3502_v30  ;;  %v3518_v30 = vpack.c.bf16 %v2038_v28, %v2037_v19  ;;  %v2225_v19 = vld [vmem:[%s5710_s6 + $0x230] sm:$0xff]  ;;  %v2226_v28 = vld [vmem:[%s5710_s6 + $0x238] sm:$0xff] }
 0x31a   :  { %1927 = vmatmul.mubr.f32.gmra.mrb[2].mxu0 %v4785_v57  ;;  %v2061_v57 = vld [vmem:[%s5710_s6 + $0x170] sm:$0xff] }
 0x31b   :  { %1932 = vmatprep.mubr.f32.mxu0 %v3697_v11 }
 0x31e   :  { %1933 = vmatmul.mubr.f32.gmra.mrb[4].mxu0 %v4831_v15  ;;  %v2062_v15 = vld [vmem:[%s5710_s6 + $0x178] sm:$0xff] }
 0x31f   :  { %1938 = vmatprep.mubr.f32.mxu0 %v3697_v11  ;;  %v3504_v33 = vpack.c.bf16 %v2062_v15, %v2061_v57  ;;  %v2021_v57 = vld [vmem:[%s5710_s6 + $0x30] sm:$0xff]  ;;  %v2022_v15 = vld [vmem:[%s5710_s6 + $0x38] sm:$0xff] }
 0x321   :  { %3505 = vmatpush3.bf16.msra.mxu1 %v3504_v33  ;;  %v2039_v33 = vld [vmem:[%s5710_s6 + $0xc0] sm:$0xff] }
 0x322   :  { %1939 = vmatmul.mubr.f32.gmra.mrb[6].mxu0 %v4823_v8  ;;  %v2031_v8 = vld [vmem:[%s5710_s6 + $0x80] sm:$0xff] }
 0x323   :  { %v3506_v34 = vpack.c.bf16 %v2032_v32, %v2031_v8  ;;  %v2040_v8 = vld [vmem:[%s5710_s6 + $0xc8] sm:$0xff]  ;;  %v3520_v32 = vpack.c.bf16 %v2022_v15, %v2021_v57  ;;  %v3552_v57 = vpack.c.bf16 %v2226_v28, %v2225_v19  ;;  %v2332_v19 = vld [vmem:[%s5710_s6 + $0x350] sm:$0xff]  ;;  %v2333_v28 = vld [vmem:[%s5710_s6 + $0x358] sm:$0xff] }
 0x325   :  { %3507 = vmatprep.subr.bf16.mxu1 %v3506_v34  ;;  %v3522_v34 = vpack.c.bf16 %v2040_v8, %v2039_v33  ;;  %v2227_v33 = vld [vmem:[%s5710_s6 + $0x240] sm:$0xff]  ;;  %v2228_v8 = vld [vmem:[%s5710_s6 + $0x248] sm:$0xff] }
 0x326   :  { %v3556_v36 = vpack.c.bf16 %v2228_v8, %v2227_v33  ;;  %v2334_v33 = vld [vmem:[%s5710_s6 + $0x360] sm:$0xff]  ;;  %v2335_v8 = vld [vmem:[%s5710_s6 + $0x368] sm:$0xff] }
 0x3e9   :  { %v5305_v41 = vpop.f32.mrb[0].mxu0 }
 0x3ea   :  { %v1924_v46 = vpop.f32.mrb[1].mxu0 }
 0x3eb   :  { %v1974_v21 = vadd.f32 %v5308_v44, %v1924_v46  ;;  %v3526_v46 = vpack.c.bf16 %v2042_v39, %v2041_v38  ;;  %v2229_v38 = vld [vmem:[%s5710_s6 + $0x250] sm:$0xff]  ;;  %v2230_v39 = vld [vmem:[%s5710_s6 + $0x258] sm:$0xff] }
 0x3ed   :  { %v1928_v54 = vpop.f32.mrb[2].mxu0  ;;  %v1982_v43 = vmax.f32 %v1974_v21, 0.0  ;;  %v2025_v21 = vld [vmem:[%s5710_s6 + $0x50] sm:$0xff] }
 0x3ee   :  { %v1975_v20 = vadd.f32 %v5312_v49, %v1928_v54  ;;  %v1930_v59 = vpop.f32.mrb[3].mxu0  ;;  %v2043_v54 = vld [vmem:[%s5710_s6 + $0xe0] sm:$0xff] }
 0x3ef   :  { %v1976_v60 = vadd.f32 %v5308_v44, %v1930_v59  ;;  %v2008_v42 = vadd.f32 %v5325_v48, %v1982_v43  ;;  %v3530_v59 = vpack.c.bf16 %v2044_v56, %v2043_v54  ;;  %v2231_v54 = vld [vmem:[%s5710_s6 + $0x260] sm:$0xff]  ;;  %v2232_v56 = vld [vmem:[%s5710_s6 + $0x268] sm:$0xff] }
 0x3f0   :  { %v1983_v63 = vmax.f32 %v1975_v20, 0.0  ;;  %v3528_v20 = vpack.c.bf16 %v2026_v52, %v2025_v21  ;;  %v3560_v21 = vpack.c.bf16 %v2230_v39, %v2229_v38  ;;  %v2336_v38 = vld [vmem:[%s5710_s6 + $0x370] sm:$0xff]  ;;  %v2337_v39 = vld [vmem:[%s5710_s6 + $0x378] sm:$0xff] }
 0x3f1   :  { %v1984_v0 = vmax.f32 %v1976_v60, 0.0  ;;  %v1934_v53 = vpop.f32.mrb[4].mxu0  ;;  %v2027_v60 = vld [vmem:[%s5710_s6 + $0x60] sm:$0xff] }
 0x3f2   :  { %v1977_v27 = vadd.f32 %v5312_v49, %v1934_v53  ;;  %v5337_v47 = vpop.f32.mrb[5].mxu0  ;;  %v2009_v4 = vadd.f32 %v5334_v3, %v1983_v63  ;;  %v2028_v63 = vld [vmem:[%s5710_s6 + $0x68] sm:$0xff]  ;;  %v3534_v53 = vpack.c.bf16 %v2046_v5, %v2045_v50  ;;  %v2233_v50 = vld [vmem:[%s5710_s6 + $0x270] sm:$0xff]  ;;  %v2234_v5 = vld [vmem:[%s5710_s6 + $0x278] sm:$0xff] }
 0x3f3   :  { %v2010_v55 = vadd.f32 %v5325_v48, %v1984_v0  ;;  %v3532_v43 = vpack.c.bf16 %v2028_v63, %v2027_v60  ;;  %v1973_v0 = vadd.f32 %v5312_v49, %v5305_v41  ;;  %v2236_v41 = vld [vmem:[%s5710_s6 + $0x288] sm:$0xff]  ;;  %v3564_v60 = vpack.c.bf16 %v2232_v56, %v2231_v54  ;;  %v2440_v56 = vld [vmem:[%s5712_s8 + $0x10] sm:$0xff] }
 0x3f4   :  { %v1985_v61 = vmax.f32 %v1977_v27, 0.0  ;;  %v1978_v27 = vadd.f32 %v5308_v44, %v5337_v47 }
 0x3f5   :  { %v1940_v40 = vpop.f32.mrb[6].mxu0  ;;  %2143 = vmatprep.mubr.f32.mxu1 %v2010_v55  ;;  %v2235_v55 = vld [vmem:[%s5710_s6 + $0x280] sm:$0xff] }
 0x3f6   :  { %v5355_v13 = vadd.f32 %v5334_v3, %v1985_v61  ;;  %v1979_v24 = vadd.f32 %v5312_v49, %v1940_v40  ;;  %v1942_v58 = vpop.f32.mrb[7].mxu0  ;;  %2144 = vmatmul.mubr.f32.vlgmr.msra.gmra.mrb[56].mxu1 %v2009_v4  ;;  %v3536_v49 = vpack.c.bf16 %v2030_v1, %v2029_v25  ;;  %v3538_v4 = vpack.c.bf16 %v2236_v41, %v2235_v55  ;;  %v2219_v61 = vld [vmem:[%s5710_s6 + $0x200] sm:$0xff]  ;;  %v2340_v55 = vld [vmem:[%s5710_s6 + $0x390] sm:$0xff]  ;;  %v2341_v41 = vld [vmem:[%s5710_s6 + $0x398] sm:$0xff] }
 0x3f7   :  { %v1980_v26 = vadd.f32 %v5308_v44, %v1942_v58  ;;  %3509 = vmatpush3.bf16.msra.mxu1 %v3508_v2  ;;  %2213 = vmatprep.mubr.f32.mxu1 %v2008_v42  ;;  %v1981_v2 = vmax.f32 %v1973_v0, 0.0  ;;  %v2220_v44 = vld [vmem:[%s5710_s6 + $0x208] sm:$0xff]  ;;  %v1986_v47 = vmax.f32 %v1978_v27, 0.0  ;;  %v2239_v58 = vld [vmem:[%s5710_s6 + $0x2a0] sm:$0xff] }
 0x3f8   :  { %v1987_v18 = vmax.f32 %v1979_v24, 0.0  ;;  %3511 = vmatprep.subr.bf16.mxu1 %v3510_v6  ;;  %v2237_v6 = vld [vmem:[%s5710_s6 + $0x290] sm:$0xff]  ;;  %v3540_v31 = vpack.c.bf16 %v2220_v44, %v2219_v61  ;;  %v2339_v0 = vld [vmem:[%s5710_s6 + $0x388] sm:$0xff]  ;;  %v2322_v1 = vld [vmem:[%s5710_s6 + $0x300] sm:$0xff] }
 0x3f9   :  { %v1988_v16 = vmax.f32 %v1980_v26, 0.0  ;;  %v2007_v42 = vadd.f32 %v5334_v3, %v1981_v2  ;;  %v3542_v40 = vpack.c.bf16 %v2238_v23, %v2237_v6  ;;  %v2012_v24 = vadd.f32 %v5325_v48, %v1986_v47  ;;  %v2323_v27 = vld [vmem:[%s5710_s6 + $0x308] sm:$0xff]  ;;  %v2325_v61 = vld [vmem:[%s5710_s6 + $0x318] sm:$0xff]  ;;  %v2342_v44 = vld [vmem:[%s5710_s6 + $0x3a0] sm:$0xff] }
 0x3fa   :  { %v5372_v29 = vadd.f32 %v5334_v3, %v1987_v18  ;;  %v2240_v3 = vld [vmem:[%s5710_s6 + $0x2a8] sm:$0xff]  ;;  %v3544_v26 = vpack.c.bf16 %v2222_v9, %v2221_v22  ;;  %v2223_v18 = vld [vmem:[%s5710_s6 + $0x220] sm:$0xff]  ;;  %v3574_v2 = vpack.c.bf16 %v2341_v41, %v2340_v55  ;;  %v2328_v9 = vld [vmem:[%s5710_s6 + $0x330] sm:$0xff] }
 0x3fb   :  { %v5375_v10 = vadd.f32 %v5325_v48, %v1988_v16  ;;  %3513 = vmatpush3.bf16.msra.mxu1 %v3512_v14  ;;  %v3546_v14 = vpack.c.bf16 %v2240_v3, %v2239_v58  ;;  %v2224_v48 = vld [vmem:[%s5710_s6 + $0x228] sm:$0xff]  ;;  %v2346_v58 = vld [vmem:[%s5710_s6 + $0x3c0] sm:$0xff] }
 0x3fc   :  { %3515 = vmatprep.subr.bf16.mxu1 %v3514_v17  ;;  %v2241_v17 = vld [vmem:[%s5710_s6 + $0x2b0] sm:$0xff]  ;;  %v3548_v12 = vpack.c.bf16 %v2224_v48, %v2223_v18  ;;  %v2343_v47 = vld [vmem:[%s5710_s6 + $0x3a8] sm:$0xff]  ;;  %v2330_v18 = vld [vmem:[%s5710_s6 + $0x340] sm:$0xff] }
 0x3fd   :  { %v3550_v16 = vpack.c.bf16 %v2242_v35, %v2241_v17  ;;  %v3578_v23 = vpack.c.bf16 %v2343_v47, %v2342_v44  ;;  %v2347_v3 = vld [vmem:[%s5710_s6 + $0x3c8] sm:$0xff]  ;;  %v2348_v17 = vld [vmem:[%s5710_s6 + $0x3d0] sm:$0xff]  ;;  %v2349_v35 = vld [vmem:[%s5710_s6 + $0x3d8] sm:$0xff] }
 0x3fe   :  { %v2331_v48 = vld [vmem:[%s5710_s6 + $0x348] sm:$0xff]  ;;  %v2425_v44 = vld [vmem:[%s5713_s7] sm:$0x3] }
 0x3ff   :  { %3517 = vmatpush3.bf16.msra.mxu1 %v3516_v62  ;;  %v2243_v62 = vld [vmem:[%s5710_s6 + $0x2c0] sm:$0xff] }
 0x400   :  { %3519 = vmatprep.subr.bf16.mxu1 %v3518_v30  ;;  %v2244_v30 = vld [vmem:[%s5710_s6 + $0x2c8] sm:$0xff] }
 0x401   :  { %v3554_v15 = vpack.c.bf16 %v2244_v30, %v2243_v62  ;;  %v2350_v62 = vld [vmem:[%s5710_s6 + $0x3e0] sm:$0xff]  ;;  %v2351_v30 = vld [vmem:[%s5710_s6 + $0x3e8] sm:$0xff] }
 0x403   :  { %3521 = vmatpush3.bf16.msra.mxu1 %v3520_v32  ;;  %v2245_v32 = vld [vmem:[%s5710_s6 + $0x2d0] sm:$0xff] }
 0x404   :  { %3523 = vmatprep.subr.bf16.mxu1 %v3522_v34  ;;  %v2246_v34 = vld [vmem:[%s5710_s6 + $0x2d8] sm:$0xff] }
 0x405   :  { %v3558_v37 = vpack.c.bf16 %v2246_v34, %v2245_v32  ;;  %v2352_v32 = vld [vmem:[%s5710_s6 + $0x3f0] sm:$0xff]  ;;  %v2353_v34 = vld [vmem:[%s5710_s6 + $0x3f8] sm:$0xff] }
 0x407   :  { %3525 = vmatpush3.bf16.msra.mxu1 %v3524_v45  ;;  %v2247_v45 = vld [vmem:[%s5710_s6 + $0x2e0] sm:$0xff] }
 0x408   :  { %3527 = vmatprep.subr.bf16.mxu1 %v3526_v46  ;;  %v2248_v46 = vld [vmem:[%s5710_s6 + $0x2e8] sm:$0xff] }
 0x409   :  { %v3562_v52 = vpack.c.bf16 %v2248_v46, %v2247_v45  ;;  %v3600_v45 = vpack.c.bf16 %v2337_v39, %v2336_v38  ;;  %v3698_v46 = vmov 0.0|0.0  }
 0x40b   :  { %3529 = vmatpush3.bf16.msra.mxu1 %v3528_v20  ;;  %v2249_v20 = vld [vmem:[%s5710_s6 + $0x2f0] sm:$0xff] }
 0x40c   :  { %3531 = vmatprep.subr.bf16.mxu1 %v3530_v59  ;;  %v2250_v59 = vld [vmem:[%s5710_s6 + $0x2f8] sm:$0xff] }
 0x40d   :  { %v3566_v63 = vpack.c.bf16 %v2250_v59, %v2249_v20  ;;  %v2442_v59 = vld [vmem:[%s5712_s8 + $0x20] sm:$0xff] }
 0x40f   :  { %3533 = vmatpush3.bf16.msra.mxu1 %v3532_v43  ;;  %v2338_v43 = vld [vmem:[%s5710_s6 + $0x380] sm:$0xff] }
 0x410   :  { %3535 = vmatprep.subr.bf16.mxu1 %v3534_v53  ;;  %v3568_v53 = vpack.c.bf16 %v2234_v5, %v2233_v50  ;;  %v3570_v25 = vpack.c.bf16 %v2339_v0, %v2338_v43  ;;  %v2444_v50 = vld [vmem:[%s5712_s8 + $0x30] sm:$0xff]  ;;  %v2445_v5 = vld [vmem:[%s5712_s8 + $0x38] sm:$0xff] }
 0x411   :  { %v3612_v43 = vpack.c.bf16 %v2445_v5, %v2444_v50 }
 0x413   :  { %3537 = vmatpush3.bf16.msra.mxu1 %v3536_v49  ;;  %v3572_v49 = vpack.c.bf16 %v2323_v27, %v2322_v1 }
 0x414   :  { %3539 = vmatprep.subr.bf16.mxu1 %v3538_v4  ;;  %v2324_v4 = vld [vmem:[%s5710_s6 + $0x310] sm:$0xff] }
 0x415   :  { %v3576_v6 = vpack.c.bf16 %v2325_v61, %v2324_v4 }
 0x416   :  { %2214 = vmatmul.mubr.f32.vlgmr.msra.gmra.mrb[58].mxu1 %v2007_v42  ;;  %v2327_v42 = vld [vmem:[%s5710_s6 + $0x328] sm:$0xff] }
 0x417   :  { %3541 = vmatpush3.bf16.msra.mxu1 %v3540_v31  ;;  %2315 = vmatprep.mubr.f32.mxu1 %v2012_v24  ;;  %v2326_v31 = vld [vmem:[%s5710_s6 + $0x320] sm:$0xff]  ;;  %v2329_v24 = vld [vmem:[%s5710_s6 + $0x338] sm:$0xff] }
 0x418   :  { %3543 = vmatprep.subr.bf16.mxu1 %v3542_v40  ;;  %v2344_v40 = vld [vmem:[%s5710_s6 + $0x3b0] sm:$0xff] }
 0x41b   :  { %3545 = vmatpush3.bf16.msra.mxu1 %v3544_v26  ;;  %v3584_v26 = vpack.c.bf16 %v2329_v24, %v2328_v9 }
 0x41c   :  { %3547 = vmatprep.subr.bf16.mxu1 %v3546_v14  ;;  %v3586_v14 = vpack.c.bf16 %v2347_v3, %v2346_v58  ;;  %v2531_v3 = vld [vmem:[%s5714_s10 + $0x10] sm:$0xff] }
 0x41f   :  { %3549 = vmatpush3.bf16.msra.mxu1 %v3548_v12  ;;  %v3588_v12 = vpack.c.bf16 %v2331_v48, %v2330_v18  ;;  %v2533_v18 = vld [vmem:[%s5714_s10 + $0x20] sm:$0xff]  ;;  %v2534_v48 = vld [vmem:[%s5714_s10 + $0x28] sm:$0xff] }
 0x420   :  { %3551 = vmatprep.subr.bf16.mxu1 %v3550_v16  ;;  %v3590_v16 = vpack.c.bf16 %v2349_v35, %v2348_v17  ;;  %v3621_v17 = vpack.c.bf16 %v2534_v48, %v2533_v18  ;;  %v2535_v35 = vld [vmem:[%s5714_s10 + $0x30] sm:$0xff] }
 0x423   :  { %3553 = vmatpush3.bf16.msra.mxu1 %v3552_v57  ;;  %v3592_v57 = vpack.c.bf16 %v2333_v28, %v2332_v19 }
 0x424   :  { %3555 = vmatprep.subr.bf16.mxu1 %v3554_v15  ;;  %v3594_v15 = vpack.c.bf16 %v2351_v30, %v2350_v62 }
 0x427   :  { %3557 = vmatpush3.bf16.msra.mxu1 %v3556_v36  ;;  %v3596_v36 = vpack.c.bf16 %v2335_v8, %v2334_v33  ;;  %v2676_v8 = vld [vmem:[%s5716_s11] ss:$0 sm:$0xff] }
 0x428   :  { %3559 = vmatprep.subr.bf16.mxu1 %v3558_v37  ;;  %v3598_v37 = vpack.c.bf16 %v2353_v34, %v2352_v32 }
 0x42b   :  { %3561 = vmatpush3.bf16.msra.mxu1 %v3560_v21  ;;  %v2438_v21 = vld [vmem:[%s5712_s8] sm:$0xff] }
 0x42c   :  { %3563 = vmatprep.subr.bf16.mxu1 %v3562_v52  ;;  %v2439_v52 = vld [vmem:[%s5712_s8 + $0x8] sm:$0xff] }
 0x42d   :  { %v3603_v54 = vpack.c.bf16 %v2439_v52, %v2438_v21 }
 0x42f   :  { %3565 = vmatpush3.bf16.msra.mxu1 %v3564_v60  ;;  %v2443_v60 = vld [vmem:[%s5712_s8 + $0x28] sm:$0xff] }
 0x430   :  { %3567 = vmatprep.subr.bf16.mxu1 %v3566_v63  ;;  %v3609_v63 = vpack.c.bf16 %v2443_v60, %v2442_v59 }
 0x433   :  { %3569 = vmatpush3.bf16.msra.mxu1 %v3568_v53 }
 0x434   :  { %3571 = vmatprep.subr.bf16.mxu1 %v3570_v25 }
 0x436   :  { %2316 = vmatmul.mubr.f32.vlgmr.msra.gmra.mrb[60].mxu1 %v5355_v13  ;;  %v2345_v13 = vld [vmem:[%s5710_s6 + $0x3b8] sm:$0xff] }
 0x437   :  { %3573 = vmatpush3.bf16.msra.mxu1 %v3572_v49  ;;  %2418 = vmatprep.mubr.f32.mxu1 %v5375_v10  ;;  %v3580_v10 = vpack.c.bf16 %v2327_v42, %v2326_v31  ;;  %v3582_v22 = vpack.c.bf16 %v2345_v13, %v2344_v40  ;;  %v2429_v31 = vrot.slane %v2425_v44, %v4124_v51 }
 0x438   :  { %3575 = vmatprep.subr.bf16.mxu1 %v3574_v2  ;;  %v2435_v13 = vrot.slane %v2425_v44, %v4131_v7 }
 0x43b   :  { %3577 = vmatpush3.bf16.msra.mxu1 %v3576_v6 }
 0x43c   :  { %3579 = vmatprep.subr.bf16.mxu1 %v3578_v23 }
 0x43f   :  { %3581 = vmatpush3.bf16.msra.mxu1 %v3580_v10  ;;  %v2529_v10 = vld [vmem:[%s5714_s10] sm:$0xff] }
 0x440   :  { %3583 = vmatprep.subr.bf16.mxu1 %v3582_v22  ;;  %v2530_v22 = vld [vmem:[%s5714_s10 + $0x8] sm:$0xff] }
 0x441   :  { %v3615_v24 = vpack.c.bf16 %v2530_v22, %v2529_v10 }
 0x443   :  { %3585 = vmatpush3.bf16.msra.mxu1 %v3584_v26  ;;  %v2532_v26 = vld [vmem:[%s5714_s10 + $0x18] sm:$0xff] }
 0x444   :  { %3587 = vmatprep.subr.bf16.mxu1 %v3586_v14  ;;  %v3618_v14 = vpack.c.bf16 %v2532_v26, %v2531_v3 }
 0x447   :  { %3589 = vmatpush3.bf16.msra.mxu1 %v3588_v12 }
 0x448   :  { %3591 = vmatprep.subr.bf16.mxu1 %v3590_v16  ;;  %v2437_v16 = vld [vmem:[%s5715_s9] sm:$0x3] }
 0x449   :  { %v2449_v19 = vrot.slane %v2437_v16, %v4124_v51  ;;  %v2527_v30 = vrot.slane %v2437_v16, %v4131_v7 }
 0x44b   :  { %3593 = vmatpush3.bf16.msra.mxu1 %v3592_v57 }
 0x44c   :  { %3595 = vmatprep.subr.bf16.mxu1 %v3594_v15 }
 0x44f   :  { %3597 = vmatpush3.bf16.msra.mxu1 %v3596_v36 }
 0x450   :  { %3599 = vmatprep.subr.bf16.mxu1 %v3598_v37 }
 0x453   :  { %3601 = vmatpush3.bf16.msra.mxu1 %v3600_v45 }
 0x454   :  { %3602 = vmatprep.subr.bf16.mxu1 %v3698_v46 }
 0x456   :  { %2419 = vmatmul.mubr.f32.vlgmr.msra.gmra.mrb[62].mxu1 %v5372_v29  ;;  %v2441_v29 = vld [vmem:[%s5712_s8 + $0x18] sm:$0xff] }
 0x457   :  { %3604 = vmatpush3.bf16.msra.mxu1 %v3603_v54  ;;  %v3606_v20 = vpack.c.bf16 %v2441_v29, %v2440_v56  ;;  %3076 = vmatprep.mubr.msk.f32.mxu1 %vm3699_vm2, %v3697_v11 }
 0x458   :  { %3605 = vmatprep.subr.bf16.mxu1 %v3698_v46 }
 0x45b   :  { %3607 = vmatpush3.bf16.msra.mxu1 %v3606_v20 }
 0x45c   :  { %3608 = vmatprep.subr.bf16.mxu1 %v3698_v46 }
 0x45f   :  { %3610 = vmatpush3.bf16.msra.mxu1 %v3609_v63 }
 0x460   :  { %3611 = vmatprep.subr.bf16.mxu1 %v3698_v46 }
 0x463   :  { %3613 = vmatpush3.bf16.msra.mxu1 %v3612_v43 }
 0x464   :  { %3614 = vmatprep.subr.bf16.mxu1 %v3698_v46 }
 0x4c9   :  { %v2850_v0 = vpop.f32.mrb[56].mxu1 }
 0x4ca   :  { %v2851_v53 = vpop.f32.mrb[57].mxu1 }
 0x4cb   :  { %v2852_v25 = vadd.f32 %v2851_v53, %v2850_v0 }
 0x4e9   :  { %v2885_v1 = vpop.f32.mrb[58].mxu1 }
 0x4ea   :  { %v2886_v27 = vpop.f32.mrb[59].mxu1 }
 0x4eb   :  { %v2887_v55 = vadd.f32 %v2886_v27, %v2885_v1 }
 0x4ed   :  { %v2216_v41 = vadd.f32 %v2887_v55, %v2852_v25 }
 0x509   :  { %v2920_v49 = vpop.f32.mrb[60].mxu1 }
 0x50a   :  { %v2921_v2 = vpop.f32.mrb[61].mxu1 }
 0x50b   :  { %v2922_v4 = vadd.f32 %v2921_v2, %v2920_v49 }
 0x50d   :  { %v2321_v61 = vadd.f32 %v2922_v4, %v2216_v41 }
 0x529   :  { %v2955_v47 = vpop.f32.mrb[62].mxu1 }
 0x52a   :  { %v2956_v6 = vpop.f32.mrb[63].mxu1 }
 0x52b   :  { %v2957_v23 = vadd.f32 %v2956_v6, %v2955_v47 }
 0x52d   :  { %v2424_v42 = vadd.f32 %v2957_v23, %v2321_v61 }
 0x52f   :  { %v2430_v40 = vadd.f32 %v2429_v31, %v2424_v42 }
 0x531   :  { %v2431_v9 = vmax.f32 %v2430_v40, 0.0 }
 0x533   :  { %v2436_v58 = vadd.f32 %v2435_v13, %v2431_v9 }
 0x535   :  { %3077 = vmatmul.mubr.msk.f32.vlgmr.msra.gmra.mrb[64].mxu1 %vm138_vm0, %v2436_v58 }
 0x536   :  { %3616 = vmatpush3.bf16.msra.mxu1 %v3615_v24  ;;  %3095 = vmatprep.mubr.msk.f32.mxu1 %vm3699_vm2, %v3697_v11  ;;  %v2536_v11 = vld [vmem:[%s5714_s10 + $0x38] sm:$0xff] }
 0x537   :  { %3617 = vmatprep.subr.bf16.mxu1 %v3698_v46  ;;  %v3624_v12 = vpack.c.bf16 %v2536_v11, %v2535_v35 }
 0x53a   :  { %3619 = vmatpush3.bf16.msra.mxu1 %v3618_v14 }
 0x53b   :  { %3620 = vmatprep.subr.bf16.mxu1 %v3698_v46 }
 0x53e   :  { %3622 = vmatpush3.bf16.msra.mxu1 %v3621_v17 }
 0x53f   :  { %3623 = vmatprep.subr.bf16.mxu1 %v3698_v46 }
 0x542   :  { %3625 = vmatpush3.bf16.msra.mxu1 %v3624_v12 }
 0x608   :  { %v2519_v28 = vpop.f32.mrb[64].mxu1 }
 0x609   :  { %v2520_v62 = vadd.f32 %v2519_v28, %v2449_v19  ;;  %v3078_v57 = vpop.f32.mrb[65].mxu1 }
 0x60b   :  { %v2523_v15 = vmax.f32 %v2520_v62, 0.0 }
 0x60d   :  { %v2528_v33 = vadd.f32 %v2527_v30, %v2523_v15 }
 0x60f   :  { %3096 = vmatmul.mubr.msk.f32.vlgmr.msra.gmra.mrb[66].mxu1 %vm138_vm0, %v2528_v33 }
 0x6e2   :  { %v2613_v32 = vpop.f32.mrb[66].mxu1 }
 0x6e3   :  { %v2614_v34 = vadd.f32 %v2676_v8, %v2613_v32  ;;  %v3097_v36 = vpop.f32.mrb[67].mxu1 }
 0x6e5   :  { %v2618_v37 = vsel %vm2617_vm3, %v2614_v34, -inf }
 0x6e6   :  { %2619 = vmax.xlane.f32.xlu0 %v2618_v37 }
 0x773   :  { %v2620_v51 = vpop.xlane.xlu0 %2619 }
 0x774   :  { %v2621_v38 = vsub.f32 %v2614_v34, %v2620_v51 }
 0x776   :  { %v2622_v39 = vmul.f32 1.442695, %v2621_v38 }
 0x778   :  { %3693 = vpow2.f32 %v2622_v39 }
 0x782   :  { %v3694_v7 = vpop.eup %3693 }
 0x783   :  { %v2624_v45 = vsel %vm2617_vm3, %v3694_v7, 0.0 }
 0x784   :  { %2625 = vadd.xlane.f32.xlu0 %v2624_v45 }
 0x811   :  { %v2626_v46 = vpop.xlane.xlu0 %2625 }
 0x812   :  { %3695 = vlog2.f32 %v2626_v46 }
 0x81c   :  { %v3696_v21 = vpop.eup %3695 }
 0x81d   :  { %v2628_v52 = vmul.f32 0.6931472, %v3696_v21 }
 0x81f   :  { %v2629_v54 = vsub.f32 %v2621_v38, %v2628_v52 }
 0x821   :  { %2630 = vst.msk [vmem:[%s5717_s12] sm:$0xff] %vm2617_vm3, %v2629_v54 }

</bundles_post_ra>
